<compile_context>
chip_gen: v7x
topology: tpu7x:2x2x1
jax: 0.10.0
libtpu: 0.0.40
codegen_flags: <defaults>
</compile_context>

<pallas_src>
import functools

import jax
import jax.numpy as jnp
from jax import lax
from jax.experimental import pallas as pl
from jax.experimental.pallas import tpu as pltpu


_FF_CHUNK_TARGET = 2048   # max hidden-dim chunk for the FFN intermediate


# ----------------------------------------------------------------------------
# Kernel: one grid step == one tile of batch elements.
# ----------------------------------------------------------------------------
def _encoder_layer_kernel(
    x_ref,                                   # (B, S, E) f32
    gamma_ref, beta_ref,                     # (1, E) f32
    wqkv_ref, bqkv_ref,                      # (E, 3E) bf16 (scale folded into Wq), (1, 3E) f32
    bk_mat_ref,                              # (E, H) bf16 block-diag bias_k matrix
    bvwo_ref,                                # (H, E) bf16  == Bv @ Wo
    wo_ref, bo_ref,                          # (E, E) bf16, (1, E) f32
    w1_ref, b1_ref,                          # (E, F) bf16, (1, F) f32
    w2_ref, b2_ref,                          # (F, E) bf16, (1, E) f32
    out_ref,                                 # (B, S, E) f32
    attn_ref,                                # (B, S, Spad) f32 (lane-padded, sliced outside)
    *, nhead, head_dim, seq_len, attn_pad, ff_chunks,
):
    B = x_ref.shape[0]
    S = seq_len
    E = nhead * head_dim
    M = B * S
    F = w1_ref.shape[1]
    bf16 = jnp.bfloat16
    f32 = jnp.float32

    x = x_ref[...].reshape(M, E)                                  # (M, E) f32

    # ---- norm1: two-pass LayerNorm (eps=1e-5) ----
    mean = jnp.mean(x, axis=-1, keepdims=True)
    xc = x - mean
    var = jnp.mean(xc * xc, axis=-1, keepdims=True)
    xn = xc * lax.rsqrt(var + 1e-5) * gamma_ref[0] + beta_ref[0]

    # ---- fused Q/K/V in-projection (bf16 MXU, f32 accumulation) ----
    # 1/sqrt(head_dim) is pre-folded into Wq / bq by prepare_params().
    qkv = jnp.dot(xn.astype(bf16), wqkv_ref[...],
                  preferred_element_type=f32) + bqkv_ref[0]       # (M, 3E)
    q_b = qkv[:, 0:E].astype(bf16)                                # (M, E) scaled queries
    k_b = qkv[:, E:2 * E].reshape(B, S, E).astype(bf16)
    v_b = qkv[:, 2 * E:3 * E].reshape(B, S, E).astype(bf16)

    # bias_k column scores for all heads with one matmul (consistent bf16 precision)
    col_all = jnp.dot(q_b, bk_mat_ref[...],
                      preferred_element_type=f32).reshape(B, S, nhead)   # (B, S, H)
    q3_b = q_b.reshape(B, S, E)

    # ---- per-head attention: scores / softmax / PV, contexts staged for one projection ----
    attn_sum = jnp.zeros((B, S, S), f32)                          # head-summed probs (real keys)
    ctx_cols = []                                                 # per-head context columns
    pc_cols = []                                                  # per-head bias-column probs
    for h in range(nhead):
        lo = h * head_dim
        hi = lo + head_dim
        scores = jnp.einsum('bqd,bkd->bqk', q3_b[:, :, lo:hi], k_b[:, :, lo:hi],
                            preferred_element_type=f32)           # (B, S, S)
        col = col_all[:, :, h:h + 1]                              # (B, S, 1) bias_k score
        m = jnp.maximum(jnp.max(scores, axis=-1, keepdims=True), col)
        p = jnp.exp(scores - m)
        pc = jnp.exp(col - m)
        # exact reciprocal: attention probabilities are a user-visible output
        inv_den = 1.0 / (jnp.sum(p, axis=-1, keepdims=True) + pc)
        p = p * inv_den
        pc = pc * inv_den
        attn_sum = attn_sum + p
        ctx = jnp.einsum('bqk,bkd->bqd', p.astype(bf16), v_b[:, :, lo:hi],
                         preferred_element_type=f32)              # (B, S, hd)
        ctx_cols.append(ctx.reshape(M, head_dim))
        pc_cols.append(pc.reshape(M, 1))

    ctx_cat = jnp.concatenate(ctx_cols, axis=-1).astype(bf16)     # (M, E) bf16
    pc_all = jnp.concatenate(pc_cols, axis=-1)                    # (M, H) f32

    # ---- output projection: single full-K matmul + tiny bias_v term, then residual ----
    attn_out = (jnp.dot(ctx_cat, wo_ref[...], preferred_element_type=f32)
                + jnp.dot(pc_all.astype(bf16), bvwo_ref[...], preferred_element_type=f32)
                + bo_ref[0])
    src = x + attn_out                                            # dropout1 == identity

    # ---- feed-forward (relu), chunked over hidden dim, + second residual ----
    src_b = src.astype(bf16)
    fc = F // ff_chunks
    ffn = None
    for c in range(ff_chunks):
        clo = c * fc
        h1 = jnp.dot(src_b, w1_ref[:, clo:clo + fc],
                     preferred_element_type=f32) + b1_ref[0, clo:clo + fc]
        h1 = jnp.maximum(h1, 0.0)
        part = jnp.dot(h1.astype(bf16), w2_ref[clo:clo + fc, :],
                       preferred_element_type=f32)
        ffn = part if ffn is None else ffn + part
    out_ref[...] = (src + ffn + b2_ref[0]).reshape(B, S, E)

    # ---- head-averaged attention weights: one lane-dense padded store ----
    inv_h = 1.0 / nhead
    col_sum = jnp.sum(pc_all, axis=-1, keepdims=True).reshape(B, S, 1)
    pieces = [attn_sum * inv_h, col_sum * inv_h]
    pad = attn_pad - S - 1
    if pad > 0:
        pieces.append(jnp.zeros((B, S, pad), f32))
    attn_ref[...] = jnp.concatenate(pieces, axis=-1)


# ----------------------------------------------------------------------------
# Weight preparation (fuse / transpose / cast).  For repeated inference calls
# this should be computed once and cached by the caller.
# ----------------------------------------------------------------------------
def prepare_params(params, nhead):
    E = params["wq"].shape[0]
    hd = E // nhead
    scale = 1.0 / (hd ** 0.5)
    bf16 = jnp.bfloat16
    f32 = jnp.float32

    wqkv = jnp.concatenate([params["wq"] * scale, params["wk"], params["wv"]],
                           axis=1).astype(bf16)
    bqkv = jnp.concatenate([params["bq"] * scale, params["bk"], params["bv"]],
                           axis=1).astype(f32)

    # block-diagonal bias_k matrix: col[m,h] = q[m, h-block] . bias_k[h-block]
    bk_heads = params["bias_k"].reshape(nhead, hd)
    eye = jnp.eye(nhead, dtype=f32)
    bk_mat = (bk_heads[:, :, None] * eye[:, None, :]).reshape(E, nhead).astype(bf16)

    # bias_v contribution folded through the output projection: (Bv @ Wo) of shape (H, E)
    bv_heads = params["bias_v"].reshape(nhead, hd)
    wo_heads = params["wo"].reshape(nhead, hd, E)
    bvwo = jnp.einsum("hd,hde->he", bv_heads, wo_heads).astype(bf16)

    return {
        "gamma": params["gamma"], "beta": params["beta"],
        "wqkv": wqkv, "bqkv": bqkv,
        "bk_mat": bk_mat, "bvwo": bvwo,
        "wo": params["wo"].astype(bf16), "bo": params["bo"],
        "w1": params["w1"].astype(bf16), "b1": params["b1"],
        "w2": params["w2"].astype(bf16), "b2": params["b2"],
    }


# ----------------------------------------------------------------------------
# VMEM / tile heuristics
# ----------------------------------------------------------------------------
def _step_vmem_bytes(t, S, E, fc, H, Spad, weight_bytes):
    M = t * S
    blocks = t * S * (2 * E + Spad) * 4                  # x + out + attn blocks (f32)
    interm = (M * 3 * E * 4                              # qkv f32
              + M * E * (4 + 4 + 2 + 2 + 2 + 2)          # src/attn_out f32, xn/q/k/v/ctx bf16
              + M * fc * 6                               # h1 f32 + bf16 chunk
              + 3 * t * S * S * 4                        # scores / probs / attn_sum f32
              + 2 * M * H * 4)                           # col scores / probs
    return 2 * weight_bytes + 2 * blocks + interm


def _pick_batch_tile(N, S, E, fc, H, Spad, weight_bytes, vmem_cap):
    # keep grid length >= 2 (both v7x TensorCores get work), prefer M multiple of 256,
    # and keep the per-step VMEM estimate under ~half the scoped budget.
    cands = [t for t in range(1, N + 1)
             if N % t == 0 and (N < 2 or N // t >= 2)]
    if not cands:
        cands = [1]
    fit = [t for t in cands
           if _step_vmem_bytes(t, S, E, fc, H, Spad, weight_bytes) <= vmem_cap // 2]
    if not fit:
        fit = [min(cands)]
    aligned = [t for t in fit if (t * S) % 256 == 0]
    return max(aligned or fit)


# ----------------------------------------------------------------------------
# Wrapper
# ----------------------------------------------------------------------------
def miso_prenorm_encoder_layer(x, params, nhead, *, batch_tile=None):
    """x: (batch, seq, d_model) float32. Returns (out, attn_avg (N, S, S+1)).

    `params` may be either the raw parameter dict or the output of
    prepare_params() (cache the latter across calls for best performance)."""
    N, S, E = x.shape
    prepped = params if "wqkv" in params else prepare_params(params, nhead)
    Fdim = prepped["w1"].shape[1]
    head_dim = E // nhead
    Spad = ((S + 1 + 127) // 128) * 128                  # lane-dense attention output

    # FFN hidden-dim chunking (bounds the (M, Fc) f32 intermediate; matters on 64 MiB VMEM)
    ff_chunks = 1
    if Fdim > _FF_CHUNK_TARGET and Fdim % 128 == 0:
        for c in range(2, Fdim // 128 + 1):
            if Fdim % c == 0 and (Fdim // c) % 128 == 0 and Fdim // c <= _FF_CHUNK_TARGET:
                ff_chunks = c
                break
    fc = Fdim // ff_chunks

    weight_bytes = sum(int(v.size) * v.dtype.itemsize for v in prepped.values())

    try:
        phys_vmem = pltpu.get_tpu_info().vmem_capacity_bytes
    except Exception:
        phys_vmem = 64 << 20                              # conservative (v7x per-core)
    vmem_cap = int(0.75 * phys_vmem)

    if batch_tile is None:
        batch_tile = _pick_batch_tile(N, S, E, fc, nhead, Spad, weight_bytes, vmem_cap)
    assert N % batch_tile == 0

    vmem_limit = int(min(max(_step_vmem_bytes(batch_tile, S, E, fc, nhead, Spad,
                                              weight_bytes) + (4 << 20),
                             32 << 20), vmem_cap))

    kernel = functools.partial(_encoder_layer_kernel, nhead=nhead, head_dim=head_dim,
                               seq_len=S, attn_pad=Spad, ff_chunks=ff_chunks)

    args = (x, prepped["gamma"], prepped["beta"], prepped["wqkv"], prepped["bqkv"],
            prepped["bk_mat"], prepped["bvwo"], prepped["wo"], prepped["bo"],
            prepped["w1"], prepped["b1"], prepped["w2"], prepped["b2"])

    out_shape = (jax.ShapeDtypeStruct((N, S, E), jnp.float32),
                 jax.ShapeDtypeStruct((N, S, Spad), jnp.float32))

    def run(single_buffer_weights):
        def const_spec(shape):
            nd = len(shape)
            idx = lambda b, _n=nd: (0,) * _n
            if single_buffer_weights:
                # weights are fetched once; avoid double-buffering their VMEM residency
                return pl.BlockSpec(shape, idx, pipeline_mode=pl.Buffered(1))
            return pl.BlockSpec(shape, idx)

        in_specs = [
            pl.BlockSpec((batch_tile, S, E), lambda b: (b, 0, 0)),   # x
            const_spec((1, E)), const_spec((1, E)),                  # gamma, beta
            const_spec((E, 3 * E)), const_spec((1, 3 * E)),          # wqkv, bqkv
            const_spec((E, nhead)), const_spec((nhead, E)),          # bk_mat, bvwo
            const_spec((E, E)), const_spec((1, E)),                  # wo, bo
            const_spec((E, Fdim)), const_spec((1, Fdim)),            # w1, b1
            const_spec((Fdim, E)), const_spec((1, E)),               # w2, b2
        ]
        out_specs = [
            pl.BlockSpec((batch_tile, S, E), lambda b: (b, 0, 0)),
            pl.BlockSpec((batch_tile, S, Spad), lambda b: (b, 0, 0)),
        ]
        return pl.pallas_call(
            kernel,
            out_shape=out_shape,
            grid_spec=pltpu.PrefetchScalarGridSpec(
                num_scalar_prefetch=0,
                grid=(N // batch_tile,),
                in_specs=in_specs,
                out_specs=out_specs,
            ),
            compiler_params=pltpu.CompilerParams(
                dimension_semantics=("parallel",),
                vmem_limit_bytes=vmem_limit,
            ),
        )(*args)

    try:
        out, attn_padded = run(True)
    except Exception:
        # pl.Buffered(1) not supported by this jax version -> default buffering
        out, attn_padded = run(False)

    return out, attn_padded[:, :, :S + 1]


# ----------------------------------------------------------------------------
# Pure-JAX reference (f32) for a correctness sanity check
# ----------------------------------------------------------------------------
def _reference(x, p, nhead):
    N, S, E = x.shape
    hd = E // nhead
    mean = jnp.mean(x, axis=-1, keepdims=True)
    var = jnp.mean((x - mean) ** 2, axis=-1, keepdims=True)
    xn = (x - mean) / jnp.sqrt(var + 1e-5) * p["gamma"][0] + p["beta"][0]

    q = xn @ p["wq"] + p["bq"][0]
    k = xn @ p["wk"] + p["bk"][0]
    v = xn @ p["wv"] + p["bv"][0]
    kf = jnp.concatenate([k, jnp.broadcast_to(p["bias_k"], (N, 1, E))], axis=1)
    vf = jnp.concatenate([v, jnp.broadcast_to(p["bias_v"], (N, 1, E))], axis=1)

    qh = q.reshape(N, S, nhead, hd).transpose(0, 2, 1, 3) / (hd ** 0.5)
    kh = kf.reshape(N, S + 1, nhead, hd).transpose(0, 2, 1, 3)
    vh = vf.reshape(N, S + 1, nhead, hd).transpose(0, 2, 1, 3)
    scores = jnp.einsum("nhqd,nhkd->nhqk", qh, kh)
    probs = jax.nn.softmax(scores, axis=-1)
    ctx = jnp.einsum("nhqk,nhkd->nhqd", probs, vh)
    ctx = ctx.transpose(0, 2, 1, 3).reshape(N, S, E)
    attn_avg = jnp.mean(probs, axis=1)

    src = x + (ctx @ p["wo"] + p["bo"][0])
    ffn = jnp.maximum(src @ p["w1"] + p["b1"][0], 0.0) @ p["w2"] + p["b2"][0]
    return src + ffn, attn_avg


# ----------------------------------------------------------------------------
# Deterministic parameter construction + demo
# ----------------------------------------------------------------------------
def _make_params(key, d_model, nhead, dim_ff, init_scale=256):
    ks = jax.random.split(key, 8)
    f32 = jnp.float32

    def std(in_d, out_d):
        return (2.0 / (in_d + init_scale * out_d)) ** 0.5

    E, Fd = d_model, dim_ff
    return {
        "gamma": jnp.ones((1, E), f32),
        "beta": jnp.zeros((1, E), f32),
        # in-proj weights (pre-transposed so y = x @ W); biases set to 0 as in module init
        "wq": jax.random.normal(ks[0], (E, E), f32) * std(E, E),
        "wk": jax.random.normal(ks[1], (E, E), f32) * std(E, E),
        "wv": jax.random.normal(ks[2], (E, E), f32) * std(E, E),
        "bq": jnp.zeros((1, E), f32),
        "bk": jnp.zeros((1, E), f32),
        "bv": jnp.zeros((1, E), f32),
        "bias_k": jax.random.normal(ks[3], (1, E), f32) * std(1, E),
        "bias_v": jax.random.normal(ks[4], (1, E), f32) * std(1, E),
        "wo": jax.random.normal(ks[5], (E, E), f32) * std(E, E),
        "bo": jnp.zeros((1, E), f32),
        "w1": jax.random.normal(ks[6], (E, Fd), f32) * std(Fd, E),
        "b1": jnp.zeros((1, Fd), f32),
        "w2": jax.random.normal(ks[7], (Fd, E), f32) * std(E, Fd),
        "b2": jnp.zeros((1, E), f32),
    }


if __name__ == "__main__":
    N, S, E, NHEAD, FFN = 2, 8, 32, 4, 64

    key = jax.random.PRNGKey(0)
    kx, kp = jax.random.split(key)
    x = jax.random.normal(kx, (N, S, E), jnp.float32)   # (batch, seq, d_model)
    params = _make_params(kp, E, NHEAD, FFN)

    # weight prep is hoisted so it can be cached across repeated inference calls
    prepped = prepare_params(params, NHEAD)

    out, attn = miso_prenorm_encoder_layer(x, prepped, NHEAD)
    out = jax.block_until_ready(out)
    attn = jax.block_until_ready(attn)

    ref_out, ref_attn = _reference(x, params, NHEAD)
    assert out.shape == (N, S, E) and attn.shape == (N, S, S + 1)
    # tolerances relaxed for bf16 matmuls
    assert jnp.allclose(out, ref_out, atol=1e-2, rtol=1e-2)
    assert jnp.allclose(attn, ref_attn, atol=2e-3, rtol=1e-2)

    print("KERNEL_OK")
</pallas_src>

<mosaic_0001>
module attributes {stable_mosaic.version = 11 : i64} {
  func.func @_encoder_layer_kernel(%arg0: i32, %arg1: memref<1x8x32xf32, #tpu.memory_space<vmem>>, %arg2: memref<1x32xf32, #tpu.memory_space<vmem>>, %arg3: memref<1x32xf32, #tpu.memory_space<vmem>>, %arg4: memref<32x96xbf16, #tpu.memory_space<vmem>>, %arg5: memref<1x96xf32, #tpu.memory_space<vmem>>, %arg6: memref<32x4xbf16, #tpu.memory_space<vmem>>, %arg7: memref<4x32xbf16, #tpu.memory_space<vmem>>, %arg8: memref<32x32xbf16, #tpu.memory_space<vmem>>, %arg9: memref<1x32xf32, #tpu.memory_space<vmem>>, %arg10: memref<32x64xbf16, #tpu.memory_space<vmem>>, %arg11: memref<1x64xf32, #tpu.memory_space<vmem>>, %arg12: memref<64x32xbf16, #tpu.memory_space<vmem>>, %arg13: memref<1x32xf32, #tpu.memory_space<vmem>>, %arg14: memref<1x8x32xf32, #tpu.memory_space<vmem>>, %arg15: memref<1x8x128xf32, #tpu.memory_space<vmem>>) attributes {dimension_semantics = [#tpu.dimension_semantics<parallel>], iteration_bounds = array<i64: 2>, scalar_prefetch = 0 : i64, scratch_operands = 0 : i64, tpu.core_type = #tpu.core_type<tc>, window_params = [{transform_indices = @transform_0, window_bounds = array<i64: 1, 8, 32>}, {pipeline_mode = #tpu.pipeline_mode<synchronous>, transform_indices = @transform_1, window_bounds = array<i64: 1, 32>}, {pipeline_mode = #tpu.pipeline_mode<synchronous>, transform_indices = @transform_2, window_bounds = array<i64: 1, 32>}, {pipeline_mode = #tpu.pipeline_mode<synchronous>, transform_indices = @transform_3, window_bounds = array<i64: 32, 96>}, {pipeline_mode = #tpu.pipeline_mode<synchronous>, transform_indices = @transform_4, window_bounds = array<i64: 1, 96>}, {pipeline_mode = #tpu.pipeline_mode<synchronous>, transform_indices = @transform_5, window_bounds = array<i64: 32, 4>}, {pipeline_mode = #tpu.pipeline_mode<synchronous>, transform_indices = @transform_6, window_bounds = array<i64: 4, 32>}, {pipeline_mode = #tpu.pipeline_mode<synchronous>, transform_indices = @transform_7, window_bounds = array<i64: 32, 32>}, {pipeline_mode = #tpu.pipeline_mode<synchronous>, transform_indices = @transform_8, window_bounds = array<i64: 1, 32>}, {pipeline_mode = #tpu.pipeline_mode<synchronous>, transform_indices = @transform_9, window_bounds = array<i64: 32, 64>}, {pipeline_mode = #tpu.pipeline_mode<synchronous>, transform_indices = @transform_10, window_bounds = array<i64: 1, 64>}, {pipeline_mode = #tpu.pipeline_mode<synchronous>, transform_indices = @transform_11, window_bounds = array<i64: 64, 32>}, {pipeline_mode = #tpu.pipeline_mode<synchronous>, transform_indices = @transform_12, window_bounds = array<i64: 1, 32>}, {transform_indices = @transform_13, window_bounds = array<i64: 1, 8, 32>}, {transform_indices = @transform_14, window_bounds = array<i64: 1, 8, 128>}]} {
    %c0 = arith.constant 0 : index
    %c0_0 = arith.constant 0 : index
    %c0_1 = arith.constant 0 : index
    %0 = vector.load %arg1[%c0, %c0_0, %c0_1] : memref<1x8x32xf32, #tpu.memory_space<vmem>>, vector<1x8x32xf32>
    %1 = vector.shape_cast %0 : vector<1x8x32xf32> to vector<8x32xf32>
    %cst = arith.constant dense<0.000000e+00> : vector<8xf32>
    %2 = vector.multi_reduction <add>, %1, %cst [1] : vector<8x32xf32> to vector<8xf32>
    %3 = vector.shape_cast %2 : vector<8xf32> to vector<8x1xf32>
    %cst_2 = arith.constant 3.200000e+01 : f32
    %4 = vector.broadcast %cst_2 : f32 to vector<8x1xf32>
    %5 = arith.divf %3, %4 : vector<8x1xf32>
    %6 = vector.broadcast %5 : vector<8x1xf32> to vector<8x32xf32>
    %7 = arith.subf %1, %6 : vector<8x32xf32>
    %8 = arith.mulf %7, %7 : vector<8x32xf32>
    %cst_3 = arith.constant dense<0.000000e+00> : vector<8xf32>
    %9 = vector.multi_reduction <add>, %8, %cst_3 [1] : vector<8x32xf32> to vector<8xf32>
    %10 = vector.shape_cast %9 : vector<8xf32> to vector<8x1xf32>
    %cst_4 = arith.constant 3.200000e+01 : f32
    %11 = vector.broadcast %cst_4 : f32 to vector<8x1xf32>
    %12 = arith.divf %10, %11 : vector<8x1xf32>
    %cst_5 = arith.constant 9.99999974E-6 : f32
    %13 = vector.broadcast %cst_5 : f32 to vector<8x1xf32>
    %14 = arith.addf %12, %13 : vector<8x1xf32>
    %15 = math.rsqrt %14 : vector<8x1xf32>
    %16 = vector.broadcast %15 : vector<8x1xf32> to vector<8x32xf32>
    %17 = arith.mulf %7, %16 : vector<8x32xf32>
    %c0_6 = arith.constant 0 : index
    %c0_7 = arith.constant 0 : index
    %18 = vector.load %arg2[%c0_6, %c0_7] : memref<1x32xf32, #tpu.memory_space<vmem>>, vector<1x32xf32>
    %19 = vector.shape_cast %18 : vector<1x32xf32> to vector<32xf32>
    %20 = vector.shape_cast %19 : vector<32xf32> to vector<1x32xf32>
    %21 = vector.broadcast %20 : vector<1x32xf32> to vector<8x32xf32>
    %22 = arith.mulf %17, %21 : vector<8x32xf32>
    %c0_8 = arith.constant 0 : index
    %c0_9 = arith.constant 0 : index
    %23 = vector.load %arg3[%c0_8, %c0_9] : memref<1x32xf32, #tpu.memory_space<vmem>>, vector<1x32xf32>
    %24 = vector.shape_cast %23 : vector<1x32xf32> to vector<32xf32>
    %25 = vector.shape_cast %24 : vector<32xf32> to vector<1x32xf32>
    %26 = vector.broadcast %25 : vector<1x32xf32> to vector<8x32xf32>
    %27 = arith.addf %22, %26 : vector<8x32xf32>
    %28 = arith.truncf %27 : vector<8x32xf32> to vector<8x32xbf16>
    %c0_10 = arith.constant 0 : index
    %c0_11 = arith.constant 0 : index
    %29 = vector.load %arg4[%c0_10, %c0_11] : memref<32x96xbf16, #tpu.memory_space<vmem>>, vector<32x96xbf16>
    %cst_12 = arith.constant dense<0.000000e+00> : vector<8x96xf32>
    %30 = tpu.matmul %28, %29, %cst_12 {dimension_numbers = #tpu.dot_dimension_numbers<[1], [0], [0], [1], [0, 0, 1, 1], [], []>} : vector<8x32xbf16>, vector<32x96xbf16>, vector<8x96xf32> -> vector<8x96xf32>
    %c0_13 = arith.constant 0 : index
    %c0_14 = arith.constant 0 : index
    %31 = vector.load %arg5[%c0_13, %c0_14] : memref<1x96xf32, #tpu.memory_space<vmem>>, vector<1x96xf32>
    %32 = vector.shape_cast %31 : vector<1x96xf32> to vector<96xf32>
    %33 = vector.shape_cast %32 : vector<96xf32> to vector<1x96xf32>
    %34 = vector.broadcast %33 : vector<1x96xf32> to vector<8x96xf32>
    %35 = arith.addf %30, %34 : vector<8x96xf32>
    %36 = vector.extract_strided_slice %35 {offsets = [0, 0], sizes = [8, 32], strides = [1, 1]} : vector<8x96xf32> to vector<8x32xf32>
    %37 = arith.truncf %36 : vector<8x32xf32> to vector<8x32xbf16>
    %38 = vector.extract_strided_slice %35 {offsets = [0, 32], sizes = [8, 32], strides = [1, 1]} : vector<8x96xf32> to vector<8x32xf32>
    %39 = vector.shape_cast %38 : vector<8x32xf32> to vector<1x8x32xf32>
    %40 = arith.truncf %39 : vector<1x8x32xf32> to vector<1x8x32xbf16>
    %41 = vector.extract_strided_slice %35 {offsets = [0, 64], sizes = [8, 32], strides = [1, 1]} : vector<8x96xf32> to vector<8x32xf32>
    %42 = vector.shape_cast %41 : vector<8x32xf32> to vector<1x8x32xf32>
    %43 = arith.truncf %42 : vector<1x8x32xf32> to vector<1x8x32xbf16>
    %c0_15 = arith.constant 0 : index
    %c0_16 = arith.constant 0 : index
    %44 = vector.load %arg6[%c0_15, %c0_16] : memref<32x4xbf16, #tpu.memory_space<vmem>>, vector<32x4xbf16>
    %cst_17 = arith.constant dense<0.000000e+00> : vector<8x4xf32>
    %45 = tpu.matmul %37, %44, %cst_17 {dimension_numbers = #tpu.dot_dimension_numbers<[1], [0], [0], [1], [0, 0, 1, 1], [], []>} : vector<8x32xbf16>, vector<32x4xbf16>, vector<8x4xf32> -> vector<8x4xf32>
    %46 = vector.shape_cast %45 : vector<8x4xf32> to vector<1x8x4xf32>
    %47 = vector.shape_cast %37 : vector<8x32xbf16> to vector<1x8x32xbf16>
    %cst_18 = arith.constant 0.000000e+00 : f32
    %48 = vector.broadcast %cst_18 : f32 to vector<1x8x8xf32>
    %49 = vector.extract_strided_slice %47 {offsets = [0, 0, 0], sizes = [1, 8, 8], strides = [1, 1, 1]} : vector<1x8x32xbf16> to vector<1x8x8xbf16>
    %50 = vector.extract_strided_slice %40 {offsets = [0, 0, 0], sizes = [1, 8, 8], strides = [1, 1, 1]} : vector<1x8x32xbf16> to vector<1x8x8xbf16>
    "tpu.trace_start"() <{level = 10 : i32, message = "bqd,bkd->bqk"}> : () -> ()
    %cst_19 = arith.constant dense<0.000000e+00> : vector<1x8x8xf32>
    %51 = tpu.matmul %49, %50, %cst_19 {dimension_numbers = #tpu.dot_dimension_numbers<[2], [2], [1], [1], [0, 0, 0, 1, 1, 1], [0], [0]>} : vector<1x8x8xbf16>, vector<1x8x8xbf16>, vector<1x8x8xf32> -> vector<1x8x8xf32>
    "tpu.trace_stop"() : () -> ()
    %52 = vector.extract_strided_slice %46 {offsets = [0, 0, 0], sizes = [1, 8, 1], strides = [1, 1, 1]} : vector<1x8x4xf32> to vector<1x8x1xf32>
    %cst_20 = arith.constant dense<0xFF800000> : vector<1x8xf32>
    %53 = vector.multi_reduction <maximumf>, %51, %cst_20 [2] : vector<1x8x8xf32> to vector<1x8xf32>
    %54 = vector.shape_cast %53 : vector<1x8xf32> to vector<1x8x1xf32>
    %55 = arith.maximumf %54, %52 : vector<1x8x1xf32>
    %56 = vector.broadcast %55 : vector<1x8x1xf32> to vector<1x8x8xf32>
    %57 = arith.subf %51, %56 : vector<1x8x8xf32>
    %58 = math.exp %57 : vector<1x8x8xf32>
    %59 = arith.subf %52, %55 : vector<1x8x1xf32>
    %60 = math.exp %59 : vector<1x8x1xf32>
    %cst_21 = arith.constant dense<0.000000e+00> : vector<1x8xf32>
    %61 = vector.multi_reduction <add>, %58, %cst_21 [2] : vector<1x8x8xf32> to vector<1x8xf32>
    %62 = vector.shape_cast %61 : vector<1x8xf32> to vector<1x8x1xf32>
    %63 = arith.addf %62, %60 : vector<1x8x1xf32>
    %cst_22 = arith.constant 1.000000e+00 : f32
    %64 = vector.broadcast %cst_22 : f32 to vector<1x8x1xf32>
    %65 = arith.divf %64, %63 : vector<1x8x1xf32>
    %66 = vector.broadcast %65 : vector<1x8x1xf32> to vector<1x8x8xf32>
    %67 = arith.mulf %58, %66 : vector<1x8x8xf32>
    %68 = arith.mulf %60, %65 : vector<1x8x1xf32>
    %69 = arith.addf %48, %67 : vector<1x8x8xf32>
    %70 = arith.truncf %67 : vector<1x8x8xf32> to vector<1x8x8xbf16>
    %71 = vector.extract_strided_slice %43 {offsets = [0, 0, 0], sizes = [1, 8, 8], strides = [1, 1, 1]} : vector<1x8x32xbf16> to vector<1x8x8xbf16>
    "tpu.trace_start"() <{level = 10 : i32, message = "bqk,bkd->bqd"}> : () -> ()
    %cst_23 = arith.constant dense<0.000000e+00> : vector<1x8x8xf32>
    %72 = tpu.matmul %70, %71, %cst_23 {dimension_numbers = #tpu.dot_dimension_numbers<[2], [1], [1], [2], [0, 0, 0, 1, 1, 2], [0], [0]>} : vector<1x8x8xbf16>, vector<1x8x8xbf16>, vector<1x8x8xf32> -> vector<1x8x8xf32>
    "tpu.trace_stop"() : () -> ()
    %73 = vector.shape_cast %72 : vector<1x8x8xf32> to vector<8x8xf32>
    %74 = vector.shape_cast %68 : vector<1x8x1xf32> to vector<8x1xf32>
    %75 = vector.extract_strided_slice %47 {offsets = [0, 0, 8], sizes = [1, 8, 8], strides = [1, 1, 1]} : vector<1x8x32xbf16> to vector<1x8x8xbf16>
    %76 = vector.extract_strided_slice %40 {offsets = [0, 0, 8], sizes = [1, 8, 8], strides = [1, 1, 1]} : vector<1x8x32xbf16> to vector<1x8x8xbf16>
    "tpu.trace_start"() <{level = 10 : i32, message = "bqd,bkd->bqk"}> : () -> ()
    %cst_24 = arith.constant dense<0.000000e+00> : vector<1x8x8xf32>
    %77 = tpu.matmul %75, %76, %cst_24 {dimension_numbers = #tpu.dot_dimension_numbers<[2], [2], [1], [1], [0, 0, 0, 1, 1, 1], [0], [0]>} : vector<1x8x8xbf16>, vector<1x8x8xbf16>, vector<1x8x8xf32> -> vector<1x8x8xf32>
    "tpu.trace_stop"() : () -> ()
    %78 = vector.extract_strided_slice %46 {offsets = [0, 0, 1], sizes = [1, 8, 1], strides = [1, 1, 1]} : vector<1x8x4xf32> to vector<1x8x1xf32>
    %cst_25 = arith.constant dense<0xFF800000> : vector<1x8xf32>
    %79 = vector.multi_reduction <maximumf>, %77, %cst_25 [2] : vector<1x8x8xf32> to vector<1x8xf32>
    %80 = vector.shape_cast %79 : vector<1x8xf32> to vector<1x8x1xf32>
    %81 = arith.maximumf %80, %78 : vector<1x8x1xf32>
    %82 = vector.broadcast %81 : vector<1x8x1xf32> to vector<1x8x8xf32>
    %83 = arith.subf %77, %82 : vector<1x8x8xf32>
    %84 = math.exp %83 : vector<1x8x8xf32>
    %85 = arith.subf %78, %81 : vector<1x8x1xf32>
    %86 = math.exp %85 : vector<1x8x1xf32>
    %cst_26 = arith.constant dense<0.000000e+00> : vector<1x8xf32>
    %87 = vector.multi_reduction <add>, %84, %cst_26 [2] : vector<1x8x8xf32> to vector<1x8xf32>
    %88 = vector.shape_cast %87 : vector<1x8xf32> to vector<1x8x1xf32>
    %89 = arith.addf %88, %86 : vector<1x8x1xf32>
    %cst_27 = arith.constant 1.000000e+00 : f32
    %90 = vector.broadcast %cst_27 : f32 to vector<1x8x1xf32>
    %91 = arith.divf %90, %89 : vector<1x8x1xf32>
    %92 = vector.broadcast %91 : vector<1x8x1xf32> to vector<1x8x8xf32>
    %93 = arith.mulf %84, %92 : vector<1x8x8xf32>
    %94 = arith.mulf %86, %91 : vector<1x8x1xf32>
    %95 = arith.addf %69, %93 : vector<1x8x8xf32>
    %96 = arith.truncf %93 : vector<1x8x8xf32> to vector<1x8x8xbf16>
    %97 = vector.extract_strided_slice %43 {offsets = [0, 0, 8], sizes = [1, 8, 8], strides = [1, 1, 1]} : vector<1x8x32xbf16> to vector<1x8x8xbf16>
    "tpu.trace_start"() <{level = 10 : i32, message = "bqk,bkd->bqd"}> : () -> ()
    %cst_28 = arith.constant dense<0.000000e+00> : vector<1x8x8xf32>
    %98 = tpu.matmul %96, %97, %cst_28 {dimension_numbers = #tpu.dot_dimension_numbers<[2], [1], [1], [2], [0, 0, 0, 1, 1, 2], [0], [0]>} : vector<1x8x8xbf16>, vector<1x8x8xbf16>, vector<1x8x8xf32> -> vector<1x8x8xf32>
    "tpu.trace_stop"() : () -> ()
    %99 = vector.shape_cast %98 : vector<1x8x8xf32> to vector<8x8xf32>
    %100 = vector.shape_cast %94 : vector<1x8x1xf32> to vector<8x1xf32>
    %101 = vector.extract_strided_slice %47 {offsets = [0, 0, 16], sizes = [1, 8, 8], strides = [1, 1, 1]} : vector<1x8x32xbf16> to vector<1x8x8xbf16>
    %102 = vector.extract_strided_slice %40 {offsets = [0, 0, 16], sizes = [1, 8, 8], strides = [1, 1, 1]} : vector<1x8x32xbf16> to vector<1x8x8xbf16>
    "tpu.trace_start"() <{level = 10 : i32, message = "bqd,bkd->bqk"}> : () -> ()
    %cst_29 = arith.constant dense<0.000000e+00> : vector<1x8x8xf32>
    %103 = tpu.matmul %101, %102, %cst_29 {dimension_numbers = #tpu.dot_dimension_numbers<[2], [2], [1], [1], [0, 0, 0, 1, 1, 1], [0], [0]>} : vector<1x8x8xbf16>, vector<1x8x8xbf16>, vector<1x8x8xf32> -> vector<1x8x8xf32>
    "tpu.trace_stop"() : () -> ()
    %104 = vector.extract_strided_slice %46 {offsets = [0, 0, 2], sizes = [1, 8, 1], strides = [1, 1, 1]} : vector<1x8x4xf32> to vector<1x8x1xf32>
    %cst_30 = arith.constant dense<0xFF800000> : vector<1x8xf32>
    %105 = vector.multi_reduction <maximumf>, %103, %cst_30 [2] : vector<1x8x8xf32> to vector<1x8xf32>
    %106 = vector.shape_cast %105 : vector<1x8xf32> to vector<1x8x1xf32>
    %107 = arith.maximumf %106, %104 : vector<1x8x1xf32>
    %108 = vector.broadcast %107 : vector<1x8x1xf32> to vector<1x8x8xf32>
    %109 = arith.subf %103, %108 : vector<1x8x8xf32>
    %110 = math.exp %109 : vector<1x8x8xf32>
    %111 = arith.subf %104, %107 : vector<1x8x1xf32>
    %112 = math.exp %111 : vector<1x8x1xf32>
    %cst_31 = arith.constant dense<0.000000e+00> : vector<1x8xf32>
    %113 = vector.multi_reduction <add>, %110, %cst_31 [2] : vector<1x8x8xf32> to vector<1x8xf32>
    %114 = vector.shape_cast %113 : vector<1x8xf32> to vector<1x8x1xf32>
    %115 = arith.addf %114, %112 : vector<1x8x1xf32>
    %cst_32 = arith.constant 1.000000e+00 : f32
    %116 = vector.broadcast %cst_32 : f32 to vector<1x8x1xf32>
    %117 = arith.divf %116, %115 : vector<1x8x1xf32>
    %118 = vector.broadcast %117 : vector<1x8x1xf32> to vector<1x8x8xf32>
    %119 = arith.mulf %110, %118 : vector<1x8x8xf32>
    %120 = arith.mulf %112, %117 : vector<1x8x1xf32>
    %121 = arith.addf %95, %119 : vector<1x8x8xf32>
    %122 = arith.truncf %119 : vector<1x8x8xf32> to vector<1x8x8xbf16>
    %123 = vector.extract_strided_slice %43 {offsets = [0, 0, 16], sizes = [1, 8, 8], strides = [1, 1, 1]} : vector<1x8x32xbf16> to vector<1x8x8xbf16>
    "tpu.trace_start"() <{level = 10 : i32, message = "bqk,bkd->bqd"}> : () -> ()
    %cst_33 = arith.constant dense<0.000000e+00> : vector<1x8x8xf32>
    %124 = tpu.matmul %122, %123, %cst_33 {dimension_numbers = #tpu.dot_dimension_numbers<[2], [1], [1], [2], [0, 0, 0, 1, 1, 2], [0], [0]>} : vector<1x8x8xbf16>, vector<1x8x8xbf16>, vector<1x8x8xf32> -> vector<1x8x8xf32>
    "tpu.trace_stop"() : () -> ()
    %125 = vector.shape_cast %124 : vector<1x8x8xf32> to vector<8x8xf32>
    %126 = vector.shape_cast %120 : vector<1x8x1xf32> to vector<8x1xf32>
    %127 = vector.extract_strided_slice %47 {offsets = [0, 0, 24], sizes = [1, 8, 8], strides = [1, 1, 1]} : vector<1x8x32xbf16> to vector<1x8x8xbf16>
    %128 = vector.extract_strided_slice %40 {offsets = [0, 0, 24], sizes = [1, 8, 8], strides = [1, 1, 1]} : vector<1x8x32xbf16> to vector<1x8x8xbf16>
    "tpu.trace_start"() <{level = 10 : i32, message = "bqd,bkd->bqk"}> : () -> ()
    %cst_34 = arith.constant dense<0.000000e+00> : vector<1x8x8xf32>
    %129 = tpu.matmul %127, %128, %cst_34 {dimension_numbers = #tpu.dot_dimension_numbers<[2], [2], [1], [1], [0, 0, 0, 1, 1, 1], [0], [0]>} : vector<1x8x8xbf16>, vector<1x8x8xbf16>, vector<1x8x8xf32> -> vector<1x8x8xf32>
    "tpu.trace_stop"() : () -> ()
    %130 = vector.extract_strided_slice %46 {offsets = [0, 0, 3], sizes = [1, 8, 1], strides = [1, 1, 1]} : vector<1x8x4xf32> to vector<1x8x1xf32>
    %cst_35 = arith.constant dense<0xFF800000> : vector<1x8xf32>
    %131 = vector.multi_reduction <maximumf>, %129, %cst_35 [2] : vector<1x8x8xf32> to vector<1x8xf32>
    %132 = vector.shape_cast %131 : vector<1x8xf32> to vector<1x8x1xf32>
    %133 = arith.maximumf %132, %130 : vector<1x8x1xf32>
    %134 = vector.broadcast %133 : vector<1x8x1xf32> to vector<1x8x8xf32>
    %135 = arith.subf %129, %134 : vector<1x8x8xf32>
    %136 = math.exp %135 : vector<1x8x8xf32>
    %137 = arith.subf %130, %133 : vector<1x8x1xf32>
    %138 = math.exp %137 : vector<1x8x1xf32>
    %cst_36 = arith.constant dense<0.000000e+00> : vector<1x8xf32>
    %139 = vector.multi_reduction <add>, %136, %cst_36 [2] : vector<1x8x8xf32> to vector<1x8xf32>
    %140 = vector.shape_cast %139 : vector<1x8xf32> to vector<1x8x1xf32>
    %141 = arith.addf %140, %138 : vector<1x8x1xf32>
    %cst_37 = arith.constant 1.000000e+00 : f32
    %142 = vector.broadcast %cst_37 : f32 to vector<1x8x1xf32>
    %143 = arith.divf %142, %141 : vector<1x8x1xf32>
    %144 = vector.broadcast %143 : vector<1x8x1xf32> to vector<1x8x8xf32>
    %145 = arith.mulf %136, %144 : vector<1x8x8xf32>
    %146 = arith.mulf %138, %143 : vector<1x8x1xf32>
    %147 = arith.addf %121, %145 : vector<1x8x8xf32>
    %148 = arith.truncf %145 : vector<1x8x8xf32> to vector<1x8x8xbf16>
    %149 = vector.extract_strided_slice %43 {offsets = [0, 0, 24], sizes = [1, 8, 8], strides = [1, 1, 1]} : vector<1x8x32xbf16> to vector<1x8x8xbf16>
    "tpu.trace_start"() <{level = 10 : i32, message = "bqk,bkd->bqd"}> : () -> ()
    %cst_38 = arith.constant dense<0.000000e+00> : vector<1x8x8xf32>
    %150 = tpu.matmul %148, %149, %cst_38 {dimension_numbers = #tpu.dot_dimension_numbers<[2], [1], [1], [2], [0, 0, 0, 1, 1, 2], [0], [0]>} : vector<1x8x8xbf16>, vector<1x8x8xbf16>, vector<1x8x8xf32> -> vector<1x8x8xf32>
    "tpu.trace_stop"() : () -> ()
    %151 = vector.shape_cast %150 : vector<1x8x8xf32> to vector<8x8xf32>
    %152 = vector.shape_cast %146 : vector<1x8x1xf32> to vector<8x1xf32>
    %153 = tpu.concatenate %73, %99, %125, %151 in 1 : vector<8x8xf32>, vector<8x8xf32>, vector<8x8xf32>, vector<8x8xf32> -> vector<8x32xf32>
    %154 = arith.truncf %153 : vector<8x32xf32> to vector<8x32xbf16>
    %155 = tpu.concatenate %74, %100, %126, %152 in 1 : vector<8x1xf32>, vector<8x1xf32>, vector<8x1xf32>, vector<8x1xf32> -> vector<8x4xf32>
    %c0_39 = arith.constant 0 : index
    %c0_40 = arith.constant 0 : index
    %156 = vector.load %arg8[%c0_39, %c0_40] : memref<32x32xbf16, #tpu.memory_space<vmem>>, vector<32x32xbf16>
    %cst_41 = arith.constant dense<0.000000e+00> : vector<8x32xf32>
    %157 = tpu.matmul %154, %156, %cst_41 {dimension_numbers = #tpu.dot_dimension_numbers<[1], [0], [0], [1], [0, 0, 1, 1], [], []>} : vector<8x32xbf16>, vector<32x32xbf16>, vector<8x32xf32> -> vector<8x32xf32>
    %158 = arith.truncf %155 : vector<8x4xf32> to vector<8x4xbf16>
    %c0_42 = arith.constant 0 : index
    %c0_43 = arith.constant 0 : index
    %159 = vector.load %arg7[%c0_42, %c0_43] : memref<4x32xbf16, #tpu.memory_space<vmem>>, vector<4x32xbf16>
    %cst_44 = arith.constant dense<0.000000e+00> : vector<8x32xf32>
    %160 = tpu.matmul %158, %159, %cst_44 {dimension_numbers = #tpu.dot_dimension_numbers<[1], [0], [0], [1], [0, 0, 1, 1], [], []>} : vector<8x4xbf16>, vector<4x32xbf16>, vector<8x32xf32> -> vector<8x32xf32>
    %161 = arith.addf %157, %160 : vector<8x32xf32>
    %c0_45 = arith.constant 0 : index
    %c0_46 = arith.constant 0 : index
    %162 = vector.load %arg9[%c0_45, %c0_46] : memref<1x32xf32, #tpu.memory_space<vmem>>, vector<1x32xf32>
    %163 = vector.shape_cast %162 : vector<1x32xf32> to vector<32xf32>
    %164 = vector.shape_cast %163 : vector<32xf32> to vector<1x32xf32>
    %165 = vector.broadcast %164 : vector<1x32xf32> to vector<8x32xf32>
    %166 = arith.addf %161, %165 : vector<8x32xf32>
    %167 = arith.addf %1, %166 : vector<8x32xf32>
    %168 = arith.truncf %167 : vector<8x32xf32> to vector<8x32xbf16>
    %c0_47 = arith.constant 0 : index
    %c0_48 = arith.constant 0 : index
    %169 = vector.load %arg10[%c0_47, %c0_48] : memref<32x64xbf16, #tpu.memory_space<vmem>>, vector<32x64xbf16>
    %cst_49 = arith.constant dense<0.000000e+00> : vector<8x64xf32>
    %170 = tpu.matmul %168, %169, %cst_49 {dimension_numbers = #tpu.dot_dimension_numbers<[1], [0], [0], [1], [0, 0, 1, 1], [], []>} : vector<8x32xbf16>, vector<32x64xbf16>, vector<8x64xf32> -> vector<8x64xf32>
    %c0_50 = arith.constant 0 : index
    %c0_51 = arith.constant 0 : index
    %171 = vector.load %arg11[%c0_50, %c0_51] : memref<1x64xf32, #tpu.memory_space<vmem>>, vector<1x64xf32>
    %172 = vector.shape_cast %171 : vector<1x64xf32> to vector<64xf32>
    %173 = vector.shape_cast %172 : vector<64xf32> to vector<1x64xf32>
    %174 = vector.broadcast %173 : vector<1x64xf32> to vector<8x64xf32>
    %175 = arith.addf %170, %174 : vector<8x64xf32>
    %cst_52 = arith.constant 0.000000e+00 : f32
    %176 = vector.broadcast %cst_52 : f32 to vector<8x64xf32>
    %177 = arith.maximumf %175, %176 : vector<8x64xf32>
    %178 = arith.truncf %177 : vector<8x64xf32> to vector<8x64xbf16>
    %c0_53 = arith.constant 0 : index
    %c0_54 = arith.constant 0 : index
    %179 = vector.load %arg12[%c0_53, %c0_54] : memref<64x32xbf16, #tpu.memory_space<vmem>>, vector<64x32xbf16>
    %cst_55 = arith.constant dense<0.000000e+00> : vector<8x32xf32>
    %180 = tpu.matmul %178, %179, %cst_55 {dimension_numbers = #tpu.dot_dimension_numbers<[1], [0], [0], [1], [0, 0, 1, 1], [], []>} : vector<8x64xbf16>, vector<64x32xbf16>, vector<8x32xf32> -> vector<8x32xf32>
    %181 = arith.addf %167, %180 : vector<8x32xf32>
    %c0_56 = arith.constant 0 : index
    %c0_57 = arith.constant 0 : index
    %182 = vector.load %arg13[%c0_56, %c0_57] : memref<1x32xf32, #tpu.memory_space<vmem>>, vector<1x32xf32>
    %183 = vector.shape_cast %182 : vector<1x32xf32> to vector<32xf32>
    %184 = vector.shape_cast %183 : vector<32xf32> to vector<1x32xf32>
    %185 = vector.broadcast %184 : vector<1x32xf32> to vector<8x32xf32>
    %186 = arith.addf %181, %185 : vector<8x32xf32>
    %187 = vector.shape_cast %186 : vector<8x32xf32> to vector<1x8x32xf32>
    %c0_58 = arith.constant 0 : index
    %c0_59 = arith.constant 0 : index
    %c0_60 = arith.constant 0 : index
    %188 = vector.load %arg14[%c0_58, %c0_59, %c0_60] : memref<1x8x32xf32, #tpu.memory_space<vmem>>, vector<1x8x32xf32>
    tpu.vector_store %arg14[%c0_58, %c0_59, %c0_60], %187 {strides = array<i32>} : memref<1x8x32xf32, #tpu.memory_space<vmem>>, vector<1x8x32xf32>,
    %cst_61 = arith.constant dense<0.000000e+00> : vector<8xf32>
    %189 = vector.multi_reduction <add>, %155, %cst_61 [1] : vector<8x4xf32> to vector<8xf32>
    %190 = vector.shape_cast %189 : vector<8xf32> to vector<8x1xf32>
    %191 = vector.shape_cast %190 : vector<8x1xf32> to vector<1x8x1xf32>
    %cst_62 = arith.constant 2.500000e-01 : f32
    %192 = vector.broadcast %cst_62 : f32 to vector<1x8x8xf32>
    %193 = arith.mulf %147, %192 : vector<1x8x8xf32>
    %cst_63 = arith.constant 2.500000e-01 : f32
    %194 = vector.broadcast %cst_63 : f32 to vector<1x8x1xf32>
    %195 = arith.mulf %191, %194 : vector<1x8x1xf32>
    %cst_64 = arith.constant 0.000000e+00 : f32
    %196 = vector.broadcast %cst_64 : f32 to vector<1x8x119xf32>
    %197 = tpu.concatenate %193, %195, %196 in 2 : vector<1x8x8xf32>, vector<1x8x1xf32>, vector<1x8x119xf32> -> vector<1x8x128xf32>
    %c0_65 = arith.constant 0 : index
    %c0_66 = arith.constant 0 : index
    %c0_67 = arith.constant 0 : index
    %198 = vector.load %arg15[%c0_65, %c0_66, %c0_67] : memref<1x8x128xf32, #tpu.memory_space<vmem>>, vector<1x8x128xf32>
    tpu.vector_store %arg15[%c0_65, %c0_66, %c0_67], %197 {strides = array<i32>} : memref<1x8x128xf32, #tpu.memory_space<vmem>>, vector<1x8x128xf32>,
    return
  }
  func.func @transform_0(%arg0: i32) -> (i32, i32, i32) {
    %c0_i32 = arith.constant 0 : i32
    %c0_i32_0 = arith.constant 0 : i32
    %c0_i32_1 = arith.constant 0 : i32
    return %arg0, %c0_i32, %c0_i32_0 : i32, i32, i32
  }
  func.func @transform_1(%arg0: i32) -> (i32, i32) {
    %c0_i32 = arith.constant 0 : i32
    %c0_i32_0 = arith.constant 0 : i32
    %c0_i32_1 = arith.constant 0 : i32
    return %c0_i32, %c0_i32_0 : i32, i32
  }
  func.func @transform_2(%arg0: i32) -> (i32, i32) {
    %c0_i32 = arith.constant 0 : i32
    %c0_i32_0 = arith.constant 0 : i32
    %c0_i32_1 = arith.constant 0 : i32
    return %c0_i32, %c0_i32_0 : i32, i32
  }
  func.func @transform_3(%arg0: i32) -> (i32, i32) {
    %c0_i32 = arith.constant 0 : i32
    %c0_i32_0 = arith.constant 0 : i32
    %c0_i32_1 = arith.constant 0 : i32
    return %c0_i32, %c0_i32_0 : i32, i32
  }
  func.func @transform_4(%arg0: i32) -> (i32, i32) {
    %c0_i32 = arith.constant 0 : i32
    %c0_i32_0 = arith.constant 0 : i32
    %c0_i32_1 = arith.constant 0 : i32
    return %c0_i32, %c0_i32_0 : i32, i32
  }
  func.func @transform_5(%arg0: i32) -> (i32, i32) {
    %c0_i32 = arith.constant 0 : i32
    %c0_i32_0 = arith.constant 0 : i32
    %c0_i32_1 = arith.constant 0 : i32
    return %c0_i32, %c0_i32_0 : i32, i32
  }
  func.func @transform_6(%arg0: i32) -> (i32, i32) {
    %c0_i32 = arith.constant 0 : i32
    %c0_i32_0 = arith.constant 0 : i32
    %c0_i32_1 = arith.constant 0 : i32
    return %c0_i32, %c0_i32_0 : i32, i32
  }
  func.func @transform_7(%arg0: i32) -> (i32, i32) {
    %c0_i32 = arith.constant 0 : i32
    %c0_i32_0 = arith.constant 0 : i32
    %c0_i32_1 = arith.constant 0 : i32
    return %c0_i32, %c0_i32_0 : i32, i32
  }
  func.func @transform_8(%arg0: i32) -> (i32, i32) {
    %c0_i32 = arith.constant 0 : i32
    %c0_i32_0 = arith.constant 0 : i32
    %c0_i32_1 = arith.constant 0 : i32
    return %c0_i32, %c0_i32_0 : i32, i32
  }
  func.func @transform_9(%arg0: i32) -> (i32, i32) {
    %c0_i32 = arith.constant 0 : i32
    %c0_i32_0 = arith.constant 0 : i32
    %c0_i32_1 = arith.constant 0 : i32
    return %c0_i32, %c0_i32_0 : i32, i32
  }
  func.func @transform_10(%arg0: i32) -> (i32, i32) {
    %c0_i32 = arith.constant 0 : i32
    %c0_i32_0 = arith.constant 0 : i32
    %c0_i32_1 = arith.constant 0 : i32
    return %c0_i32, %c0_i32_0 : i32, i32
  }
  func.func @transform_11(%arg0: i32) -> (i32, i32) {
    %c0_i32 = arith.constant 0 : i32
    %c0_i32_0 = arith.constant 0 : i32
    %c0_i32_1 = arith.constant 0 : i32
    return %c0_i32, %c0_i32_0 : i32, i32
  }
  func.func @transform_12(%arg0: i32) -> (i32, i32) {
    %c0_i32 = arith.constant 0 : i32
    %c0_i32_0 = arith.constant 0 : i32
    %c0_i32_1 = arith.constant 0 : i32
    return %c0_i32, %c0_i32_0 : i32, i32
  }
  func.func @transform_13(%arg0: i32) -> (i32, i32, i32) {
    %c0_i32 = arith.constant 0 : i32
    %c0_i32_0 = arith.constant 0 : i32
    %c0_i32_1 = arith.constant 0 : i32
    return %arg0, %c0_i32, %c0_i32_0 : i32, i32, i32
  }
  func.func @transform_14(%arg0: i32) -> (i32, i32, i32) {
    %c0_i32 = arith.constant 0 : i32
    %c0_i32_0 = arith.constant 0 : i32
    %c0_i32_1 = arith.constant 0 : i32
    return %arg0, %c0_i32, %c0_i32_0 : i32, i32, i32
  }
}

module attributes {stable_mosaic.version = 11 : i64} {
  func.func @_encoder_layer_kernel(%arg0: i32, %arg1: memref<1x8x32xf32, #tpu.memory_space<vmem>>, %arg2: memref<1x32xf32, #tpu.memory_space<vmem>>, %arg3: memref<1x32xf32, #tpu.memory_space<vmem>>, %arg4: memref<32x96xbf16, #tpu.memory_space<vmem>>, %arg5: memref<1x96xf32, #tpu.memory_space<vmem>>, %arg6: memref<32x4xbf16, #tpu.memory_space<vmem>>, %arg7: memref<4x32xbf16, #tpu.memory_space<vmem>>, %arg8: memref<32x32xbf16, #tpu.memory_space<vmem>>, %arg9: memref<1x32xf32, #tpu.memory_space<vmem>>, %arg10: memref<32x64xbf16, #tpu.memory_space<vmem>>, %arg11: memref<1x64xf32, #tpu.memory_space<vmem>>, %arg12: memref<64x32xbf16, #tpu.memory_space<vmem>>, %arg13: memref<1x32xf32, #tpu.memory_space<vmem>>, %arg14: memref<1x8x32xf32, #tpu.memory_space<vmem>>, %arg15: memref<1x8x128xf32, #tpu.memory_space<vmem>>) attributes {dimension_semantics = [#tpu.dimension_semantics<parallel>], iteration_bounds = array<i64: 2>, scalar_prefetch = 0 : i64, scratch_operands = 0 : i64, tpu.core_type = #tpu.core_type<tc>, window_params = [{transform_indices = @transform_0, window_bounds = array<i64: 1, 8, 32>}, {pipeline_mode = #tpu.pipeline_mode<synchronous>, transform_indices = @transform_1, window_bounds = array<i64: 1, 32>}, {pipeline_mode = #tpu.pipeline_mode<synchronous>, transform_indices = @transform_2, window_bounds = array<i64: 1, 32>}, {pipeline_mode = #tpu.pipeline_mode<synchronous>, transform_indices = @transform_3, window_bounds = array<i64: 32, 96>}, {pipeline_mode = #tpu.pipeline_mode<synchronous>, transform_indices = @transform_4, window_bounds = array<i64: 1, 96>}, {pipeline_mode = #tpu.pipeline_mode<synchronous>, transform_indices = @transform_5, window_bounds = array<i64: 32, 4>}, {pipeline_mode = #tpu.pipeline_mode<synchronous>, transform_indices = @transform_6, window_bounds = array<i64: 4, 32>}, {pipeline_mode = #tpu.pipeline_mode<synchronous>, transform_indices = @transform_7, window_bounds = array<i64: 32, 32>}, {pipeline_mode = #tpu.pipeline_mode<synchronous>, transform_indices = @transform_8, window_bounds = array<i64: 1, 32>}, {pipeline_mode = #tpu.pipeline_mode<synchronous>, transform_indices = @transform_9, window_bounds = array<i64: 32, 64>}, {pipeline_mode = #tpu.pipeline_mode<synchronous>, transform_indices = @transform_10, window_bounds = array<i64: 1, 64>}, {pipeline_mode = #tpu.pipeline_mode<synchronous>, transform_indices = @transform_11, window_bounds = array<i64: 64, 32>}, {pipeline_mode = #tpu.pipeline_mode<synchronous>, transform_indices = @transform_12, window_bounds = array<i64: 1, 32>}, {transform_indices = @transform_13, window_bounds = array<i64: 1, 8, 32>}, {transform_indices = @transform_14, window_bounds = array<i64: 1, 8, 128>}]} {
    %c0 = arith.constant 0 : index
    %c0_0 = arith.constant 0 : index
    %c0_1 = arith.constant 0 : index
    %0 = vector.load %arg1[%c0, %c0_0, %c0_1] : memref<1x8x32xf32, #tpu.memory_space<vmem>>, vector<1x8x32xf32>
    %1 = vector.shape_cast %0 : vector<1x8x32xf32> to vector<8x32xf32>
    %cst = arith.constant dense<0.000000e+00> : vector<8xf32>
    %2 = vector.multi_reduction <add>, %1, %cst [1] : vector<8x32xf32> to vector<8xf32>
    %3 = vector.shape_cast %2 : vector<8xf32> to vector<8x1xf32>
    %cst_2 = arith.constant 3.200000e+01 : f32
    %4 = vector.broadcast %cst_2 : f32 to vector<8x1xf32>
    %5 = arith.divf %3, %4 : vector<8x1xf32>
    %6 = vector.broadcast %5 : vector<8x1xf32> to vector<8x32xf32>
    %7 = arith.subf %1, %6 : vector<8x32xf32>
    %8 = arith.mulf %7, %7 : vector<8x32xf32>
    %cst_3 = arith.constant dense<0.000000e+00> : vector<8xf32>
    %9 = vector.multi_reduction <add>, %8, %cst_3 [1] : vector<8x32xf32> to vector<8xf32>
    %10 = vector.shape_cast %9 : vector<8xf32> to vector<8x1xf32>
    %cst_4 = arith.constant 3.200000e+01 : f32
    %11 = vector.broadcast %cst_4 : f32 to vector<8x1xf32>
    %12 = arith.divf %10, %11 : vector<8x1xf32>
    %cst_5 = arith.constant 9.99999974E-6 : f32
    %13 = vector.broadcast %cst_5 : f32 to vector<8x1xf32>
    %14 = arith.addf %12, %13 : vector<8x1xf32>
    %15 = math.rsqrt %14 : vector<8x1xf32>
    %16 = vector.broadcast %15 : vector<8x1xf32> to vector<8x32xf32>
    %17 = arith.mulf %7, %16 : vector<8x32xf32>
    %c0_6 = arith.constant 0 : index
    %c0_7 = arith.constant 0 : index
    %18 = vector.load %arg2[%c0_6, %c0_7] : memref<1x32xf32, #tpu.memory_space<vmem>>, vector<1x32xf32>
    %19 = vector.shape_cast %18 : vector<1x32xf32> to vector<32xf32>
    %20 = vector.shape_cast %19 : vector<32xf32> to vector<1x32xf32>
    %21 = vector.broadcast %20 : vector<1x32xf32> to vector<8x32xf32>
    %22 = arith.mulf %17, %21 : vector<8x32xf32>
    %c0_8 = arith.constant 0 : index
    %c0_9 = arith.constant 0 : index
    %23 = vector.load %arg3[%c0_8, %c0_9] : memref<1x32xf32, #tpu.memory_space<vmem>>, vector<1x32xf32>
    %24 = vector.shape_cast %23 : vector<1x32xf32> to vector<32xf32>
    %25 = vector.shape_cast %24 : vector<32xf32> to vector<1x32xf32>
    %26 = vector.broadcast %25 : vector<1x32xf32> to vector<8x32xf32>
    %27 = arith.addf %22, %26 : vector<8x32xf32>
    %28 = arith.truncf %27 : vector<8x32xf32> to vector<8x32xbf16>
    %c0_10 = arith.constant 0 : index
    %c0_11 = arith.constant 0 : index
    %29 = vector.load %arg4[%c0_10, %c0_11] : memref<32x96xbf16, #tpu.memory_space<vmem>>, vector<32x96xbf16>
    %cst_12 = arith.constant dense<0.000000e+00> : vector<8x96xf32>
    %30 = tpu.matmul %28, %29, %cst_12 {dimension_numbers = #tpu.dot_dimension_numbers<[1], [0], [0], [1], [0, 0, 1, 1], [], []>} : vector<8x32xbf16>, vector<32x96xbf16>, vector<8x96xf32> -> vector<8x96xf32>
    %c0_13 = arith.constant 0 : index
    %c0_14 = arith.constant 0 : index
    %31 = vector.load %arg5[%c0_13, %c0_14] : memref<1x96xf32, #tpu.memory_space<vmem>>, vector<1x96xf32>
    %32 = vector.shape_cast %31 : vector<1x96xf32> to vector<96xf32>
    %33 = vector.shape_cast %32 : vector<96xf32> to vector<1x96xf32>
    %34 = vector.broadcast %33 : vector<1x96xf32> to vector<8x96xf32>
    %35 = arith.addf %30, %34 : vector<8x96xf32>
    %36 = vector.extract_strided_slice %35 {offsets = [0, 0], sizes = [8, 32], strides = [1, 1]} : vector<8x96xf32> to vector<8x32xf32>
    %37 = arith.truncf %36 : vector<8x32xf32> to vector<8x32xbf16>
    %38 = vector.extract_strided_slice %35 {offsets = [0, 32], sizes = [8, 32], strides = [1, 1]} : vector<8x96xf32> to vector<8x32xf32>
    %39 = vector.shape_cast %38 : vector<8x32xf32> to vector<1x8x32xf32>
    %40 = arith.truncf %39 : vector<1x8x32xf32> to vector<1x8x32xbf16>
    %41 = vector.extract_strided_slice %35 {offsets = [0, 64], sizes = [8, 32], strides = [1, 1]} : vector<8x96xf32> to vector<8x32xf32>
    %42 = vector.shape_cast %41 : vector<8x32xf32> to vector<1x8x32xf32>
    %43 = arith.truncf %42 : vector<1x8x32xf32> to vector<1x8x32xbf16>
    %c0_15 = arith.constant 0 : index
    %c0_16 = arith.constant 0 : index
    %44 = vector.load %arg6[%c0_15, %c0_16] : memref<32x4xbf16, #tpu.memory_space<vmem>>, vector<32x4xbf16>
    %cst_17 = arith.constant dense<0.000000e+00> : vector<8x4xf32>
    %45 = tpu.matmul %37, %44, %cst_17 {dimension_numbers = #tpu.dot_dimension_numbers<[1], [0], [0], [1], [0, 0, 1, 1], [], []>} : vector<8x32xbf16>, vector<32x4xbf16>, vector<8x4xf32> -> vector<8x4xf32>
    %46 = vector.shape_cast %45 : vector<8x4xf32> to vector<1x8x4xf32>
    %47 = vector.shape_cast %37 : vector<8x32xbf16> to vector<1x8x32xbf16>
    %cst_18 = arith.constant 0.000000e+00 : f32
    %48 = vector.broadcast %cst_18 : f32 to vector<1x8x8xf32>
    %49 = vector.extract_strided_slice %47 {offsets = [0, 0, 0], sizes = [1, 8, 8], strides = [1, 1, 1]} : vector<1x8x32xbf16> to vector<1x8x8xbf16>
    %50 = vector.extract_strided_slice %40 {offsets = [0, 0, 0], sizes = [1, 8, 8], strides = [1, 1, 1]} : vector<1x8x32xbf16> to vector<1x8x8xbf16>
    "tpu.trace_start"() <{level = 10 : i32, message = "bqd,bkd->bqk"}> : () -> ()
    %cst_19 = arith.constant dense<0.000000e+00> : vector<1x8x8xf32>
    %51 = tpu.matmul %49, %50, %cst_19 {dimension_numbers = #tpu.dot_dimension_numbers<[2], [2], [1], [1], [0, 0, 0, 1, 1, 1], [0], [0]>} : vector<1x8x8xbf16>, vector<1x8x8xbf16>, vector<1x8x8xf32> -> vector<1x8x8xf32>
    "tpu.trace_stop"() : () -> ()
    %52 = vector.extract_strided_slice %46 {offsets = [0, 0, 0], sizes = [1, 8, 1], strides = [1, 1, 1]} : vector<1x8x4xf32> to vector<1x8x1xf32>
    %cst_20 = arith.constant dense<0xFF800000> : vector<1x8xf32>
    %53 = vector.multi_reduction <maximumf>, %51, %cst_20 [2] : vector<1x8x8xf32> to vector<1x8xf32>
    %54 = vector.shape_cast %53 : vector<1x8xf32> to vector<1x8x1xf32>
    %55 = arith.maximumf %54, %52 : vector<1x8x1xf32>
    %56 = vector.broadcast %55 : vector<1x8x1xf32> to vector<1x8x8xf32>
    %57 = arith.subf %51, %56 : vector<1x8x8xf32>
    %58 = math.exp %57 : vector<1x8x8xf32>
    %59 = arith.subf %52, %55 : vector<1x8x1xf32>
    %60 = math.exp %59 : vector<1x8x1xf32>
    %cst_21 = arith.constant dense<0.000000e+00> : vector<1x8xf32>
    %61 = vector.multi_reduction <add>, %58, %cst_21 [2] : vector<1x8x8xf32> to vector<1x8xf32>
    %62 = vector.shape_cast %61 : vector<1x8xf32> to vector<1x8x1xf32>
    %63 = arith.addf %62, %60 : vector<1x8x1xf32>
    %cst_22 = arith.constant 1.000000e+00 : f32
    %64 = vector.broadcast %cst_22 : f32 to vector<1x8x1xf32>
    %65 = arith.divf %64, %63 : vector<1x8x1xf32>
    %66 = vector.broadcast %65 : vector<1x8x1xf32> to vector<1x8x8xf32>
    %67 = arith.mulf %58, %66 : vector<1x8x8xf32>
    %68 = arith.mulf %60, %65 : vector<1x8x1xf32>
    %69 = arith.addf %48, %67 : vector<1x8x8xf32>
    %70 = arith.truncf %67 : vector<1x8x8xf32> to vector<1x8x8xbf16>
    %71 = vector.extract_strided_slice %43 {offsets = [0, 0, 0], sizes = [1, 8, 8], strides = [1, 1, 1]} : vector<1x8x32xbf16> to vector<1x8x8xbf16>
    "tpu.trace_start"() <{level = 10 : i32, message = "bqk,bkd->bqd"}> : () -> ()
    %cst_23 = arith.constant dense<0.000000e+00> : vector<1x8x8xf32>
    %72 = tpu.matmul %70, %71, %cst_23 {dimension_numbers = #tpu.dot_dimension_numbers<[2], [1], [1], [2], [0, 0, 0, 1, 1, 2], [0], [0]>} : vector<1x8x8xbf16>, vector<1x8x8xbf16>, vector<1x8x8xf32> -> vector<1x8x8xf32>
    "tpu.trace_stop"() : () -> ()
    %73 = vector.shape_cast %72 : vector<1x8x8xf32> to vector<8x8xf32>
    %74 = vector.shape_cast %68 : vector<1x8x1xf32> to vector<8x1xf32>
    %75 = vector.extract_strided_slice %47 {offsets = [0, 0, 8], sizes = [1, 8, 8], strides = [1, 1, 1]} : vector<1x8x32xbf16> to vector<1x8x8xbf16>
    %76 = vector.extract_strided_slice %40 {offsets = [0, 0, 8], sizes = [1, 8, 8], strides = [1, 1, 1]} : vector<1x8x32xbf16> to vector<1x8x8xbf16>
    "tpu.trace_start"() <{level = 10 : i32, message = "bqd,bkd->bqk"}> : () -> ()
    %cst_24 = arith.constant dense<0.000000e+00> : vector<1x8x8xf32>
    %77 = tpu.matmul %75, %76, %cst_24 {dimension_numbers = #tpu.dot_dimension_numbers<[2], [2], [1], [1], [0, 0, 0, 1, 1, 1], [0], [0]>} : vector<1x8x8xbf16>, vector<1x8x8xbf16>, vector<1x8x8xf32> -> vector<1x8x8xf32>
    "tpu.trace_stop"() : () -> ()
    %78 = vector.extract_strided_slice %46 {offsets = [0, 0, 1], sizes = [1, 8, 1], strides = [1, 1, 1]} : vector<1x8x4xf32> to vector<1x8x1xf32>
    %cst_25 = arith.constant dense<0xFF800000> : vector<1x8xf32>
    %79 = vector.multi_reduction <maximumf>, %77, %cst_25 [2] : vector<1x8x8xf32> to vector<1x8xf32>
    %80 = vector.shape_cast %79 : vector<1x8xf32> to vector<1x8x1xf32>
    %81 = arith.maximumf %80, %78 : vector<1x8x1xf32>
    %82 = vector.broadcast %81 : vector<1x8x1xf32> to vector<1x8x8xf32>
    %83 = arith.subf %77, %82 : vector<1x8x8xf32>
    %84 = math.exp %83 : vector<1x8x8xf32>
    %85 = arith.subf %78, %81 : vector<1x8x1xf32>
    %86 = math.exp %85 : vector<1x8x1xf32>
    %cst_26 = arith.constant dense<0.000000e+00> : vector<1x8xf32>
    %87 = vector.multi_reduction <add>, %84, %cst_26 [2] : vector<1x8x8xf32> to vector<1x8xf32>
    %88 = vector.shape_cast %87 : vector<1x8xf32> to vector<1x8x1xf32>
    %89 = arith.addf %88, %86 : vector<1x8x1xf32>
    %cst_27 = arith.constant 1.000000e+00 : f32
    %90 = vector.broadcast %cst_27 : f32 to vector<1x8x1xf32>
    %91 = arith.divf %90, %89 : vector<1x8x1xf32>
    %92 = vector.broadcast %91 : vector<1x8x1xf32> to vector<1x8x8xf32>
    %93 = arith.mulf %84, %92 : vector<1x8x8xf32>
    %94 = arith.mulf %86, %91 : vector<1x8x1xf32>
    %95 = arith.addf %69, %93 : vector<1x8x8xf32>
    %96 = arith.truncf %93 : vector<1x8x8xf32> to vector<1x8x8xbf16>
    %97 = vector.extract_strided_slice %43 {offsets = [0, 0, 8], sizes = [1, 8, 8], strides = [1, 1, 1]} : vector<1x8x32xbf16> to vector<1x8x8xbf16>
    "tpu.trace_start"() <{level = 10 : i32, message = "bqk,bkd->bqd"}> : () -> ()
    %cst_28 = arith.constant dense<0.000000e+00> : vector<1x8x8xf32>
    %98 = tpu.matmul %96, %97, %cst_28 {dimension_numbers = #tpu.dot_dimension_numbers<[2], [1], [1], [2], [0, 0, 0, 1, 1, 2], [0], [0]>} : vector<1x8x8xbf16>, vector<1x8x8xbf16>, vector<1x8x8xf32> -> vector<1x8x8xf32>
    "tpu.trace_stop"() : () -> ()
    %99 = vector.shape_cast %98 : vector<1x8x8xf32> to vector<8x8xf32>
    %100 = vector.shape_cast %94 : vector<1x8x1xf32> to vector<8x1xf32>
    %101 = vector.extract_strided_slice %47 {offsets = [0, 0, 16], sizes = [1, 8, 8], strides = [1, 1, 1]} : vector<1x8x32xbf16> to vector<1x8x8xbf16>
    %102 = vector.extract_strided_slice %40 {offsets = [0, 0, 16], sizes = [1, 8, 8], strides = [1, 1, 1]} : vector<1x8x32xbf16> to vector<1x8x8xbf16>
    "tpu.trace_start"() <{level = 10 : i32, message = "bqd,bkd->bqk"}> : () -> ()
    %cst_29 = arith.constant dense<0.000000e+00> : vector<1x8x8xf32>
    %103 = tpu.matmul %101, %102, %cst_29 {dimension_numbers = #tpu.dot_dimension_numbers<[2], [2], [1], [1], [0, 0, 0, 1, 1, 1], [0], [0]>} : vector<1x8x8xbf16>, vector<1x8x8xbf16>, vector<1x8x8xf32> -> vector<1x8x8xf32>
    "tpu.trace_stop"() : () -> ()
    %104 = vector.extract_strided_slice %46 {offsets = [0, 0, 2], sizes = [1, 8, 1], strides = [1, 1, 1]} : vector<1x8x4xf32> to vector<1x8x1xf32>
    %cst_30 = arith.constant dense<0xFF800000> : vector<1x8xf32>
    %105 = vector.multi_reduction <maximumf>, %103, %cst_30 [2] : vector<1x8x8xf32> to vector<1x8xf32>
    %106 = vector.shape_cast %105 : vector<1x8xf32> to vector<1x8x1xf32>
    %107 = arith.maximumf %106, %104 : vector<1x8x1xf32>
    %108 = vector.broadcast %107 : vector<1x8x1xf32> to vector<1x8x8xf32>
    %109 = arith.subf %103, %108 : vector<1x8x8xf32>
    %110 = math.exp %109 : vector<1x8x8xf32>
    %111 = arith.subf %104, %107 : vector<1x8x1xf32>
    %112 = math.exp %111 : vector<1x8x1xf32>
    %cst_31 = arith.constant dense<0.000000e+00> : vector<1x8xf32>
    %113 = vector.multi_reduction <add>, %110, %cst_31 [2] : vector<1x8x8xf32> to vector<1x8xf32>
    %114 = vector.shape_cast %113 : vector<1x8xf32> to vector<1x8x1xf32>
    %115 = arith.addf %114, %112 : vector<1x8x1xf32>
    %cst_32 = arith.constant 1.000000e+00 : f32
    %116 = vector.broadcast %cst_32 : f32 to vector<1x8x1xf32>
    %117 = arith.divf %116, %115 : vector<1x8x1xf32>
    %118 = vector.broadcast %117 : vector<1x8x1xf32> to vector<1x8x8xf32>
    %119 = arith.mulf %110, %118 : vector<1x8x8xf32>
    %120 = arith.mulf %112, %117 : vector<1x8x1xf32>
    %121 = arith.addf %95, %119 : vector<1x8x8xf32>
    %122 = arith.truncf %119 : vector<1x8x8xf32> to vector<1x8x8xbf16>
    %123 = vector.extract_strided_slice %43 {offsets = [0, 0, 16], sizes = [1, 8, 8], strides = [1, 1, 1]} : vector<1x8x32xbf16> to vector<1x8x8xbf16>
    "tpu.trace_start"() <{level = 10 : i32, message = "bqk,bkd->bqd"}> : () -> ()
    %cst_33 = arith.constant dense<0.000000e+00> : vector<1x8x8xf32>
    %124 = tpu.matmul %122, %123, %cst_33 {dimension_numbers = #tpu.dot_dimension_numbers<[2], [1], [1], [2], [0, 0, 0, 1, 1, 2], [0], [0]>} : vector<1x8x8xbf16>, vector<1x8x8xbf16>, vector<1x8x8xf32> -> vector<1x8x8xf32>
    "tpu.trace_stop"() : () -> ()
    %125 = vector.shape_cast %124 : vector<1x8x8xf32> to vector<8x8xf32>
    %126 = vector.shape_cast %120 : vector<1x8x1xf32> to vector<8x1xf32>
    %127 = vector.extract_strided_slice %47 {offsets = [0, 0, 24], sizes = [1, 8, 8], strides = [1, 1, 1]} : vector<1x8x32xbf16> to vector<1x8x8xbf16>
    %128 = vector.extract_strided_slice %40 {offsets = [0, 0, 24], sizes = [1, 8, 8], strides = [1, 1, 1]} : vector<1x8x32xbf16> to vector<1x8x8xbf16>
    "tpu.trace_start"() <{level = 10 : i32, message = "bqd,bkd->bqk"}> : () -> ()
    %cst_34 = arith.constant dense<0.000000e+00> : vector<1x8x8xf32>
    %129 = tpu.matmul %127, %128, %cst_34 {dimension_numbers = #tpu.dot_dimension_numbers<[2], [2], [1], [1], [0, 0, 0, 1, 1, 1], [0], [0]>} : vector<1x8x8xbf16>, vector<1x8x8xbf16>, vector<1x8x8xf32> -> vector<1x8x8xf32>
    "tpu.trace_stop"() : () -> ()
    %130 = vector.extract_strided_slice %46 {offsets = [0, 0, 3], sizes = [1, 8, 1], strides = [1, 1, 1]} : vector<1x8x4xf32> to vector<1x8x1xf32>
    %cst_35 = arith.constant dense<0xFF800000> : vector<1x8xf32>
    %131 = vector.multi_reduction <maximumf>, %129, %cst_35 [2] : vector<1x8x8xf32> to vector<1x8xf32>
    %132 = vector.shape_cast %131 : vector<1x8xf32> to vector<1x8x1xf32>
    %133 = arith.maximumf %132, %130 : vector<1x8x1xf32>
    %134 = vector.broadcast %133 : vector<1x8x1xf32> to vector<1x8x8xf32>
    %135 = arith.subf %129, %134 : vector<1x8x8xf32>
    %136 = math.exp %135 : vector<1x8x8xf32>
    %137 = arith.subf %130, %133 : vector<1x8x1xf32>
    %138 = math.exp %137 : vector<1x8x1xf32>
    %cst_36 = arith.constant dense<0.000000e+00> : vector<1x8xf32>
    %139 = vector.multi_reduction <add>, %136, %cst_36 [2] : vector<1x8x8xf32> to vector<1x8xf32>
    %140 = vector.shape_cast %139 : vector<1x8xf32> to vector<1x8x1xf32>
    %141 = arith.addf %140, %138 : vector<1x8x1xf32>
    %cst_37 = arith.constant 1.000000e+00 : f32
    %142 = vector.broadcast %cst_37 : f32 to vector<1x8x1xf32>
    %143 = arith.divf %142, %141 : vector<1x8x1xf32>
    %144 = vector.broadcast %143 : vector<1x8x1xf32> to vector<1x8x8xf32>
    %145 = arith.mulf %136, %144 : vector<1x8x8xf32>
    %146 = arith.mulf %138, %143 : vector<1x8x1xf32>
    %147 = arith.addf %121, %145 : vector<1x8x8xf32>
    %148 = arith.truncf %145 : vector<1x8x8xf32> to vector<1x8x8xbf16>
    %149 = vector.extract_strided_slice %43 {offsets = [0, 0, 24], sizes = [1, 8, 8], strides = [1, 1, 1]} : vector<1x8x32xbf16> to vector<1x8x8xbf16>
    "tpu.trace_start"() <{level = 10 : i32, message = "bqk,bkd->bqd"}> : () -> ()
    %cst_38 = arith.constant dense<0.000000e+00> : vector<1x8x8xf32>
    %150 = tpu.matmul %148, %149, %cst_38 {dimension_numbers = #tpu.dot_dimension_numbers<[2], [1], [1], [2], [0, 0, 0, 1, 1, 2], [0], [0]>} : vector<1x8x8xbf16>, vector<1x8x8xbf16>, vector<1x8x8xf32> -> vector<1x8x8xf32>
    "tpu.trace_stop"() : () -> ()
    %151 = vector.shape_cast %150 : vector<1x8x8xf32> to vector<8x8xf32>
    %152 = vector.shape_cast %146 : vector<1x8x1xf32> to vector<8x1xf32>
    %153 = tpu.concatenate %73, %99, %125, %151 in 1 : vector<8x8xf32>, vector<8x8xf32>, vector<8x8xf32>, vector<8x8xf32> -> vector<8x32xf32>
    %154 = arith.truncf %153 : vector<8x32xf32> to vector<8x32xbf16>
    %155 = tpu.concatenate %74, %100, %126, %152 in 1 : vector<8x1xf32>, vector<8x1xf32>, vector<8x1xf32>, vector<8x1xf32> -> vector<8x4xf32>
    %c0_39 = arith.constant 0 : index
    %c0_40 = arith.constant 0 : index
    %156 = vector.load %arg8[%c0_39, %c0_40] : memref<32x32xbf16, #tpu.memory_space<vmem>>, vector<32x32xbf16>
    %cst_41 = arith.constant dense<0.000000e+00> : vector<8x32xf32>
    %157 = tpu.matmul %154, %156, %cst_41 {dimension_numbers = #tpu.dot_dimension_numbers<[1], [0], [0], [1], [0, 0, 1, 1], [], []>} : vector<8x32xbf16>, vector<32x32xbf16>, vector<8x32xf32> -> vector<8x32xf32>
    %158 = arith.truncf %155 : vector<8x4xf32> to vector<8x4xbf16>
    %c0_42 = arith.constant 0 : index
    %c0_43 = arith.constant 0 : index
    %159 = vector.load %arg7[%c0_42, %c0_43] : memref<4x32xbf16, #tpu.memory_space<vmem>>, vector<4x32xbf16>
    %cst_44 = arith.constant dense<0.000000e+00> : vector<8x32xf32>
    %160 = tpu.matmul %158, %159, %cst_44 {dimension_numbers = #tpu.dot_dimension_numbers<[1], [0], [0], [1], [0, 0, 1, 1], [], []>} : vector<8x4xbf16>, vector<4x32xbf16>, vector<8x32xf32> -> vector<8x32xf32>
    %161 = arith.addf %157, %160 : vector<8x32xf32>
    %c0_45 = arith.constant 0 : index
    %c0_46 = arith.constant 0 : index
    %162 = vector.load %arg9[%c0_45, %c0_46] : memref<1x32xf32, #tpu.memory_space<vmem>>, vector<1x32xf32>
    %163 = vector.shape_cast %162 : vector<1x32xf32> to vector<32xf32>
    %164 = vector.shape_cast %163 : vector<32xf32> to vector<1x32xf32>
    %165 = vector.broadcast %164 : vector<1x32xf32> to vector<8x32xf32>
    %166 = arith.addf %161, %165 : vector<8x32xf32>
    %167 = arith.addf %1, %166 : vector<8x32xf32>
    %168 = arith.truncf %167 : vector<8x32xf32> to vector<8x32xbf16>
    %c0_47 = arith.constant 0 : index
    %c0_48 = arith.constant 0 : index
    %169 = vector.load %arg10[%c0_47, %c0_48] : memref<32x64xbf16, #tpu.memory_space<vmem>>, vector<32x64xbf16>
    %cst_49 = arith.constant dense<0.000000e+00> : vector<8x64xf32>
    %170 = tpu.matmul %168, %169, %cst_49 {dimension_numbers = #tpu.dot_dimension_numbers<[1], [0], [0], [1], [0, 0, 1, 1], [], []>} : vector<8x32xbf16>, vector<32x64xbf16>, vector<8x64xf32> -> vector<8x64xf32>
    %c0_50 = arith.constant 0 : index
    %c0_51 = arith.constant 0 : index
    %171 = vector.load %arg11[%c0_50, %c0_51] : memref<1x64xf32, #tpu.memory_space<vmem>>, vector<1x64xf32>
    %172 = vector.shape_cast %171 : vector<1x64xf32> to vector<64xf32>
    %173 = vector.shape_cast %172 : vector<64xf32> to vector<1x64xf32>
    %174 = vector.broadcast %173 : vector<1x64xf32> to vector<8x64xf32>
    %175 = arith.addf %170, %174 : vector<8x64xf32>
    %cst_52 = arith.constant 0.000000e+00 : f32
    %176 = vector.broadcast %cst_52 : f32 to vector<8x64xf32>
    %177 = arith.maximumf %175, %176 : vector<8x64xf32>
    %178 = arith.truncf %177 : vector<8x64xf32> to vector<8x64xbf16>
    %c0_53 = arith.constant 0 : index
    %c0_54 = arith.constant 0 : index
    %179 = vector.load %arg12[%c0_53, %c0_54] : memref<64x32xbf16, #tpu.memory_space<vmem>>, vector<64x32xbf16>
    %cst_55 = arith.constant dense<0.000000e+00> : vector<8x32xf32>
    %180 = tpu.matmul %178, %179, %cst_55 {dimension_numbers = #tpu.dot_dimension_numbers<[1], [0], [0], [1], [0, 0, 1, 1], [], []>} : vector<8x64xbf16>, vector<64x32xbf16>, vector<8x32xf32> -> vector<8x32xf32>
    %181 = arith.addf %167, %180 : vector<8x32xf32>
    %c0_56 = arith.constant 0 : index
    %c0_57 = arith.constant 0 : index
    %182 = vector.load %arg13[%c0_56, %c0_57] : memref<1x32xf32, #tpu.memory_space<vmem>>, vector<1x32xf32>
    %183 = vector.shape_cast %182 : vector<1x32xf32> to vector<32xf32>
    %184 = vector.shape_cast %183 : vector<32xf32> to vector<1x32xf32>
    %185 = vector.broadcast %184 : vector<1x32xf32> to vector<8x32xf32>
    %186 = arith.addf %181, %185 : vector<8x32xf32>
    %187 = vector.shape_cast %186 : vector<8x32xf32> to vector<1x8x32xf32>
    %c0_58 = arith.constant 0 : index
    %c0_59 = arith.constant 0 : index
    %c0_60 = arith.constant 0 : index
    %188 = vector.load %arg14[%c0_58, %c0_59, %c0_60] : memref<1x8x32xf32, #tpu.memory_space<vmem>>, vector<1x8x32xf32>
    tpu.vector_store %arg14[%c0_58, %c0_59, %c0_60], %187 {strides = array<i32>} : memref<1x8x32xf32, #tpu.memory_space<vmem>>, vector<1x8x32xf32>,
    %cst_61 = arith.constant dense<0.000000e+00> : vector<8xf32>
    %189 = vector.multi_reduction <add>, %155, %cst_61 [1] : vector<8x4xf32> to vector<8xf32>
    %190 = vector.shape_cast %189 : vector<8xf32> to vector<8x1xf32>
    %191 = vector.shape_cast %190 : vector<8x1xf32> to vector<1x8x1xf32>
    %cst_62 = arith.constant 2.500000e-01 : f32
    %192 = vector.broadcast %cst_62 : f32 to vector<1x8x8xf32>
    %193 = arith.mulf %147, %192 : vector<1x8x8xf32>
    %cst_63 = arith.constant 2.500000e-01 : f32
    %194 = vector.broadcast %cst_63 : f32 to vector<1x8x1xf32>
    %195 = arith.mulf %191, %194 : vector<1x8x1xf32>
    %cst_64 = arith.constant 0.000000e+00 : f32
    %196 = vector.broadcast %cst_64 : f32 to vector<1x8x119xf32>
    %197 = tpu.concatenate %193, %195, %196 in 2 : vector<1x8x8xf32>, vector<1x8x1xf32>, vector<1x8x119xf32> -> vector<1x8x128xf32>
    %c0_65 = arith.constant 0 : index
    %c0_66 = arith.constant 0 : index
    %c0_67 = arith.constant 0 : index
    %198 = vector.load %arg15[%c0_65, %c0_66, %c0_67] : memref<1x8x128xf32, #tpu.memory_space<vmem>>, vector<1x8x128xf32>
    tpu.vector_store %arg15[%c0_65, %c0_66, %c0_67], %197 {strides = array<i32>} : memref<1x8x128xf32, #tpu.memory_space<vmem>>, vector<1x8x128xf32>,
    return
  }
  func.func @transform_0(%arg0: i32) -> (i32, i32, i32) {
    %c0_i32 = arith.constant 0 : i32
    %c0_i32_0 = arith.constant 0 : i32
    %c0_i32_1 = arith.constant 0 : i32
    return %arg0, %c0_i32, %c0_i32_0 : i32, i32, i32
  }
  func.func @transform_1(%arg0: i32) -> (i32, i32) {
    %c0_i32 = arith.constant 0 : i32
    %c0_i32_0 = arith.constant 0 : i32
    %c0_i32_1 = arith.constant 0 : i32
    return %c0_i32, %c0_i32_0 : i32, i32
  }
  func.func @transform_2(%arg0: i32) -> (i32, i32) {
    %c0_i32 = arith.constant 0 : i32
    %c0_i32_0 = arith.constant 0 : i32
    %c0_i32_1 = arith.constant 0 : i32
    return %c0_i32, %c0_i32_0 : i32, i32
  }
  func.func @transform_3(%arg0: i32) -> (i32, i32) {
    %c0_i32 = arith.constant 0 : i32
    %c0_i32_0 = arith.constant 0 : i32
    %c0_i32_1 = arith.constant 0 : i32
    return %c0_i32, %c0_i32_0 : i32, i32
  }
  func.func @transform_4(%arg0: i32) -> (i32, i32) {
    %c0_i32 = arith.constant 0 : i32
    %c0_i32_0 = arith.constant 0 : i32
    %c0_i32_1 = arith.constant 0 : i32
    return %c0_i32, %c0_i32_0 : i32, i32
  }
  func.func @transform_5(%arg0: i32) -> (i32, i32) {
    %c0_i32 = arith.constant 0 : i32
    %c0_i32_0 = arith.constant 0 : i32
    %c0_i32_1 = arith.constant 0 : i32
    return %c0_i32, %c0_i32_0 : i32, i32
  }
  func.func @transform_6(%arg0: i32) -> (i32, i32) {
    %c0_i32 = arith.constant 0 : i32
    %c0_i32_0 = arith.constant 0 : i32
    %c0_i32_1 = arith.constant 0 : i32
    return %c0_i32, %c0_i32_0 : i32, i32
  }
  func.func @transform_7(%arg0: i32) -> (i32, i32) {
    %c0_i32 = arith.constant 0 : i32
    %c0_i32_0 = arith.constant 0 : i32
    %c0_i32_1 = arith.constant 0 : i32
    return %c0_i32, %c0_i32_0 : i32, i32
  }
  func.func @transform_8(%arg0: i32) -> (i32, i32) {
    %c0_i32 = arith.constant 0 : i32
    %c0_i32_0 = arith.constant 0 : i32
    %c0_i32_1 = arith.constant 0 : i32
    return %c0_i32, %c0_i32_0 : i32, i32
  }
  func.func @transform_9(%arg0: i32) -> (i32, i32) {
    %c0_i32 = arith.constant 0 : i32
    %c0_i32_0 = arith.constant 0 : i32
    %c0_i32_1 = arith.constant 0 : i32
    return %c0_i32, %c0_i32_0 : i32, i32
  }
  func.func @transform_10(%arg0: i32) -> (i32, i32) {
    %c0_i32 = arith.constant 0 : i32
    %c0_i32_0 = arith.constant 0 : i32
    %c0_i32_1 = arith.constant 0 : i32
    return %c0_i32, %c0_i32_0 : i32, i32
  }
  func.func @transform_11(%arg0: i32) -> (i32, i32) {
    %c0_i32 = arith.constant 0 : i32
    %c0_i32_0 = arith.constant 0 : i32
    %c0_i32_1 = arith.constant 0 : i32
    return %c0_i32, %c0_i32_0 : i32, i32
  }
  func.func @transform_12(%arg0: i32) -> (i32, i32) {
    %c0_i32 = arith.constant 0 : i32
    %c0_i32_0 = arith.constant 0 : i32
    %c0_i32_1 = arith.constant 0 : i32
    return %c0_i32, %c0_i32_0 : i32, i32
  }
  func.func @transform_13(%arg0: i32) -> (i32, i32, i32) {
    %c0_i32 = arith.constant 0 : i32
    %c0_i32_0 = arith.constant 0 : i32
    %c0_i32_1 = arith.constant 0 : i32
    return %arg0, %c0_i32, %c0_i32_0 : i32, i32, i32
  }
  func.func @transform_14(%arg0: i32) -> (i32, i32, i32) {
    %c0_i32 = arith.constant 0 : i32
    %c0_i32_0 = arith.constant 0 : i32
    %c0_i32_1 = arith.constant 0 : i32
    return %arg0, %c0_i32, %c0_i32_0 : i32, i32, i32
  }
}

</mosaic_0001>

<bundles_post_ra>
// kernel: tpu_custom_call.1
= control target key start
LH: loop header
LB: loop body
LE: loop exit
PB: predicated region body
PF: predicated region fallthrough
CT: control target
= control target key end

     0   :  { %s2685_s0 = inlined_call_operand.vmem [shape: f32[2,8,32], index: 0, kind: input, shape index: {}]   ;;  %s2686_s1 = inlined_call_operand.hbm [shape: f32[1,32], index: 1, kind: input, shape index: {}]   ;;  %s2687_s2 = inlined_call_operand.hbm [shape: f32[1,32], index: 2, kind: input, shape index: {}]   ;;  %s2688_s3 = inlined_call_operand.vmem [shape: bf16[32,96], index: 3, kind: input, shape index: {}]   ;;  %s2689_s4 = inlined_call_operand.hbm [shape: f32[1,96], index: 4, kind: input, shape index: {}]   ;;  %s2690_s5 = inlined_call_operand.vmem [shape: bf16[32,4], index: 5, kind: input, shape index: {}]   ;;  %s2691_s6 = inlined_call_operand.vmem [shape: bf16[4,32], index: 6, kind: input, shape index: {}]   ;;  %s2692_s7 = inlined_call_operand.vmem [shape: bf16[32,32], index: 7, kind: input, shape index: {}]   ;;  %s2693_s8 = inlined_call_operand.vmem [shape: f32[1,32], index: 8, kind: input, shape index: {}]   ;;  %s2694_s9 = inlined_call_operand.vmem [shape: bf16[32,64], index: 9, kind: input, shape index: {}]   ;;  %s2695_s10 = inlined_call_operand.vmem [shape: f32[1,64], index: 10, kind: input, shape index: {}]   ;;  %s2696_s11 = inlined_call_operand.vmem [shape: bf16[64,32], index: 11, kind: input, shape index: {}]   ;;  %s2697_s12 = inlined_call_operand.vmem [shape: f32[1,32], index: 12, kind: input, shape index: {}]   ;;  %s2698_s13 = inlined_call_operand.hbm [shape: f32[2,8,32], index: 13, kind: output, shape index: {0}]   ;;  %s2699_s14 = inlined_call_operand.hbm [shape: f32[2,8,128], index: 14, kind: output, shape index: {1}]  }
   0x1   :  { %2710 = sst [smem:[#allocation21_spill]] %s2697_s12 }
   0x2   :  { %2711 = sst [smem:[#allocation22_spill]] %s2698_s13 }
   0x3   :  { %20 = vsyncpa [#allocation3], 0 }
   0x4   :  { %21 = vsyncpa [#allocation6], 0 }
   0x5   :  { %22 = vsyncpa [#allocation4], 0 }
   0x6   :  { %24 = vsyncpa [#allocation4 + $0x1], 0 }
   0x7   :  { %25 = vsyncpa [#allocation10], 0 }
   0x8   :  { %27 = vsyncpa [#allocation10 + $0x1], 0  ;;  %s2258_s29 = smov 0   ;;  %s2260_s30 = smov 0  }
   0x9   :  { %s2262_s15 = smov 0   ;;  %s2264_s16 = smov 0  }
   0xa LB: > { %2712 = sst [smem:[#allocation15_spill]] %s2144_s29  ;;  %s2279_s17 = sadd.s32 4294967295, %s2156_s16   ;;  %s2156_s16 = sphi %s2264_s16, %s2735_s16   ;;  %s2152_s15 = sphi %s2262_s15, %s2737_s15   ;;  %s2148_s30 = sphi %s2260_s30, %s2739_s30   ;;  %s2144_s29 = sphi %s2258_s29, %s2738_s29  }
   0xb   : > { %2713 = sst [smem:[#allocation16_spill]] %s2152_s15  ;;  %s1644_s18 = sadd.s32 4294967294, %s2156_s16  }
   0xc   : > { %2714 = sst [smem:[#allocation17_spill]] %s2156_s16  ;;  %s2283_s19 = sadd.s32 1, %s2156_s16  }
   0xd   : > { %2715 = sst [smem:[#allocation18_spill]] %s2283_s19  ;;  %s318_s20 = sadd.s32 1, %s2152_s15 }
   0xe   : > { %s315_s21 = ssub.s32 %s2156_s16, %s2283_s19  ;;  %p328_p0 = scmp.ne.s32.totalorder %s2152_s15, %s2148_s30 }
   0xf   : > { %p316_p1 = scmp.eq.s32.totalorder %s315_s21, 0  ;;  %p329_p2 = scmp.eq.s32.totalorder %s2279_s17, 1 }
  0x10   : > { %p334_p3 = scmp.ne.s32.totalorder %s2148_s30, %s2144_s29  ;;  %p335_p4 = scmp.eq.s32.totalorder %s1644_s18, 1 }
  0x11   : > { %s2294_s22 = scalar_select %p316_p1, %s2152_s15, %s318_s20  }
  0x12   : > { %p2296_p5 = por %p329_p2, %p328_p0  ;;  %p2300_p6 = por %p335_p4, %p334_p3 }
  0x13   : > { %2716 = sst [smem:[#allocation19_spill]] %s2294_s22  ;;  %p1645_p7 = scmp.ge.s32.totalorder %s2156_s16, 1 }
  0x14   : > { %s2717_s23 = scalar_select %p2296_p5, 1, 0 }
  0x15   : > { %s2718_s24 = scalar_select %p2300_p6, 1, 0 }
  0x16   : > { %p368_p8 = scmp.lt.s32.totalorder %s2156_s16, 3  ;;  %p2706_p9 = scmp.eq.s32.totalorder %s2279_s17, 0 }
  0x17   : > { %2719 = sst [smem:[#allocation20_spill]] %s2718_s24  ;;  %s2158_s26 = smov [#allocation5]  }
  0x18   : > { %p2307_p10 = pnand %p1645_p7, %p368_p8  ;;  %s392_s27 = sshll.u32 %s2158_s26, 4  ;;  %s393_s27 = int_to_ptr.vmem [resolvable:$true] %s392_s27 }
  0x19   : > { %s2159_s28 = smov [#allocation2]   ;;  %s2160_s21 = smov [#allocation7]  }
  0x1a   : > { %s2720_s25 = scalar_select %p2307_p10, 1, 0 }
  0x1b   : > { %p1844_p11 = pneg %p2307_p10  ;;  %s381_s18 = sshll.u32 %s2159_s28, 4  ;;  %s2319_s18 = int_to_ptr.vmem [resolvable:$true] %s381_s18 }
  0x1c   : > { %s406_s22 = sshll.u32 %s2160_s21, 4  ;;  %s1970_s26 = scalar_lea.hbm %s2687_s2, 16  ;;  %s2321_s22 = int_to_ptr.vmem [resolvable:$true] %s406_s22 }
  0x1d   : > { %p2315_p12 = pnand %p2706_p9, %p1844_p11  ;;  %p1971_p13 = scmp.ne.s32.totalorder %s2687_s2, %s1970_s26 }
  0x1e   : > { %p1977_p3 = scmp.lt.u32.totalorder %s1970_s26, %s2687_s2 }
  0x1f   : > { %p2331_p0 = pneg %p2315_p12 }
  0x21   : > { %p1973_p1 = pnand %p2331_p0, %p1971_p13 }
  0x23   : > { %p1974_p2 = pneg %p1973_p1 }
  0x25   : > { %p1979_p4 = pnand %p1977_p3, %p1974_p2 }
  0x27   : > { %1982 = shalt.err (!%p1979_p4)
}
  0x28   : > { %s1983_s15 = scalar_lea.vmem %s393_s27, 16  ;;  %s1990_s29 = scalar_lea.vmem %s393_s27, 32 }
  0x29   : > { %p1984_p7 = scmp.ne.s32.totalorder %s393_s27, %s1983_s15  ;;  %p1991_p9 = scmp.lt.s32.totalorder %s393_s27, %s393_s27 }
  0x2a   : > { %p1992_p6 = scmp.lt.s32.totalorder %s1990_s29, %s1983_s15 }
  0x2b   : > { %p1986_p8 = pnand %p1984_p7, %p2331_p0 }
  0x2c   : > { %p1993_p5 = por %p1992_p6, %p1991_p9 }
  0x2d   : > { %p1987_p11 = pneg %p1986_p8 }
  0x2f   : > { %p1994_p10 = pnand %p1993_p5, %p1987_p11 }
  0x31   : > { %1997 = shalt.err (!%p1994_p10)
}
  0x32   : > { %1850 = dma.hbm_to_vmem [thread:$0]  (!%p2315_p12), %s2687_s2, 16, %s393_s27, [#allocation6]  }
  0x33   : > { %s1998_s21 = scalar_lea.hbm %s2686_s1, 16 }
  0x34   : > { %p1999_p13 = scmp.ne.s32.totalorder %s2686_s1, %s1998_s21  ;;  %p2005_p5 = scmp.lt.u32.totalorder %s1998_s21, %s2686_s1 }
  0x36   : > { %p2001_p1 = pnand %p1999_p13, %p2331_p0 }
  0x38   : > { %p2002_p6 = pneg %p2001_p1 }
  0x3a   : > { %p2007_p9 = pnand %p2005_p5, %p2002_p6 }
  0x3c   : > { %2010 = shalt.err (!%p2007_p9)
}
  0x3d   : > { %s2011_s27 = scalar_lea.vmem %s2319_s18, 16  ;;  %s2018_s12 = scalar_lea.vmem %s2319_s18, 32 }
  0x3e   : > { %p2012_p10 = scmp.ne.s32.totalorder %s2319_s18, %s2011_s27  ;;  %p2019_p4 = scmp.lt.s32.totalorder %s2319_s18, %s2319_s18 }
  0x3f   : > { %p2020_p7 = scmp.lt.s32.totalorder %s2018_s12, %s2011_s27 }
  0x40   : > { %p2014_p2 = pnand %p2012_p10, %p2331_p0 }
  0x41   : > { %p2021_p8 = por %p2020_p7, %p2019_p4 }
  0x42   : > { %p2015_p3 = pneg %p2014_p2 }
  0x44   : > { %p2022_p11 = pnand %p2021_p8, %p2015_p3 }
  0x46   : > { %2025 = shalt.err (!%p2022_p11)
}
  0x47   : > { %1847 = dma.hbm_to_vmem [thread:$0]  (!%p2315_p12), %s2686_s1, 16, %s2319_s18, [#allocation3]  }
  0x48   : > { %s2026_s26 = scalar_lea.hbm %s2689_s4, 16 }
  0x49   : > { %p2027_p13 = scmp.ne.s32.totalorder %s2689_s4, %s2026_s26  ;;  %p2033_p5 = scmp.lt.u32.totalorder %s2026_s26, %s2689_s4 }
  0x4b   : > { %p2029_p1 = pnand %p2027_p13, %p2331_p0 }
  0x4d   : > { %p2030_p6 = pneg %p2029_p1 }
  0x4f   : > { %p2035_p9 = pnand %p2033_p5, %p2030_p6 }
  0x51   : > { %2038 = shalt.err (!%p2035_p9)
}
  0x52   : > { %s2039_s18 = scalar_lea.vmem %s2321_s22, 16  ;;  %s2046_s12 = scalar_lea.vmem %s2321_s22, 32 }
  0x53   : > { %p2040_p10 = scmp.ne.s32.totalorder %s2321_s22, %s2039_s18  ;;  %p2047_p4 = scmp.lt.s32.totalorder %s2321_s22, %s2321_s22 }
  0x54   : > { %p2048_p7 = scmp.lt.s32.totalorder %s2046_s12, %s2039_s18 }
  0x55   : > { %p2042_p2 = pnand %p2040_p10, %p2331_p0 }
  0x56   : > { %p2049_p8 = por %p2048_p7, %p2047_p4 }
  0x57   : > { %p2043_p3 = pneg %p2042_p2 }
  0x59   : > { %p2050_p11 = pnand %p2049_p8, %p2043_p3 }
  0x5b   : > { %2053 = shalt.err (!%p2050_p11)
}
  0x5c   : > { %1853 = dma.hbm_to_vmem [thread:$0]  (!%p2315_p12), %s2689_s4, 16, %s2321_s22, [#allocation6]  }
  0x5d   : > { %p2723_p13 = scmp.ne.s32.totalorder %s2720_s25, 0 }
  0x5e   : > { %p2724_p0 = scmp.eq.s32.totalorder (!%p2723_p13), %s2279_s17, 0 }
  0x5f   : > { %450 = sbr.rel (%p2723_p13) target bundleno = 2581 (0xa15), region = 72 }
  0x66   : > { %2127 = dma.done.wait (%p2724_p0), [#allocation3], 16   ;;  %p2725_p1 = pmov %p2724_p0 }
  0x67   : > { %p2726_p6 = pmov %p2724_p0 }
  0x68   : > { %2129 = vsyncadd (%p2725_p1), [#allocation3], 4294967280 }
  0x69   : > { %2131 = dma.done.wait (%p2726_p6), [#allocation6], 32   ;;  %p2727_p5 = pmov %p2724_p0 }
  0x6a   : > { %p508_p9 = scmp.lt.s32.totalorder %s2279_s17, 1  ;;  %vm514_vm0 = vcmask 261120   ;;  %v1932_v7 = vld [vmem:[%s2688_s3] sm:$0xff]   ;;  %v2161_v8 = vmov 0.0   ;;  %vm2162_vm1 = vmmov 0   ;;  %v1933_v9 = vld [vmem:[%s2688_s3 + $0x8] sm:$0xff]  }
  0x6b   : > { %2133 = vsyncadd (%p2727_p5), [#allocation6], 4294967264  ;;  %1730 = vmatprep.subr.bf16.mxu0 %v2161_v8  ;;  %1734 = vmatprep.mubr.msk.bf16.mxu0 %vm2162_vm1, %v2161_v8  ;;  %v1934_v10 = vld [vmem:[%s2690_s5] sm:$0xff]   ;;  %v1935_v21 = vld [vmem:[%s2690_s5 + $0x8] sm:$0xff]   ;;  %s2163_s13 = smov 120   ;;  %s2164_s19 = smov 96  }
  0x6c   : > { %s509_s20 = scalar_select %p508_p9, %s2279_s17, 1  ;;  %1731 = vmatpush3.bf16.msra.mxu0 %v1932_v7  ;;  %1738 = vmatprep.subr.bf16.mxu1 %v2161_v8  ;;  %v1657_v15 = vld [vmem:[#allocation2] ss:$0 sm:$0xff]  ;;  %v1658_v17 = vld [vmem:[#allocation5] ss:$0 sm:$0xff]  ;;  %vm675_vm2 = vcmask 64512  }
  0x6d   : > { %1732 = vmatprep.subr.bf16.mxu0 %v2161_v8  ;;  %1742 = vmatprep.mubr.msk.bf16.mxu1 %vm2162_vm1, %v2161_v8  ;;  %v1659_v22 = vld [vmem:[#allocation7] ss:$0 sm:$0xff]  ;;  %s2167_s28 = smov 112   ;;  %s2168_s25 = smov 72   ;;  %v2170_v59 = vmov 0   ;;  %vm1218_vm3 = vcmask 1041408  }
  0x6e   : > { %s1656_s22 = sshll.u32 %s509_s20, 3  ;;  %1739 = vmatpush3.bf16.msra.mxu1 %v1934_v10  ;;  %s2165_s20 = smov 88   ;;  %1923 = vset.pattern.permute.xlu1 %v2170_v59  ;;  %vm756_vm4 = vcmask 1043456   ;;  %vm1202_vm5 = vcmask 7168   ;;  %vm1204_vm6 = vcmask 15360   ;;  %vm1206_vm7 = vcmask 23552  }
  0x6f   : > { %s511_s24 = scalar_lea.vmem %s2685_s0, %s1656_s22  ;;  %1740 = vmatprep.subr.bf16.mxu1 %v2161_v8  ;;  %s2166_s22 = smov 80   ;;  %vm1214_vm8 = vcmask 31744   ;;  %vm1197_vm9 = vcmask 130048   ;;  %vm1199_vm10 = vcmask 195584   ;;  %vm1487_vm11 = vcmask 72704  }
  0x70   : > { %v2410_v0 = vld [vmem:[%s511_s24] sm:$0xff]  ;;  %1733 = vmatpush3.bf16.msra.mxu0 %v1933_v9  ;;  %s2169_s24 = smov 104   ;;  %s2174_s16 = smov 64   ;;  %vm1427_vm12 = vcmask 523264  }
  0x71   : > { %v515_v1 = vsel %vm514_vm0, %v2410_v0, 0.0  ;;  %1746 = vmatprep.subr.bf16.mxu0 %v2161_v8  ;;  %s2175_s26 = smov 48   ;;  %s2176_s21 = smov 40  }
  0x72   : > { %516 = vadd.xlane.f32.xlu0 %v515_v1  ;;  %1741 = vmatpush3.bf16.msra.mxu1 %v1935_v21  ;;  %s2177_s27 = smov 56   ;;  %p2728_p10 = scmp.ne.s32.totalorder %s2717_s23, 0 }
  0x73   : > { %1752 = vmatprep.subr.bf16.mxu1 %v2161_v8 }
  0xff   : > { %v517_v2 = vpop.xlane.xlu0 %516 }
 0x100   : > { %v519_v3 = vmul.f32 0.03125, %v517_v2  ;;  %v2171_v2 = vmov 1  }
 0x101   : > { %1924 = vset.pattern.permute.xlu0 %v2171_v2 }
 0x102   : > { %v520_v4 = vsub.f32 %v2410_v0, %v519_v3 }
 0x104   : > { %v521_v5 = vmul.f32 %v520_v4, %v520_v4 }
 0x106   : > { %v522_v6 = vsel %vm514_vm0, %v521_v5, 0.0 }
 0x107   : > { %523 = vadd.xlane.f32.xlu0 %v522_v6  ;;  %v2172_v6 = vmov 2  }
 0x194   : > { %v524_v11 = vpop.xlane.xlu0 %523 }
 0x195   : > { %v525_v12 = vmul.f32 0.03125, %v524_v11  ;;  %v2173_v11 = vmov 3  }
 0x197   : > { %v526_v13 = vadd.f32 1e-05, %v525_v12 }
 0x199   : > { %1944 = vrsqrt.f32 %v526_v13 }
 0x1a3   : > { %v1945_v14 = vpop.eup %1944 }
 0x1a4   : > { %v528_v16 = vmul.f32 %v1945_v14, %v520_v4 }
 0x1a6   : > { %v536_v18 = vmul.f32 %v1657_v15, %v528_v16 }
 0x1a8   : > { %v544_v19 = vadd.f32 %v1658_v17, %v536_v18 }
 0x1aa   : > { %v545_v20 = vpack.c.bf16 %v544_v19, %v544_v19 }
 0x1ac   : > { %1735 = vmatmul.mubr.msk.bf16.vlgmr.msra.gmra.mrb[0].mxu0 %vm514_vm0, %v545_v20 }
 0x1ad   : > { %1748 = vmatprep.mubr.msk.bf16.mxu0 %vm2162_vm1, %v2161_v8 }
 0x27f   : > { %v606_v23 = vpop.f32.mrb[0].mxu0 }
 0x280   : > { %v607_v24 = vadd.f32 %v1659_v22, %v606_v23  ;;  %v1736_v25 = vpop.f32.mrb[1].mxu0 }
 0x281   : > { %v609_v26 = vpop.f32.mrb[2].mxu0 }
 0x282   : > { %v2441_v27 = vpack.c.bf16 %v607_v24, %v607_v24  ;;  %v1737_v28 = vpop.f32.mrb[3].mxu0 }
 0x284   : > { %800 = vrot.lane.b32.xlu0 %v2441_v27, %s2163_s13  ;;  %673 = vrot.lane.b32.xlu1 %v2441_v27, %s2164_s19  ;;  %s2178_s13 = smov 8  }
 0x285   : > { %1743 = vmatmul.mubr.msk.bf16.vlgmr.msra.gmra.mrb[0].mxu1 %vm514_vm0, %v2441_v27 }
 0x286   : > { %1754 = vmatprep.mubr.msk.bf16.mxu1 %vm2162_vm1, %v2161_v8 }
 0x288   : > { %802 = vrot.lane.b32.xlu1 %v2441_v27, %s2165_s20 }
 0x28c   : > { %930 = vrot.lane.b32.xlu1 %v2441_v27, %s2166_s22  ;;  %s2179_s22 = smov 16  }
 0x290   : > { %928 = vrot.lane.b32.xlu1 %v2441_v27, %s2167_s28  ;;  %s2180_s28 = smov 24  }
 0x294   : > { %1058 = vrot.lane.b32.xlu1 %v2441_v27, %s2168_s25  ;;  %s2564_s25 = sand.u32 1, %s2148_s30  }
 0x295   : > { %s1496_s20 = scalar_lea.sflag [#allocation10], %s2564_s25 }
 0x298   : > { %1056 = vrot.lane.b32.xlu1 %v2441_v27, %s2169_s24  ;;  %s1654_s24 = sshll.u32 %s2564_s25, 3 }
 0x2f6   : > { %v674_v29 = vpop.permute.xlu1 %673  ;;  %v801_v34 = vpop.permute.xlu0 %800 }
 0x2f7   : > { %v679_v30 = vsel %vm675_vm2, %v674_v29, 0 }
 0x2f8   : > { %1747 = vmatpush3.bf16.xpose.msra.mxu0 %v679_v30 }
 0x2f9   : > { %1758 = vmatprep.subr.bf16.mxu0 %v2161_v8 }
 0x2fa   : > { %v803_v31 = vpop.permute.xlu1 %802 }
 0x2fb   : > { %v808_v32 = vsel %vm675_vm2, %v803_v31, 0 }
 0x2fe   : > { %v931_v33 = vpop.permute.xlu1 %930 }
 0x2ff   : > { %1749 = vmatmul.mubr.msk.bf16.vlgmr.msra.gmra.mrb[4].mxu0 %vm675_vm2, %v2441_v27  ;;  %v936_v36 = vsel %vm675_vm2, %v931_v33, 0 }
 0x300   : > { %1759 = vmatpush3.bf16.xpose.msra.mxu0 %v808_v32  ;;  %1760 = vmatprep.mubr.msk.bf16.mxu0 %vm2162_vm1, %v2161_v8 }
 0x301   : > { %1770 = vmatprep.subr.bf16.mxu0 %v2161_v8 }
 0x302   : > { %v929_v35 = vpop.permute.xlu1 %928 }
 0x306   : > { %v1059_v37 = vpop.permute.xlu1 %1058 }
 0x307   : > { %1761 = vmatmul.mubr.msk.bf16.vlgmr.msra.gmra.mrb[8].mxu0 %vm675_vm2, %v801_v34  ;;  %v1064_v38 = vsel %vm675_vm2, %v1059_v37, 0 }
 0x308   : > { %1771 = vmatpush3.bf16.xpose.msra.mxu0 %v936_v36  ;;  %1772 = vmatprep.mubr.msk.bf16.mxu0 %vm2162_vm1, %v2161_v8 }
 0x309   : > { %1782 = vmatprep.subr.bf16.mxu0 %v2161_v8 }
 0x30a   : > { %v1057_v39 = vpop.permute.xlu1 %1056 }
 0x30f   : > { %1773 = vmatmul.mubr.msk.bf16.vlgmr.msra.gmra.mrb[12].mxu0 %vm675_vm2, %v929_v35 }
 0x310   : > { %1783 = vmatpush3.bf16.xpose.msra.mxu0 %v1064_v38  ;;  %1784 = vmatprep.mubr.msk.bf16.mxu0 %vm2162_vm1, %v2161_v8 }
 0x311   : > { %1794 = vmatprep.subr.bf16.mxu0 %v2161_v8 }
 0x317   : > { %1785 = vmatmul.mubr.msk.bf16.vlgmr.msra.gmra.mrb[16].mxu0 %vm675_vm2, %v1057_v39  ;;  %v1213_v39 = vld [vmem:[%s2691_s6] sm:$0x3] }
 0x318   : > { %1796 = vmatprep.mubr.msk.bf16.mxu0 %vm2162_vm1, %v2161_v8 }
 0x358   : > { %v2475_v40 = vpop.f32.mrb[0].mxu1 }
 0x359   : > { %v1744_v41 = vpop.f32.mrb[1].mxu1 }
 0x35a   : > { %v669_v42 = vpop.f32.mrb[2].mxu1 }
 0x35b   : > { %v1745_v43 = vpop.f32.mrb[3].mxu1 }
 0x3d2   : > { %v715_v44 = vpop.f32.mrb[4].mxu0 }
 0x3d3   : > { %v1750_v45 = vpop.f32.mrb[5].mxu0  ;;  %v721_v46 = vsel %vm675_vm2, %v715_v44, -inf }
 0x3d4   : > { %722 = vmax.xlane.f32.xlu1 %v721_v46  ;;  %v718_v47 = vpop.f32.mrb[6].mxu0 }
 0x3d5   : > { %v1751_v48 = vpop.f32.mrb[7].mxu0 }
 0x3da   : > { %v844_v49 = vpop.f32.mrb[8].mxu0 }
 0x3db   : > { %v1762_v50 = vpop.f32.mrb[9].mxu0  ;;  %v850_v51 = vsel %vm675_vm2, %v844_v49, -inf }
 0x3dc   : > { %851 = vmax.xlane.f32.xlu0 %v850_v51  ;;  %v847_v52 = vpop.f32.mrb[10].mxu0 }
 0x3dd   : > { %v1763_v53 = vpop.f32.mrb[11].mxu0 }
 0x3e2   : > { %v972_v54 = vpop.f32.mrb[12].mxu0 }
 0x3e3   : > { %v1774_v55 = vpop.f32.mrb[13].mxu0  ;;  %v978_v56 = vsel %vm675_vm2, %v972_v54, -inf }
 0x3e4   : > { %979 = vmax.xlane.f32.xlu1 %v978_v56  ;;  %v975_v57 = vpop.f32.mrb[14].mxu0 }
 0x3e5   : > { %v1775_v58 = vpop.f32.mrb[15].mxu0 }
 0x3ea   : > { %v1100_v60 = vpop.f32.mrb[16].mxu0 }
 0x3eb   : > { %v1786_v61 = vpop.f32.mrb[17].mxu0  ;;  %v1106_v62 = vsel %vm675_vm2, %v1100_v60, -inf }
 0x3ec   : > { %1107 = vmax.xlane.f32.xlu0 %v1106_v62  ;;  %v1103_v63 = vpop.f32.mrb[18].mxu0 }
 0x3ed   : > { %v1787_v1 = vpop.f32.mrb[19].mxu0 }
 0x461   : > { %v723_v3 = vpop.xlane.xlu1 %722 }
 0x462   : > { %v724_v4 = vmax.f32 %v723_v3, %v2475_v40 }
 0x464   : > { %v733_v5 = vsub.f32 %v2475_v40, %v724_v4  ;;  %727 = vperm.xlu1 %1923, %v724_v4  }
 0x466   : > { %v734_v41 = vmul.f32 1.442695, %v733_v5 }
 0x468   : > { %1925 = vset.pattern.permute.xlu1 %v2172_v6 }
 0x469   : > { %v852_v7 = vpop.xlane.xlu0 %851 }
 0x46a   : > { %v853_v9 = vmax.f32 %v852_v7, %v2475_v40 }
 0x46c   : > { %v862_v10 = vsub.f32 %v2475_v40, %v853_v9  ;;  %856 = vperm.xlu0 %1924, %v853_v9  }
 0x46e   : > { %v863_v42 = vmul.f32 1.442695, %v862_v10 }
 0x470   : > { %1931 = vset.pattern.permute.xlu0 %v2173_v11 }
 0x471   : > { %v980_v12 = vpop.xlane.xlu1 %979 }
 0x472   : > { %v981_v13 = vmax.f32 %v980_v12, %v2475_v40 }
 0x474   : > { %v990_v14 = vsub.f32 %v2475_v40, %v981_v13  ;;  %984 = vperm.xlu1 %1925, %v981_v13  }
 0x476   : > { %v991_v46 = vmul.f32 1.442695, %v990_v14 }
 0x478   : > { %1926 = vset.pattern.permute.xlu1 %v2173_v11 }
 0x479   : > { %v1108_v15 = vpop.xlane.xlu0 %1107 }
 0x47a   : > { %v1109_v16 = vmax.f32 %v1108_v15, %v2475_v40 }
 0x47c   : > { %v1118_v17 = vsub.f32 %v2475_v40, %v1109_v16  ;;  %1112 = vperm.xlu1 %1926, %v1109_v16   ;;  %v1220_v40 = vsel %vm1218_vm3, %v1213_v39, 0  ;;  %v1936_v39 = vld [vmem:[%s2692_s7] sm:$0xff]  }
 0x47d   : > { %1795 = vmatpush3.bf16.msra.mxu0 %v1220_v40 }
 0x47e   : > { %1808 = vmatprep.subr.bf16.mxu0 %v2161_v8  ;;  %v1119_v50 = vmul.f32 1.442695, %v1118_v17 }
 0x480   : > { %1927 = vset.pattern.permute.xlu1 %v2170_v59 }
 0x4e3   : > { %v728_v18 = vpop.permute.xlu1 %727 }
 0x4e4   : > { %v730_v19 = vsub.f32 %v715_v44, %v728_v18 }
 0x4e6   : > { %v731_v20 = vmul.f32 1.442695, %v730_v19 }
 0x4e8   : > { %1946 = vpow2.f32 %v731_v20 }
 0x4eb   : > { %v857_v21 = vpop.permute.xlu0 %856 }
 0x4ec   : > { %v859_v22 = vsub.f32 %v844_v49, %v857_v21 }
 0x4ee   : > { %v860_v23 = vmul.f32 1.442695, %v859_v22 }
 0x4f0   : > { %1948 = vpow2.f32 %v860_v23 }
 0x4f2   : > { %v2493_v24 = vpop.eup %1946 }
 0x4f3   : > { %v985_v25 = vpop.permute.xlu1 %984  ;;  %v736_v26 = vsel %vm675_vm2, %v2493_v24, 0.0 }
 0x4f4   : > { %v987_v28 = vsub.f32 %v972_v54, %v985_v25  ;;  %737 = vadd.xlane.f32.xlu1 %v736_v26 }
 0x4f6   : > { %v988_v29 = vmul.f32 1.442695, %v987_v28 }
 0x4f8   : > { %1950 = vpow2.f32 %v988_v29 }
 0x4fa   : > { %v2497_v30 = vpop.eup %1948 }
 0x4fb   : > { %v1113_v31 = vpop.permute.xlu1 %1112  ;;  %v865_v32 = vsel %vm675_vm2, %v2497_v30, 0.0 }
 0x4fc   : > { %v1115_v33 = vsub.f32 %v1100_v60, %v1113_v31  ;;  %866 = vadd.xlane.f32.xlu0 %v865_v32 }
 0x4fe   : > { %v1116_v34 = vmul.f32 1.442695, %v1115_v33 }
 0x500   : > { %1952 = vpow2.f32 %v1116_v34 }
 0x501   : > { %1954 = vpow2.f32 %v734_v41 }
 0x502   : > { %v2501_v35 = vpop.eup %1950  ;;  %1956 = vpow2.f32 %v863_v42 }
 0x503   : > { %v993_v36 = vsel %vm675_vm2, %v2501_v35, 0.0 }
 0x504   : > { %994 = vadd.xlane.f32.xlu1 %v993_v36 }
 0x50a   : > { %v2505_v37 = vpop.eup %1952 }
 0x50b   : > { %v1121_v38 = vsel %vm675_vm2, %v2505_v37, 0.0  ;;  %v1955_v43 = vpop.eup %1954 }
 0x50c   : > { %1122 = vadd.xlane.f32.xlu1 %v1121_v38  ;;  %v1957_v47 = vpop.eup %1956 }
 0x512   : > { %751 = vrot.lane.b32.xlu0 %v2441_v27, %s2174_s16  ;;  %s2570_s16 = scalar_lea.vmem [#allocation9], %s1654_s24 }
 0x513   : > { %s1522_s19 = sshll.u32 %s2570_s16, 4  ;;  %s1523_s19 = int_to_ptr.vmem [resolvable:$true] %s1522_s19 }
 0x516   : > { %1008 = vrot.lane.b32.xlu0 %v2441_v27, %s2175_s26 }
 0x51a   : > { %1136 = vrot.lane.b32.xlu0 %v2441_v27, %s2176_s21 }
 0x581   : > { %v738_v44 = vpop.xlane.xlu1 %737 }
 0x582   : > { %v739_v45 = vadd.f32 %v1955_v43, %v738_v44  ;;  %v1937_v44 = vld [vmem:[%s2692_s7 + $0x8] sm:$0xff]  }
 0x584   : > { %1958 = vrcp.f32 %v739_v45 }
 0x585   : > { %1960 = vpow2.f32 %v991_v46 }
 0x589   : > { %v867_v48 = vpop.xlane.xlu0 %866 }
 0x58a   : > { %v868_v49 = vadd.f32 %v1957_v47, %v867_v48 }
 0x58c   : > { %1962 = vrcp.f32 %v868_v49 }
 0x58d   : > { %v752_v51 = vpop.permute.xlu0 %751  ;;  %1964 = vpow2.f32 %v1119_v50 }
 0x58e   : > { %v1959_v52 = vpop.eup %1958  ;;  %v758_v53 = vsel %vm756_vm4, %v752_v51, 0 }
 0x58f   : > { %744 = vperm.xlu1 %1927, %v1959_v52   ;;  %1753 = vmatpush3.bf16.msra.mxu1 %v758_v53  ;;  %v1961_v54 = vpop.eup %1960  ;;  %v748_v58 = vmul.f32 %v1959_v52, %v1955_v43 }
 0x590   : > { %1764 = vmatprep.subr.bf16.mxu1 %v2161_v8 }
 0x591   : > { %v995_v55 = vpop.xlane.xlu1 %994  ;;  %v1009_v17 = vpop.permute.xlu0 %1008 }
 0x592   : > { %v996_v56 = vadd.f32 %v1961_v54, %v995_v55  ;;  %v1014_v20 = vsel %vm756_vm4, %v1009_v17, 0 }
 0x593   : > { %1928 = vset.pattern.permute.xlu1 %v2171_v2 }
 0x594   : > { %1966 = vrcp.f32 %v996_v56 }
 0x595   : > { %v1137_v23 = vpop.permute.xlu0 %1136 }
 0x596   : > { %v1963_v57 = vpop.eup %1962  ;;  %v1142_v26 = vsel %vm756_vm4, %v1137_v23, 0 }
 0x597   : > { %v877_v59 = vmul.f32 %v1963_v57, %v1957_v47  ;;  %873 = vperm.xlu1 %1928, %v1963_v57   ;;  %v1965_v60 = vpop.eup %1964 }
 0x599   : > { %v1203_v61 = vsel %vm1202_vm5, %v748_v58, %v877_v59  ;;  %v1123_v62 = vpop.xlane.xlu1 %1122 }
 0x59a   : > { %v1124_v63 = vadd.f32 %v1965_v60, %v1123_v62 }
 0x59b   : > { %880 = vrot.lane.b32.xlu1 %v2441_v27, %s2177_s27  ;;  %s1691_s27 = sshll.u32 %s2279_s17, 7 }
 0x59c   : > { %1968 = vrcp.f32 %v1124_v63  ;;  %1929 = vset.pattern.permute.xlu1 %v2172_v6 }
 0x59e   : > { %v1967_v1 = vpop.eup %1966 }
 0x59f   : > { %v1005_v3 = vmul.f32 %v1967_v1, %v1961_v54  ;;  %1001 = vperm.xlu1 %1929, %v1967_v1  }
 0x5a1   : > { %v1205_v2 = vsel %vm1204_vm6, %v1203_v61, %v1005_v3  ;;  %v1938_v3 = vld [vmem:[%s2694_s9] sm:$0xff]  }
 0x5a3   : > { %1930 = vset.pattern.permute.xlu1 %v2173_v11 }
 0x5a6   : > { %v1969_v4 = vpop.eup %1968 }
 0x5a7   : > { %v1133_v5 = vmul.f32 %v1969_v4, %v1965_v60  ;;  %1129 = vperm.xlu1 %1930, %v1969_v4   ;;  %v1940_v4 = vld [vmem:[%s2696_s11] sm:$0xff]  }
 0x5a9   : > { %v1207_v7 = vsel %vm1206_vm7, %v1205_v2, %v1133_v5  ;;  %v1939_v2 = vld [vmem:[%s2694_s9 + $0x8] sm:$0xff]  }
 0x5aa   : > { %v1212_v9 = vpack.c.bf16 %v1207_v7, %v1207_v7  ;;  %v2522_v10 = vsel %vm1214_vm8, %v1207_v7, 0.0  ;;  %v1941_v5 = vld [vmem:[%s2696_s11 + $0x8] sm:$0xff]  }
 0x5ac   : > { %1797 = vmatmul.mubr.msk.bf16.vlgmr.msra.gmra.mrb[20].mxu0 %vm1214_vm8, %v1212_v9  ;;  %v1678_v9 = vld [vmem:[%s2693_s8] ss:$0 sm:$0xff] }
 0x5ad   : > { %1812 = vmatprep.mubr.msk.bf16.mxu0 %vm2162_vm1, %v2161_v8  ;;  %1809 = vmatpush3.bf16.msra.mxu0 %v1938_v3 }
 0x5ae   : > { %1810 = vmatprep.subr.bf16.mxu0 %v2161_v8 }
 0x5b1   : > { %1811 = vmatpush3.bf16.msra.mxu0 %v1939_v2 }
 0x60e   : > { %v745_v27 = vpop.permute.xlu1 %744 }
 0x60f   : > { %v747_v6 = vmul.f32 %v2493_v24, %v745_v27 }
 0x611   : > { %v750_v12 = vpack.c.bf16 %v747_v6, %v747_v6 }
 0x613   : > { %1755 = vmatmul.mubr.msk.bf16.vlgmr.msra.gmra.mrb[4].mxu1 %vm675_vm2, %v750_v12 }
 0x614   : > { %1766 = vmatprep.mubr.msk.bf16.mxu1 %vm2162_vm1, %v2161_v8 }
 0x616   : > { %v874_v11 = vpop.permute.xlu1 %873 }
 0x617   : > { %v876_v13 = vmul.f32 %v2497_v30, %v874_v11 }
 0x619   : > { %v878_v14 = vadd.f32 %v876_v13, %v747_v6  ;;  %v879_v18 = vpack.c.bf16 %v876_v13, %v876_v13 }
 0x61a   : > { %v881_v15 = vpop.permute.xlu1 %880 }
 0x61b   : > { %v886_v16 = vsel %vm756_vm4, %v881_v15, 0  ;;  %v1942_v15 = vld [vmem:[%s2696_s11 + $0x10] sm:$0xff]  }
 0x61c   : > { %1765 = vmatpush3.bf16.msra.mxu1 %v886_v16  ;;  %v1943_v16 = vld [vmem:[%s2696_s11 + $0x18] sm:$0xff]  }
 0x61d   : > { %1776 = vmatprep.subr.bf16.mxu1 %v2161_v8 }
 0x61e   : > { %v1002_v19 = vpop.permute.xlu1 %1001 }
 0x61f   : > { %v1004_v21 = vmul.f32 %v2501_v35, %v1002_v19  ;;  %1767 = vmatmul.mubr.msk.bf16.vlgmr.msra.gmra.mrb[8].mxu1 %vm675_vm2, %v879_v18 }
 0x620   : > { %1777 = vmatpush3.bf16.msra.mxu1 %v1014_v20  ;;  %1778 = vmatprep.mubr.msk.bf16.mxu1 %vm2162_vm1, %v2161_v8 }
 0x621   : > { %v1006_v22 = vadd.f32 %v1004_v21, %v878_v14  ;;  %1788 = vmatprep.subr.bf16.mxu1 %v2161_v8  ;;  %v1007_v24 = vpack.c.bf16 %v1004_v21, %v1004_v21 }
 0x626   : > { %v1130_v25 = vpop.permute.xlu1 %1129 }
 0x627   : > { %v1132_v28 = vmul.f32 %v2505_v37, %v1130_v25  ;;  %1779 = vmatmul.mubr.msk.bf16.vlgmr.msra.gmra.mrb[12].mxu1 %vm675_vm2, %v1007_v24 }
 0x628   : > { %1789 = vmatpush3.bf16.msra.mxu1 %v1142_v26  ;;  %1790 = vmatprep.mubr.msk.bf16.mxu1 %vm2162_vm1, %v2161_v8 }
 0x629   : > { %v1134_v29 = vadd.f32 %v1132_v28, %v1006_v22  ;;  %1800 = vmatprep.subr.bf16.mxu1 %v2161_v8  ;;  %v1135_v30 = vpack.c.bf16 %v1132_v28, %v1132_v28 }
 0x62b   : > { %v1484_v61 = vmul.f32 0.25, %v1134_v29 }
 0x62f   : > { %1791 = vmatmul.mubr.msk.bf16.vlgmr.msra.gmra.mrb[16].mxu1 %vm675_vm2, %v1135_v30 }
 0x630   : > { %1804 = vmatprep.mubr.msk.bf16.mxu1 %vm2162_vm1, %v2161_v8  ;;  %1801 = vmatpush3.bf16.msra.mxu1 %v1936_v39 }
 0x631   : > { %1802 = vmatprep.subr.bf16.mxu1 %v2161_v8 }
 0x634   : > { %1803 = vmatpush3.bf16.msra.mxu1 %v1937_v44 }
 0x635   : > { %1816 = vmatprep.subr.bf16.mxu1 %v2161_v8 }
 0x67f   : > { %v2548_v31 = vpop.f32.mrb[20].mxu0 }
 0x680   : > { %v1798_v32 = vpop.f32.mrb[21].mxu0 }
 0x681   : > { %v1259_v33 = vpop.f32.mrb[22].mxu0 }
 0x682   : > { %v1799_v34 = vpop.f32.mrb[23].mxu0 }
 0x6e6   : > { %v794_v35 = vpop.f32.mrb[4].mxu1 }
 0x6e7   : > { %v1756_v36 = vpop.f32.mrb[5].mxu1 }
 0x6e8   : > { %v797_v37 = vpop.f32.mrb[6].mxu1 }
 0x6e9   : > { %v1757_v38 = vpop.f32.mrb[7].mxu1 }
 0x6f2   : > { %v922_v40 = vpop.f32.mrb[8].mxu1 }
 0x6f3   : > { %1185 = vrot.lane.b32.xlu1 %v922_v40, %s2178_s13  ;;  %v1768_v41 = vpop.f32.mrb[9].mxu1  ;;  %s2610_s13 = scalar_lea.hbm %s2699_s14, %s1691_s27 }
 0x6f4   : > { %v925_v42 = vpop.f32.mrb[10].mxu1 }
 0x6f5   : > { %v1769_v43 = vpop.f32.mrb[11].mxu1 }
 0x6fa   : > { %v1050_v45 = vpop.f32.mrb[12].mxu1 }
 0x6fb   : > { %1189 = vrot.lane.b32.xlu0 %v1050_v45, %s2179_s22  ;;  %v1780_v46 = vpop.f32.mrb[13].mxu1  ;;  %s2054_s22 = scalar_lea.vmem %s1523_s19, 128 }
 0x6fc   : > { %v1053_v47 = vpop.f32.mrb[14].mxu1  ;;  %p2055_p12 = scmp.ne.s32.totalorder %s1523_s19, %s2054_s22 }
 0x6fd   : > { %v1781_v48 = vpop.f32.mrb[15].mxu1 }
 0x6fe   : > { %p2056_p2 = pnand %p2055_p12, %p2728_p10 }
 0x700   : > { %p2057_p3 = pneg %p2056_p2 }
 0x702   : > { %v1178_v49 = vpop.f32.mrb[16].mxu1 }
 0x703   : > { %1193 = vrot.lane.b32.xlu1 %v1178_v49, %s2180_s28  ;;  %v1792_v50 = vpop.f32.mrb[17].mxu1  ;;  %s2181_s28 = smov [#allocation9]  }
 0x704   : > { %v1181_v51 = vpop.f32.mrb[18].mxu1  ;;  %s2058_s26 = sshll.u32 %s2181_s28, 4  ;;  %s2059_s26 = int_to_ptr.vmem [resolvable:$false] %s2058_s26 }
 0x705   : > { %v1793_v52 = vpop.f32.mrb[19].mxu1  ;;  %s2060_s21 = scalar_lea.vmem %s2059_s26, 256  ;;  %p2061_p4 = scmp.lt.s32.totalorder %s1523_s19, %s2059_s26 }
 0x706   : > { %p2062_p7 = scmp.lt.s32.totalorder %s2060_s21, %s2054_s22 }
 0x708   : > { %p2063_p8 = por %p2062_p7, %p2061_p4 }
 0x70a   : > { %p2064_p11 = pnand %p2063_p8, %p2057_p3 }
 0x71a   : > { %1482 = vadd.xlane.f32.xlu0 %v2522_v10 }
 0x765   : > { %v1186_v53 = vpop.permute.xlu1 %1185 }
 0x766   : > { %v1196_v55 = vsel %vm675_vm2, %v794_v35, %v1186_v53 }
 0x76d   : > { %v1190_v54 = vpop.permute.xlu0 %1189 }
 0x76e   : > { %v1198_v56 = vsel %vm1197_vm9, %v1196_v55, %v1190_v54 }
 0x775   : > { %v1194_v57 = vpop.permute.xlu1 %1193 }
 0x776   : > { %v1200_v58 = vsel %vm1199_vm10, %v1198_v56, %v1194_v57 }
 0x777   : > { %v1201_v59 = vpack.c.bf16 %v1200_v58, %v1200_v58 }
 0x779   : > { %1805 = vmatmul.mubr.msk.bf16.vlgmr.msra.gmra.mrb[20].mxu1 %vm514_vm0, %v1201_v59 }
 0x77a   : > { %1824 = vmatprep.mubr.msk.bf16.mxu1 %vm2162_vm1, %v2161_v8  ;;  %1817 = vmatpush3.bf16.msra.mxu1 %v1940_v4 }
 0x77b   : > { %1818 = vmatprep.subr.bf16.mxu1 %v2161_v8 }
 0x77e   : > { %1819 = vmatpush3.bf16.msra.mxu1 %v1941_v5 }
 0x77f   : > { %1820 = vmatprep.subr.bf16.mxu1 %v2161_v8 }
 0x782   : > { %1821 = vmatpush3.bf16.msra.mxu1 %v1942_v15 }
 0x783   : > { %1822 = vmatprep.subr.bf16.mxu1 %v2161_v8 }
 0x786   : > { %1823 = vmatpush3.bf16.msra.mxu1 %v1943_v16 }
 0x7a7   : > { %v1483_v60 = vpop.xlane.xlu0 %1482 }
 0x7a8   : > { %v1485_v62 = vmul.f32 0.25, %v1483_v60 }
 0x7aa   : > { %v1486_v63 = vsel %vm675_vm2, %v1484_v61, %v1485_v62 }
 0x7ab   : > { %v1488_v1 = vsel %vm1487_vm11, %v1486_v63, 0.0 }
 0x7ac   : > { %1489 = vst [vmem:[%s2570_s16] sm:$0xff] %v1488_v1 }
 0x84c   : > { %v1311_v7 = vpop.f32.mrb[20].mxu1 }
 0x84d   : > { %v1312_v10 = vadd.f32 %v1311_v7, %v2548_v31  ;;  %v1806_v27 = vpop.f32.mrb[21].mxu1 }
 0x84e   : > { %v1314_v6 = vpop.f32.mrb[22].mxu1 }
 0x84f   : > { %v1324_v12 = vadd.f32 %v1678_v9, %v1312_v10  ;;  %v1807_v11 = vpop.f32.mrb[23].mxu1 }
 0x851   : > { %v1325_v13 = vadd.f32 %v1324_v12, %v2410_v0  ;;  %v1679_v0 = vld [vmem:[%s2695_s10] ss:$0 sm:$0xff] }
 0x853   : > { %v1326_v14 = vpack.c.bf16 %v1325_v13, %v1325_v13 }
 0x855   : > { %1813 = vmatmul.mubr.msk.bf16.vlgmr.msra.gmra.mrb[24].mxu0 %vm514_vm0, %v1326_v14 }
 0x928   : > { %v1387_v17 = vpop.f32.mrb[24].mxu0 }
 0x929   : > { %v1388_v18 = vadd.f32 %v1679_v0, %v1387_v17  ;;  %v1814_v19 = vpop.f32.mrb[25].mxu0 }
 0x92a   : > { %v1390_v20 = vpop.f32.mrb[26].mxu0 }
 0x92b   : > { %v1393_v21 = vmax.f32 %v1388_v18, 0.0  ;;  %v1815_v22 = vpop.f32.mrb[27].mxu0 }
 0x92d   : > { %v1394_v23 = vpack.c.bf16 %v1393_v21, %v1393_v21 }
 0x92f   : > { %1825 = vmatmul.mubr.msk.bf16.vlgmr.msra.gmra.mrb[24].mxu1 %vm1427_vm12, %v1394_v23 }
 0x930   : > { %2067 = shalt.err (!%p2064_p11)
}
 0x931   : > { %s2068_s16 = scalar_lea.hbm %s2610_s13, 128  ;;  %s2072_s18 = scalar_lea.hbm %s2699_s14, 256 }
 0x932   : > { %p2069_p13 = scmp.ne.s32.totalorder %s2610_s13, %s2068_s16  ;;  %p2073_p6 = scmp.lt.u32.totalorder %s2610_s13, %s2699_s14 }
 0x933   : > { %p2074_p5 = scmp.lt.u32.totalorder %s2072_s18, %s2068_s16  ;;  %p2076_p12 = scmp.lt.u32.totalorder %s2068_s16, %s2610_s13 }
 0x934   : > { %p2070_p0 = pnand %p2069_p13, %p2728_p10 }
 0x935   : > { %p2075_p9 = por %p2074_p5, %p2073_p6 }
 0x936   : > { %p2071_p1 = pneg %p2070_p0 }
 0x937   : > { %p2077_p2 = por %p2076_p12, %p2075_p9 }
 0x939   : > { %p2078_p3 = pnand %p2077_p2, %p2071_p1 }
 0x93b   : > { %2081 = shalt.err (!%p2078_p3)
}
 0x93c   : > { %1841 = dma.vmem_to_hbm [thread:$0]  (%p2728_p10), %s1523_s19, 128, %s2610_s13, %s1496_s20  }
 0x93d   : > { %s2729_s21 = sld [smem:[#allocation21_spill]]  ;;  %s500_s15 = scalar_lea.vmem [#allocation8], %s1654_s24 }
 0x93e   : > { %s1509_s29 = sshll.u32 %s500_s15, 4  ;;  %s2730_s12 = sld [smem:[#allocation22_spill]]  ;;  %s2643_s29 = int_to_ptr.vmem [resolvable:$true] %s1509_s29 }
 0x93f   : > { %s1491_s24 = scalar_lea.sflag [#allocation4], %s2564_s25  ;;  %s2082_s13 = scalar_lea.vmem %s2643_s29, 128 }
 0x940   : > { %p2083_p4 = scmp.ne.s32.totalorder %s2643_s29, %s2082_s13  ;;  %s2182_s19 = smov [#allocation8]  }
 0x941   : > { %s2086_s17 = sshll.u32 %s2182_s19, 4  ;;  %s2087_s17 = int_to_ptr.vmem [resolvable:$false] %s2086_s17 }
 0x942   : > { %p2084_p7 = pnand %p2083_p4, %p2728_p10  ;;  %s2088_s20 = scalar_lea.vmem %s2087_s17, 256 }
 0x943   : > { %v1688_v24 = vld [vmem:[%s2729_s21] ss:$0 sm:$0xff]  ;;  %p2089_p11 = scmp.lt.s32.totalorder %s2643_s29, %s2087_s17  ;;  %p2090_p13 = scmp.lt.s32.totalorder %s2088_s20, %s2082_s13 }
 0x944   : > { %s2641_s28 = scalar_lea.hbm %s2730_s12, %s1691_s27  ;;  %p2085_p8 = pneg %p2084_p7 }
 0x945   : > { %p2091_p0 = por %p2090_p13, %p2089_p11 }
 0x947   : > { %p2092_p1 = pnand %p2091_p0, %p2085_p8 }
 0xa02   : > { %v1465_v8 = vpop.f32.mrb[24].mxu1 }
 0xa03   : > { %v1471_v25 = vadd.f32 %v1465_v8, %v1325_v13  ;;  %v1826_v26 = vpop.f32.mrb[25].mxu1 }
 0xa04   : > { %v1468_v28 = vpop.f32.mrb[26].mxu1 }
 0xa05   : > { %v1479_v29 = vadd.f32 %v1688_v24, %v1471_v25  ;;  %v1827_v30 = vpop.f32.mrb[27].mxu1 }
 0xa07   : > { %1480 = vst.msk [vmem:[%s500_s15] sm:$0xff] %vm514_vm0, %v1479_v29 }
 0xa08   : > { %2095 = shalt.err (!%p2092_p1)
}
 0xa09   : > { %s2096_s25 = scalar_lea.hbm %s2641_s28, 128  ;;  %s2100_s26 = scalar_lea.hbm %s2730_s12, 256 }
 0xa0a   : > { %p2097_p6 = scmp.ne.s32.totalorder %s2641_s28, %s2096_s25  ;;  %p2101_p12 = scmp.lt.u32.totalorder %s2641_s28, %s2730_s12 }
 0xa0b   : > { %p2102_p2 = scmp.lt.u32.totalorder %s2100_s26, %s2096_s25  ;;  %p2104_p4 = scmp.lt.u32.totalorder %s2096_s25, %s2641_s28 }
 0xa0c   : > { %p2098_p5 = pnand %p2097_p6, %p2728_p10 }
 0xa0d   : > { %p2103_p3 = por %p2102_p2, %p2101_p12 }
 0xa0e   : > { %p2099_p9 = pneg %p2098_p5 }
 0xa0f   : > { %p2105_p7 = por %p2104_p4, %p2103_p3 }
 0xa11   : > { %p2106_p8 = pnand %p2105_p7, %p2099_p9 }
 0xa13   : > { %2109 = shalt.err (!%p2106_p8)
}
 0xa14   : > { %1840 = dma.vmem_to_hbm [thread:$0]  (%p2728_p10), %s2643_s29, 128, %s2641_s28, %s1491_s24  }
 0xa15 PF: > { %s2731_s16 = sld [smem:[#allocation17_spill]]  ;;  %s2732_s18 = sld [smem:[#allocation15_spill]] }
 0xa16   : > { %s2733_s13 = sld [smem:[#allocation20_spill]] }
 0xa1b   : > { %p1867_p11 = scmp.ge.s32.totalorder %s2731_s16, 2  ;;  %s1534_s19 = sand.u32 1, %s2732_s18  }
 0xa1c   : > { %p2734_p13 = scmp.ne.s32.totalorder %s2733_s13, 0  ;;  %s1535_s17 = scalar_lea.sflag [#allocation4], %s1534_s19 }
 0xa1e   : > { %p1855_p0 = pnand %p1867_p11, %p2734_p13 }
 0xa20   : > { %2135 = dma.done.wait (!%p1855_p0), %s1535_s17, 128  }
 0xa21   : > { %2137 = vsyncadd (!%p1855_p0), %s1535_s17, 4294967168  ;;  %s1544_s20 = scalar_lea.sflag [#allocation10], %s1534_s19 }
 0xa22   : > { %2139 = dma.done.wait (!%p1855_p0), %s1544_s20, 128  }
 0xa23   : > { %2141 = vsyncadd (!%p1855_p0), %s1544_s20, 4294967168  ;;  %s2735_s16 = sld [smem:[#allocation18_spill]]  ;;  %s2736_s23 = sld [smem:[#allocation16_spill]] }
 0xa24   : > { %s2737_s15 = sld [smem:[#allocation19_spill]]  ;;  %s2738_s29 = smov %s2148_s30 }
 0xa29   : > { %p30_p10 = scmp.ge.s32.totalorder %s2735_s16, 4   ;;  %s2739_s30 = smov %s2736_s23 }
 0xa2b   :  { %32 = sbr.rel (!%p30_p10) target bundleno = 10 (0xa), region = 137 }
 0xa32   :  { %1549 = vsyncpa [#allocation3], 1 }
 0xa33   :  { %1551 = vsyncpa [#allocation3 + $0x1], 1 }
 0xa34   :  { %1552 = vsyncpa [#allocation6], 1 }
 0xa35   :  { %1553 = vsyncpa [#allocation4], 1 }
 0xa36   :  { %1555 = vsyncpa [#allocation4 + $0x1], 1 }
 0xa37   :  { %1556 = vsyncpa [#allocation10], 1 }
 0xa38   :  { %1558 = vsyncpa [#allocation10 + $0x1], 1 }

// kernel: tpu_custom_call.1
= control target key start
LH: loop header
LB: loop body
LE: loop exit
PB: predicated region body
PF: predicated region fallthrough
CT: control target
= control target key end

     0   :  { %s2685_s0 = inlined_call_operand.vmem [shape: f32[2,8,32], index: 0, kind: input, shape index: {}]   ;;  %s2686_s1 = inlined_call_operand.hbm [shape: f32[1,32], index: 1, kind: input, shape index: {}]   ;;  %s2687_s2 = inlined_call_operand.hbm [shape: f32[1,32], index: 2, kind: input, shape index: {}]   ;;  %s2688_s3 = inlined_call_operand.vmem [shape: bf16[32,96], index: 3, kind: input, shape index: {}]   ;;  %s2689_s4 = inlined_call_operand.hbm [shape: f32[1,96], index: 4, kind: input, shape index: {}]   ;;  %s2690_s5 = inlined_call_operand.vmem [shape: bf16[32,4], index: 5, kind: input, shape index: {}]   ;;  %s2691_s6 = inlined_call_operand.vmem [shape: bf16[4,32], index: 6, kind: input, shape index: {}]   ;;  %s2692_s7 = inlined_call_operand.vmem [shape: bf16[32,32], index: 7, kind: input, shape index: {}]   ;;  %s2693_s8 = inlined_call_operand.vmem [shape: f32[1,32], index: 8, kind: input, shape index: {}]   ;;  %s2694_s9 = inlined_call_operand.vmem [shape: bf16[32,64], index: 9, kind: input, shape index: {}]   ;;  %s2695_s10 = inlined_call_operand.vmem [shape: f32[1,64], index: 10, kind: input, shape index: {}]   ;;  %s2696_s11 = inlined_call_operand.vmem [shape: bf16[64,32], index: 11, kind: input, shape index: {}]   ;;  %s2697_s12 = inlined_call_operand.vmem [shape: f32[1,32], index: 12, kind: input, shape index: {}]   ;;  %s2698_s13 = inlined_call_operand.hbm [shape: f32[2,8,32], index: 13, kind: output, shape index: {0}]   ;;  %s2699_s14 = inlined_call_operand.hbm [shape: f32[2,8,128], index: 14, kind: output, shape index: {1}]  }
   0x1   :  { %2710 = sst [smem:[#allocation21_spill]] %s2697_s12 }
   0x2   :  { %2711 = sst [smem:[#allocation22_spill]] %s2698_s13 }
   0x3   :  { %20 = vsyncpa [#allocation3], 0 }
   0x4   :  { %21 = vsyncpa [#allocation6], 0 }
   0x5   :  { %22 = vsyncpa [#allocation4], 0 }
   0x6   :  { %24 = vsyncpa [#allocation4 + $0x1], 0 }
   0x7   :  { %25 = vsyncpa [#allocation10], 0 }
   0x8   :  { %27 = vsyncpa [#allocation10 + $0x1], 0  ;;  %s2258_s29 = smov 0   ;;  %s2260_s30 = smov 0  }
   0x9   :  { %s2262_s15 = smov 0   ;;  %s2264_s16 = smov 0  }
   0xa LB: > { %2712 = sst [smem:[#allocation15_spill]] %s2144_s29  ;;  %s2279_s17 = sadd.s32 4294967295, %s2156_s16   ;;  %s2156_s16 = sphi %s2264_s16, %s2735_s16   ;;  %s2152_s15 = sphi %s2262_s15, %s2737_s15   ;;  %s2148_s30 = sphi %s2260_s30, %s2739_s30   ;;  %s2144_s29 = sphi %s2258_s29, %s2738_s29  }
   0xb   : > { %2713 = sst [smem:[#allocation16_spill]] %s2152_s15  ;;  %s1644_s18 = sadd.s32 4294967294, %s2156_s16  }
   0xc   : > { %2714 = sst [smem:[#allocation17_spill]] %s2156_s16  ;;  %s2283_s19 = sadd.s32 1, %s2156_s16  }
   0xd   : > { %2715 = sst [smem:[#allocation18_spill]] %s2283_s19  ;;  %s318_s20 = sadd.s32 1, %s2152_s15 }
   0xe   : > { %s315_s21 = ssub.s32 %s2156_s16, %s2283_s19  ;;  %p328_p0 = scmp.ne.s32.totalorder %s2152_s15, %s2148_s30 }
   0xf   : > { %p316_p1 = scmp.eq.s32.totalorder %s315_s21, 0  ;;  %p329_p2 = scmp.eq.s32.totalorder %s2279_s17, 1 }
  0x10   : > { %p334_p3 = scmp.ne.s32.totalorder %s2148_s30, %s2144_s29  ;;  %p335_p4 = scmp.eq.s32.totalorder %s1644_s18, 1 }
  0x11   : > { %s2294_s22 = scalar_select %p316_p1, %s2152_s15, %s318_s20  }
  0x12   : > { %p2296_p5 = por %p329_p2, %p328_p0  ;;  %p2300_p6 = por %p335_p4, %p334_p3 }
  0x13   : > { %2716 = sst [smem:[#allocation19_spill]] %s2294_s22  ;;  %p1645_p7 = scmp.ge.s32.totalorder %s2156_s16, 1 }
  0x14   : > { %s2717_s23 = scalar_select %p2296_p5, 1, 0 }
  0x15   : > { %s2718_s24 = scalar_select %p2300_p6, 1, 0 }
  0x16   : > { %p368_p8 = scmp.lt.s32.totalorder %s2156_s16, 3  ;;  %p2706_p9 = scmp.eq.s32.totalorder %s2279_s17, 0 }
  0x17   : > { %2719 = sst [smem:[#allocation20_spill]] %s2718_s24  ;;  %s2158_s26 = smov [#allocation5]  }
  0x18   : > { %p2307_p10 = pnand %p1645_p7, %p368_p8  ;;  %s392_s27 = sshll.u32 %s2158_s26, 4  ;;  %s393_s27 = int_to_ptr.vmem [resolvable:$true] %s392_s27 }
  0x19   : > { %s2159_s28 = smov [#allocation2]   ;;  %s2160_s21 = smov [#allocation7]  }
  0x1a   : > { %s2720_s25 = scalar_select %p2307_p10, 1, 0 }
  0x1b   : > { %p1844_p11 = pneg %p2307_p10  ;;  %s381_s18 = sshll.u32 %s2159_s28, 4  ;;  %s2319_s18 = int_to_ptr.vmem [resolvable:$true] %s381_s18 }
  0x1c   : > { %s406_s22 = sshll.u32 %s2160_s21, 4  ;;  %s1970_s26 = scalar_lea.hbm %s2687_s2, 16  ;;  %s2321_s22 = int_to_ptr.vmem [resolvable:$true] %s406_s22 }
  0x1d   : > { %p2315_p12 = pnand %p2706_p9, %p1844_p11  ;;  %p1971_p13 = scmp.ne.s32.totalorder %s2687_s2, %s1970_s26 }
  0x1e   : > { %p1977_p3 = scmp.lt.u32.totalorder %s1970_s26, %s2687_s2 }
  0x1f   : > { %p2331_p0 = pneg %p2315_p12 }
  0x21   : > { %p1973_p1 = pnand %p2331_p0, %p1971_p13 }
  0x23   : > { %p1974_p2 = pneg %p1973_p1 }
  0x25   : > { %p1979_p4 = pnand %p1977_p3, %p1974_p2 }
  0x27   : > { %1982 = shalt.err (!%p1979_p4)
}
  0x28   : > { %s1983_s15 = scalar_lea.vmem %s393_s27, 16  ;;  %s1990_s29 = scalar_lea.vmem %s393_s27, 32 }
  0x29   : > { %p1984_p7 = scmp.ne.s32.totalorder %s393_s27, %s1983_s15  ;;  %p1991_p9 = scmp.lt.s32.totalorder %s393_s27, %s393_s27 }
  0x2a   : > { %p1992_p6 = scmp.lt.s32.totalorder %s1990_s29, %s1983_s15 }
  0x2b   : > { %p1986_p8 = pnand %p1984_p7, %p2331_p0 }
  0x2c   : > { %p1993_p5 = por %p1992_p6, %p1991_p9 }
  0x2d   : > { %p1987_p11 = pneg %p1986_p8 }
  0x2f   : > { %p1994_p10 = pnand %p1993_p5, %p1987_p11 }
  0x31   : > { %1997 = shalt.err (!%p1994_p10)
}
  0x32   : > { %1850 = dma.hbm_to_vmem [thread:$0]  (!%p2315_p12), %s2687_s2, 16, %s393_s27, [#allocation6]  }
  0x33   : > { %s1998_s21 = scalar_lea.hbm %s2686_s1, 16 }
  0x34   : > { %p1999_p13 = scmp.ne.s32.totalorder %s2686_s1, %s1998_s21  ;;  %p2005_p5 = scmp.lt.u32.totalorder %s1998_s21, %s2686_s1 }
  0x36   : > { %p2001_p1 = pnand %p1999_p13, %p2331_p0 }
  0x38   : > { %p2002_p6 = pneg %p2001_p1 }
  0x3a   : > { %p2007_p9 = pnand %p2005_p5, %p2002_p6 }
  0x3c   : > { %2010 = shalt.err (!%p2007_p9)
}
  0x3d   : > { %s2011_s27 = scalar_lea.vmem %s2319_s18, 16  ;;  %s2018_s12 = scalar_lea.vmem %s2319_s18, 32 }
  0x3e   : > { %p2012_p10 = scmp.ne.s32.totalorder %s2319_s18, %s2011_s27  ;;  %p2019_p4 = scmp.lt.s32.totalorder %s2319_s18, %s2319_s18 }
  0x3f   : > { %p2020_p7 = scmp.lt.s32.totalorder %s2018_s12, %s2011_s27 }
  0x40   : > { %p2014_p2 = pnand %p2012_p10, %p2331_p0 }
  0x41   : > { %p2021_p8 = por %p2020_p7, %p2019_p4 }
  0x42   : > { %p2015_p3 = pneg %p2014_p2 }
  0x44   : > { %p2022_p11 = pnand %p2021_p8, %p2015_p3 }
  0x46   : > { %2025 = shalt.err (!%p2022_p11)
}
  0x47   : > { %1847 = dma.hbm_to_vmem [thread:$0]  (!%p2315_p12), %s2686_s1, 16, %s2319_s18, [#allocation3]  }
  0x48   : > { %s2026_s26 = scalar_lea.hbm %s2689_s4, 16 }
  0x49   : > { %p2027_p13 = scmp.ne.s32.totalorder %s2689_s4, %s2026_s26  ;;  %p2033_p5 = scmp.lt.u32.totalorder %s2026_s26, %s2689_s4 }
  0x4b   : > { %p2029_p1 = pnand %p2027_p13, %p2331_p0 }
  0x4d   : > { %p2030_p6 = pneg %p2029_p1 }
  0x4f   : > { %p2035_p9 = pnand %p2033_p5, %p2030_p6 }
  0x51   : > { %2038 = shalt.err (!%p2035_p9)
}
  0x52   : > { %s2039_s18 = scalar_lea.vmem %s2321_s22, 16  ;;  %s2046_s12 = scalar_lea.vmem %s2321_s22, 32 }
  0x53   : > { %p2040_p10 = scmp.ne.s32.totalorder %s2321_s22, %s2039_s18  ;;  %p2047_p4 = scmp.lt.s32.totalorder %s2321_s22, %s2321_s22 }
  0x54   : > { %p2048_p7 = scmp.lt.s32.totalorder %s2046_s12, %s2039_s18 }
  0x55   : > { %p2042_p2 = pnand %p2040_p10, %p2331_p0 }
  0x56   : > { %p2049_p8 = por %p2048_p7, %p2047_p4 }
  0x57   : > { %p2043_p3 = pneg %p2042_p2 }
  0x59   : > { %p2050_p11 = pnand %p2049_p8, %p2043_p3 }
  0x5b   : > { %2053 = shalt.err (!%p2050_p11)
}
  0x5c   : > { %1853 = dma.hbm_to_vmem [thread:$0]  (!%p2315_p12), %s2689_s4, 16, %s2321_s22, [#allocation6]  }
  0x5d   : > { %p2723_p13 = scmp.ne.s32.totalorder %s2720_s25, 0 }
  0x5e   : > { %p2724_p0 = scmp.eq.s32.totalorder (!%p2723_p13), %s2279_s17, 0 }
  0x5f   : > { %450 = sbr.rel (%p2723_p13) target bundleno = 2581 (0xa15), region = 72 }
  0x66   : > { %2127 = dma.done.wait (%p2724_p0), [#allocation3], 16   ;;  %p2725_p1 = pmov %p2724_p0 }
  0x67   : > { %p2726_p6 = pmov %p2724_p0 }
  0x68   : > { %2129 = vsyncadd (%p2725_p1), [#allocation3], 4294967280 }
  0x69   : > { %2131 = dma.done.wait (%p2726_p6), [#allocation6], 32   ;;  %p2727_p5 = pmov %p2724_p0 }
  0x6a   : > { %p508_p9 = scmp.lt.s32.totalorder %s2279_s17, 1  ;;  %vm514_vm0 = vcmask 261120   ;;  %v1932_v7 = vld [vmem:[%s2688_s3] sm:$0xff]   ;;  %v2161_v8 = vmov 0.0   ;;  %vm2162_vm1 = vmmov 0   ;;  %v1933_v9 = vld [vmem:[%s2688_s3 + $0x8] sm:$0xff]  }
  0x6b   : > { %2133 = vsyncadd (%p2727_p5), [#allocation6], 4294967264  ;;  %1730 = vmatprep.subr.bf16.mxu0 %v2161_v8  ;;  %1734 = vmatprep.mubr.msk.bf16.mxu0 %vm2162_vm1, %v2161_v8  ;;  %v1934_v10 = vld [vmem:[%s2690_s5] sm:$0xff]   ;;  %v1935_v21 = vld [vmem:[%s2690_s5 + $0x8] sm:$0xff]   ;;  %s2163_s13 = smov 120   ;;  %s2164_s19 = smov 96  }
  0x6c   : > { %s509_s20 = scalar_select %p508_p9, %s2279_s17, 1  ;;  %1731 = vmatpush3.bf16.msra.mxu0 %v1932_v7  ;;  %1738 = vmatprep.subr.bf16.mxu1 %v2161_v8  ;;  %v1657_v15 = vld [vmem:[#allocation2] ss:$0 sm:$0xff]  ;;  %v1658_v17 = vld [vmem:[#allocation5] ss:$0 sm:$0xff]  ;;  %vm675_vm2 = vcmask 64512  }
  0x6d   : > { %1732 = vmatprep.subr.bf16.mxu0 %v2161_v8  ;;  %1742 = vmatprep.mubr.msk.bf16.mxu1 %vm2162_vm1, %v2161_v8  ;;  %v1659_v22 = vld [vmem:[#allocation7] ss:$0 sm:$0xff]  ;;  %s2167_s28 = smov 112   ;;  %s2168_s25 = smov 72   ;;  %v2170_v59 = vmov 0   ;;  %vm1218_vm3 = vcmask 1041408  }
  0x6e   : > { %s1656_s22 = sshll.u32 %s509_s20, 3  ;;  %1739 = vmatpush3.bf16.msra.mxu1 %v1934_v10  ;;  %s2165_s20 = smov 88   ;;  %1923 = vset.pattern.permute.xlu1 %v2170_v59  ;;  %vm756_vm4 = vcmask 1043456   ;;  %vm1202_vm5 = vcmask 7168   ;;  %vm1204_vm6 = vcmask 15360   ;;  %vm1206_vm7 = vcmask 23552  }
  0x6f   : > { %s511_s24 = scalar_lea.vmem %s2685_s0, %s1656_s22  ;;  %1740 = vmatprep.subr.bf16.mxu1 %v2161_v8  ;;  %s2166_s22 = smov 80   ;;  %vm1214_vm8 = vcmask 31744   ;;  %vm1197_vm9 = vcmask 130048   ;;  %vm1199_vm10 = vcmask 195584   ;;  %vm1487_vm11 = vcmask 72704  }
  0x70   : > { %v2410_v0 = vld [vmem:[%s511_s24] sm:$0xff]  ;;  %1733 = vmatpush3.bf16.msra.mxu0 %v1933_v9  ;;  %s2169_s24 = smov 104   ;;  %s2174_s16 = smov 64   ;;  %vm1427_vm12 = vcmask 523264  }
  0x71   : > { %v515_v1 = vsel %vm514_vm0, %v2410_v0, 0.0  ;;  %1746 = vmatprep.subr.bf16.mxu0 %v2161_v8  ;;  %s2175_s26 = smov 48   ;;  %s2176_s21 = smov 40  }
  0x72   : > { %516 = vadd.xlane.f32.xlu0 %v515_v1  ;;  %1741 = vmatpush3.bf16.msra.mxu1 %v1935_v21  ;;  %s2177_s27 = smov 56   ;;  %p2728_p10 = scmp.ne.s32.totalorder %s2717_s23, 0 }
  0x73   : > { %1752 = vmatprep.subr.bf16.mxu1 %v2161_v8 }
  0xff   : > { %v517_v2 = vpop.xlane.xlu0 %516 }
 0x100   : > { %v519_v3 = vmul.f32 0.03125, %v517_v2  ;;  %v2171_v2 = vmov 1  }
 0x101   : > { %1924 = vset.pattern.permute.xlu0 %v2171_v2 }
 0x102   : > { %v520_v4 = vsub.f32 %v2410_v0, %v519_v3 }
 0x104   : > { %v521_v5 = vmul.f32 %v520_v4, %v520_v4 }
 0x106   : > { %v522_v6 = vsel %vm514_vm0, %v521_v5, 0.0 }
 0x107   : > { %523 = vadd.xlane.f32.xlu0 %v522_v6  ;;  %v2172_v6 = vmov 2  }
 0x194   : > { %v524_v11 = vpop.xlane.xlu0 %523 }
 0x195   : > { %v525_v12 = vmul.f32 0.03125, %v524_v11  ;;  %v2173_v11 = vmov 3  }
 0x197   : > { %v526_v13 = vadd.f32 1e-05, %v525_v12 }
 0x199   : > { %1944 = vrsqrt.f32 %v526_v13 }
 0x1a3   : > { %v1945_v14 = vpop.eup %1944 }
 0x1a4   : > { %v528_v16 = vmul.f32 %v1945_v14, %v520_v4 }
 0x1a6   : > { %v536_v18 = vmul.f32 %v1657_v15, %v528_v16 }
 0x1a8   : > { %v544_v19 = vadd.f32 %v1658_v17, %v536_v18 }
 0x1aa   : > { %v545_v20 = vpack.c.bf16 %v544_v19, %v544_v19 }
 0x1ac   : > { %1735 = vmatmul.mubr.msk.bf16.vlgmr.msra.gmra.mrb[0].mxu0 %vm514_vm0, %v545_v20 }
 0x1ad   : > { %1748 = vmatprep.mubr.msk.bf16.mxu0 %vm2162_vm1, %v2161_v8 }
 0x27f   : > { %v606_v23 = vpop.f32.mrb[0].mxu0 }
 0x280   : > { %v607_v24 = vadd.f32 %v1659_v22, %v606_v23  ;;  %v1736_v25 = vpop.f32.mrb[1].mxu0 }
 0x281   : > { %v609_v26 = vpop.f32.mrb[2].mxu0 }
 0x282   : > { %v2441_v27 = vpack.c.bf16 %v607_v24, %v607_v24  ;;  %v1737_v28 = vpop.f32.mrb[3].mxu0 }
 0x284   : > { %800 = vrot.lane.b32.xlu0 %v2441_v27, %s2163_s13  ;;  %673 = vrot.lane.b32.xlu1 %v2441_v27, %s2164_s19  ;;  %s2178_s13 = smov 8  }
 0x285   : > { %1743 = vmatmul.mubr.msk.bf16.vlgmr.msra.gmra.mrb[0].mxu1 %vm514_vm0, %v2441_v27 }
 0x286   : > { %1754 = vmatprep.mubr.msk.bf16.mxu1 %vm2162_vm1, %v2161_v8 }
 0x288   : > { %802 = vrot.lane.b32.xlu1 %v2441_v27, %s2165_s20 }
 0x28c   : > { %930 = vrot.lane.b32.xlu1 %v2441_v27, %s2166_s22  ;;  %s2179_s22 = smov 16  }
 0x290   : > { %928 = vrot.lane.b32.xlu1 %v2441_v27, %s2167_s28  ;;  %s2180_s28 = smov 24  }
 0x294   : > { %1058 = vrot.lane.b32.xlu1 %v2441_v27, %s2168_s25  ;;  %s2564_s25 = sand.u32 1, %s2148_s30  }
 0x295   : > { %s1496_s20 = scalar_lea.sflag [#allocation10], %s2564_s25 }
 0x298   : > { %1056 = vrot.lane.b32.xlu1 %v2441_v27, %s2169_s24  ;;  %s1654_s24 = sshll.u32 %s2564_s25, 3 }
 0x2f6   : > { %v674_v29 = vpop.permute.xlu1 %673  ;;  %v801_v34 = vpop.permute.xlu0 %800 }
 0x2f7   : > { %v679_v30 = vsel %vm675_vm2, %v674_v29, 0 }
 0x2f8   : > { %1747 = vmatpush3.bf16.xpose.msra.mxu0 %v679_v30 }
 0x2f9   : > { %1758 = vmatprep.subr.bf16.mxu0 %v2161_v8 }
 0x2fa   : > { %v803_v31 = vpop.permute.xlu1 %802 }
 0x2fb   : > { %v808_v32 = vsel %vm675_vm2, %v803_v31, 0 }
 0x2fe   : > { %v931_v33 = vpop.permute.xlu1 %930 }
 0x2ff   : > { %1749 = vmatmul.mubr.msk.bf16.vlgmr.msra.gmra.mrb[4].mxu0 %vm675_vm2, %v2441_v27  ;;  %v936_v36 = vsel %vm675_vm2, %v931_v33, 0 }
 0x300   : > { %1759 = vmatpush3.bf16.xpose.msra.mxu0 %v808_v32  ;;  %1760 = vmatprep.mubr.msk.bf16.mxu0 %vm2162_vm1, %v2161_v8 }
 0x301   : > { %1770 = vmatprep.subr.bf16.mxu0 %v2161_v8 }
 0x302   : > { %v929_v35 = vpop.permute.xlu1 %928 }
 0x306   : > { %v1059_v37 = vpop.permute.xlu1 %1058 }
 0x307   : > { %1761 = vmatmul.mubr.msk.bf16.vlgmr.msra.gmra.mrb[8].mxu0 %vm675_vm2, %v801_v34  ;;  %v1064_v38 = vsel %vm675_vm2, %v1059_v37, 0 }
 0x308   : > { %1771 = vmatpush3.bf16.xpose.msra.mxu0 %v936_v36  ;;  %1772 = vmatprep.mubr.msk.bf16.mxu0 %vm2162_vm1, %v2161_v8 }
 0x309   : > { %1782 = vmatprep.subr.bf16.mxu0 %v2161_v8 }
 0x30a   : > { %v1057_v39 = vpop.permute.xlu1 %1056 }
 0x30f   : > { %1773 = vmatmul.mubr.msk.bf16.vlgmr.msra.gmra.mrb[12].mxu0 %vm675_vm2, %v929_v35 }
 0x310   : > { %1783 = vmatpush3.bf16.xpose.msra.mxu0 %v1064_v38  ;;  %1784 = vmatprep.mubr.msk.bf16.mxu0 %vm2162_vm1, %v2161_v8 }
 0x311   : > { %1794 = vmatprep.subr.bf16.mxu0 %v2161_v8 }
 0x317   : > { %1785 = vmatmul.mubr.msk.bf16.vlgmr.msra.gmra.mrb[16].mxu0 %vm675_vm2, %v1057_v39  ;;  %v1213_v39 = vld [vmem:[%s2691_s6] sm:$0x3] }
 0x318   : > { %1796 = vmatprep.mubr.msk.bf16.mxu0 %vm2162_vm1, %v2161_v8 }
 0x358   : > { %v2475_v40 = vpop.f32.mrb[0].mxu1 }
 0x359   : > { %v1744_v41 = vpop.f32.mrb[1].mxu1 }
 0x35a   : > { %v669_v42 = vpop.f32.mrb[2].mxu1 }
 0x35b   : > { %v1745_v43 = vpop.f32.mrb[3].mxu1 }
 0x3d2   : > { %v715_v44 = vpop.f32.mrb[4].mxu0 }
 0x3d3   : > { %v1750_v45 = vpop.f32.mrb[5].mxu0  ;;  %v721_v46 = vsel %vm675_vm2, %v715_v44, -inf }
 0x3d4   : > { %722 = vmax.xlane.f32.xlu1 %v721_v46  ;;  %v718_v47 = vpop.f32.mrb[6].mxu0 }
 0x3d5   : > { %v1751_v48 = vpop.f32.mrb[7].mxu0 }
 0x3da   : > { %v844_v49 = vpop.f32.mrb[8].mxu0 }
 0x3db   : > { %v1762_v50 = vpop.f32.mrb[9].mxu0  ;;  %v850_v51 = vsel %vm675_vm2, %v844_v49, -inf }
 0x3dc   : > { %851 = vmax.xlane.f32.xlu0 %v850_v51  ;;  %v847_v52 = vpop.f32.mrb[10].mxu0 }
 0x3dd   : > { %v1763_v53 = vpop.f32.mrb[11].mxu0 }
 0x3e2   : > { %v972_v54 = vpop.f32.mrb[12].mxu0 }
 0x3e3   : > { %v1774_v55 = vpop.f32.mrb[13].mxu0  ;;  %v978_v56 = vsel %vm675_vm2, %v972_v54, -inf }
 0x3e4   : > { %979 = vmax.xlane.f32.xlu1 %v978_v56  ;;  %v975_v57 = vpop.f32.mrb[14].mxu0 }
 0x3e5   : > { %v1775_v58 = vpop.f32.mrb[15].mxu0 }
 0x3ea   : > { %v1100_v60 = vpop.f32.mrb[16].mxu0 }
 0x3eb   : > { %v1786_v61 = vpop.f32.mrb[17].mxu0  ;;  %v1106_v62 = vsel %vm675_vm2, %v1100_v60, -inf }
 0x3ec   : > { %1107 = vmax.xlane.f32.xlu0 %v1106_v62  ;;  %v1103_v63 = vpop.f32.mrb[18].mxu0 }
 0x3ed   : > { %v1787_v1 = vpop.f32.mrb[19].mxu0 }
 0x461   : > { %v723_v3 = vpop.xlane.xlu1 %722 }
 0x462   : > { %v724_v4 = vmax.f32 %v723_v3, %v2475_v40 }
 0x464   : > { %v733_v5 = vsub.f32 %v2475_v40, %v724_v4  ;;  %727 = vperm.xlu1 %1923, %v724_v4  }
 0x466   : > { %v734_v41 = vmul.f32 1.442695, %v733_v5 }
 0x468   : > { %1925 = vset.pattern.permute.xlu1 %v2172_v6 }
 0x469   : > { %v852_v7 = vpop.xlane.xlu0 %851 }
 0x46a   : > { %v853_v9 = vmax.f32 %v852_v7, %v2475_v40 }
 0x46c   : > { %v862_v10 = vsub.f32 %v2475_v40, %v853_v9  ;;  %856 = vperm.xlu0 %1924, %v853_v9  }
 0x46e   : > { %v863_v42 = vmul.f32 1.442695, %v862_v10 }
 0x470   : > { %1931 = vset.pattern.permute.xlu0 %v2173_v11 }
 0x471   : > { %v980_v12 = vpop.xlane.xlu1 %979 }
 0x472   : > { %v981_v13 = vmax.f32 %v980_v12, %v2475_v40 }
 0x474   : > { %v990_v14 = vsub.f32 %v2475_v40, %v981_v13  ;;  %984 = vperm.xlu1 %1925, %v981_v13  }
 0x476   : > { %v991_v46 = vmul.f32 1.442695, %v990_v14 }
 0x478   : > { %1926 = vset.pattern.permute.xlu1 %v2173_v11 }
 0x479   : > { %v1108_v15 = vpop.xlane.xlu0 %1107 }
 0x47a   : > { %v1109_v16 = vmax.f32 %v1108_v15, %v2475_v40 }
 0x47c   : > { %v1118_v17 = vsub.f32 %v2475_v40, %v1109_v16  ;;  %1112 = vperm.xlu1 %1926, %v1109_v16   ;;  %v1220_v40 = vsel %vm1218_vm3, %v1213_v39, 0  ;;  %v1936_v39 = vld [vmem:[%s2692_s7] sm:$0xff]  }
 0x47d   : > { %1795 = vmatpush3.bf16.msra.mxu0 %v1220_v40 }
 0x47e   : > { %1808 = vmatprep.subr.bf16.mxu0 %v2161_v8  ;;  %v1119_v50 = vmul.f32 1.442695, %v1118_v17 }
 0x480   : > { %1927 = vset.pattern.permute.xlu1 %v2170_v59 }
 0x4e3   : > { %v728_v18 = vpop.permute.xlu1 %727 }
 0x4e4   : > { %v730_v19 = vsub.f32 %v715_v44, %v728_v18 }
 0x4e6   : > { %v731_v20 = vmul.f32 1.442695, %v730_v19 }
 0x4e8   : > { %1946 = vpow2.f32 %v731_v20 }
 0x4eb   : > { %v857_v21 = vpop.permute.xlu0 %856 }
 0x4ec   : > { %v859_v22 = vsub.f32 %v844_v49, %v857_v21 }
 0x4ee   : > { %v860_v23 = vmul.f32 1.442695, %v859_v22 }
 0x4f0   : > { %1948 = vpow2.f32 %v860_v23 }
 0x4f2   : > { %v2493_v24 = vpop.eup %1946 }
 0x4f3   : > { %v985_v25 = vpop.permute.xlu1 %984  ;;  %v736_v26 = vsel %vm675_vm2, %v2493_v24, 0.0 }
 0x4f4   : > { %v987_v28 = vsub.f32 %v972_v54, %v985_v25  ;;  %737 = vadd.xlane.f32.xlu1 %v736_v26 }
 0x4f6   : > { %v988_v29 = vmul.f32 1.442695, %v987_v28 }
 0x4f8   : > { %1950 = vpow2.f32 %v988_v29 }
 0x4fa   : > { %v2497_v30 = vpop.eup %1948 }
 0x4fb   : > { %v1113_v31 = vpop.permute.xlu1 %1112  ;;  %v865_v32 = vsel %vm675_vm2, %v2497_v30, 0.0 }
 0x4fc   : > { %v1115_v33 = vsub.f32 %v1100_v60, %v1113_v31  ;;  %866 = vadd.xlane.f32.xlu0 %v865_v32 }
 0x4fe   : > { %v1116_v34 = vmul.f32 1.442695, %v1115_v33 }
 0x500   : > { %1952 = vpow2.f32 %v1116_v34 }
 0x501   : > { %1954 = vpow2.f32 %v734_v41 }
 0x502   : > { %v2501_v35 = vpop.eup %1950  ;;  %1956 = vpow2.f32 %v863_v42 }
 0x503   : > { %v993_v36 = vsel %vm675_vm2, %v2501_v35, 0.0 }
 0x504   : > { %994 = vadd.xlane.f32.xlu1 %v993_v36 }
 0x50a   : > { %v2505_v37 = vpop.eup %1952 }
 0x50b   : > { %v1121_v38 = vsel %vm675_vm2, %v2505_v37, 0.0  ;;  %v1955_v43 = vpop.eup %1954 }
 0x50c   : > { %1122 = vadd.xlane.f32.xlu1 %v1121_v38  ;;  %v1957_v47 = vpop.eup %1956 }
 0x512   : > { %751 = vrot.lane.b32.xlu0 %v2441_v27, %s2174_s16  ;;  %s2570_s16 = scalar_lea.vmem [#allocation9], %s1654_s24 }
 0x513   : > { %s1522_s19 = sshll.u32 %s2570_s16, 4  ;;  %s1523_s19 = int_to_ptr.vmem [resolvable:$true] %s1522_s19 }
 0x516   : > { %1008 = vrot.lane.b32.xlu0 %v2441_v27, %s2175_s26 }
 0x51a   : > { %1136 = vrot.lane.b32.xlu0 %v2441_v27, %s2176_s21 }
 0x581   : > { %v738_v44 = vpop.xlane.xlu1 %737 }
 0x582   : > { %v739_v45 = vadd.f32 %v1955_v43, %v738_v44  ;;  %v1937_v44 = vld [vmem:[%s2692_s7 + $0x8] sm:$0xff]  }
 0x584   : > { %1958 = vrcp.f32 %v739_v45 }
 0x585   : > { %1960 = vpow2.f32 %v991_v46 }
 0x589   : > { %v867_v48 = vpop.xlane.xlu0 %866 }
 0x58a   : > { %v868_v49 = vadd.f32 %v1957_v47, %v867_v48 }
 0x58c   : > { %1962 = vrcp.f32 %v868_v49 }
 0x58d   : > { %v752_v51 = vpop.permute.xlu0 %751  ;;  %1964 = vpow2.f32 %v1119_v50 }
 0x58e   : > { %v1959_v52 = vpop.eup %1958  ;;  %v758_v53 = vsel %vm756_vm4, %v752_v51, 0 }
 0x58f   : > { %744 = vperm.xlu1 %1927, %v1959_v52   ;;  %1753 = vmatpush3.bf16.msra.mxu1 %v758_v53  ;;  %v1961_v54 = vpop.eup %1960  ;;  %v748_v58 = vmul.f32 %v1959_v52, %v1955_v43 }
 0x590   : > { %1764 = vmatprep.subr.bf16.mxu1 %v2161_v8 }
 0x591   : > { %v995_v55 = vpop.xlane.xlu1 %994  ;;  %v1009_v17 = vpop.permute.xlu0 %1008 }
 0x592   : > { %v996_v56 = vadd.f32 %v1961_v54, %v995_v55  ;;  %v1014_v20 = vsel %vm756_vm4, %v1009_v17, 0 }
 0x593   : > { %1928 = vset.pattern.permute.xlu1 %v2171_v2 }
 0x594   : > { %1966 = vrcp.f32 %v996_v56 }
 0x595   : > { %v1137_v23 = vpop.permute.xlu0 %1136 }
 0x596   : > { %v1963_v57 = vpop.eup %1962  ;;  %v1142_v26 = vsel %vm756_vm4, %v1137_v23, 0 }
 0x597   : > { %v877_v59 = vmul.f32 %v1963_v57, %v1957_v47  ;;  %873 = vperm.xlu1 %1928, %v1963_v57   ;;  %v1965_v60 = vpop.eup %1964 }
 0x599   : > { %v1203_v61 = vsel %vm1202_vm5, %v748_v58, %v877_v59  ;;  %v1123_v62 = vpop.xlane.xlu1 %1122 }
 0x59a   : > { %v1124_v63 = vadd.f32 %v1965_v60, %v1123_v62 }
 0x59b   : > { %880 = vrot.lane.b32.xlu1 %v2441_v27, %s2177_s27  ;;  %s1691_s27 = sshll.u32 %s2279_s17, 7 }
 0x59c   : > { %1968 = vrcp.f32 %v1124_v63  ;;  %1929 = vset.pattern.permute.xlu1 %v2172_v6 }
 0x59e   : > { %v1967_v1 = vpop.eup %1966 }
 0x59f   : > { %v1005_v3 = vmul.f32 %v1967_v1, %v1961_v54  ;;  %1001 = vperm.xlu1 %1929, %v1967_v1  }
 0x5a1   : > { %v1205_v2 = vsel %vm1204_vm6, %v1203_v61, %v1005_v3  ;;  %v1938_v3 = vld [vmem:[%s2694_s9] sm:$0xff]  }
 0x5a3   : > { %1930 = vset.pattern.permute.xlu1 %v2173_v11 }
 0x5a6   : > { %v1969_v4 = vpop.eup %1968 }
 0x5a7   : > { %v1133_v5 = vmul.f32 %v1969_v4, %v1965_v60  ;;  %1129 = vperm.xlu1 %1930, %v1969_v4   ;;  %v1940_v4 = vld [vmem:[%s2696_s11] sm:$0xff]  }
 0x5a9   : > { %v1207_v7 = vsel %vm1206_vm7, %v1205_v2, %v1133_v5  ;;  %v1939_v2 = vld [vmem:[%s2694_s9 + $0x8] sm:$0xff]  }
 0x5aa   : > { %v1212_v9 = vpack.c.bf16 %v1207_v7, %v1207_v7  ;;  %v2522_v10 = vsel %vm1214_vm8, %v1207_v7, 0.0  ;;  %v1941_v5 = vld [vmem:[%s2696_s11 + $0x8] sm:$0xff]  }
 0x5ac   : > { %1797 = vmatmul.mubr.msk.bf16.vlgmr.msra.gmra.mrb[20].mxu0 %vm1214_vm8, %v1212_v9  ;;  %v1678_v9 = vld [vmem:[%s2693_s8] ss:$0 sm:$0xff] }
 0x5ad   : > { %1812 = vmatprep.mubr.msk.bf16.mxu0 %vm2162_vm1, %v2161_v8  ;;  %1809 = vmatpush3.bf16.msra.mxu0 %v1938_v3 }
 0x5ae   : > { %1810 = vmatprep.subr.bf16.mxu0 %v2161_v8 }
 0x5b1   : > { %1811 = vmatpush3.bf16.msra.mxu0 %v1939_v2 }
 0x60e   : > { %v745_v27 = vpop.permute.xlu1 %744 }
 0x60f   : > { %v747_v6 = vmul.f32 %v2493_v24, %v745_v27 }
 0x611   : > { %v750_v12 = vpack.c.bf16 %v747_v6, %v747_v6 }
 0x613   : > { %1755 = vmatmul.mubr.msk.bf16.vlgmr.msra.gmra.mrb[4].mxu1 %vm675_vm2, %v750_v12 }
 0x614   : > { %1766 = vmatprep.mubr.msk.bf16.mxu1 %vm2162_vm1, %v2161_v8 }
 0x616   : > { %v874_v11 = vpop.permute.xlu1 %873 }
 0x617   : > { %v876_v13 = vmul.f32 %v2497_v30, %v874_v11 }
 0x619   : > { %v878_v14 = vadd.f32 %v876_v13, %v747_v6  ;;  %v879_v18 = vpack.c.bf16 %v876_v13, %v876_v13 }
 0x61a   : > { %v881_v15 = vpop.permute.xlu1 %880 }
 0x61b   : > { %v886_v16 = vsel %vm756_vm4, %v881_v15, 0  ;;  %v1942_v15 = vld [vmem:[%s2696_s11 + $0x10] sm:$0xff]  }
 0x61c   : > { %1765 = vmatpush3.bf16.msra.mxu1 %v886_v16  ;;  %v1943_v16 = vld [vmem:[%s2696_s11 + $0x18] sm:$0xff]  }
 0x61d   : > { %1776 = vmatprep.subr.bf16.mxu1 %v2161_v8 }
 0x61e   : > { %v1002_v19 = vpop.permute.xlu1 %1001 }
 0x61f   : > { %v1004_v21 = vmul.f32 %v2501_v35, %v1002_v19  ;;  %1767 = vmatmul.mubr.msk.bf16.vlgmr.msra.gmra.mrb[8].mxu1 %vm675_vm2, %v879_v18 }
 0x620   : > { %1777 = vmatpush3.bf16.msra.mxu1 %v1014_v20  ;;  %1778 = vmatprep.mubr.msk.bf16.mxu1 %vm2162_vm1, %v2161_v8 }
 0x621   : > { %v1006_v22 = vadd.f32 %v1004_v21, %v878_v14  ;;  %1788 = vmatprep.subr.bf16.mxu1 %v2161_v8  ;;  %v1007_v24 = vpack.c.bf16 %v1004_v21, %v1004_v21 }
 0x626   : > { %v1130_v25 = vpop.permute.xlu1 %1129 }
 0x627   : > { %v1132_v28 = vmul.f32 %v2505_v37, %v1130_v25  ;;  %1779 = vmatmul.mubr.msk.bf16.vlgmr.msra.gmra.mrb[12].mxu1 %vm675_vm2, %v1007_v24 }
 0x628   : > { %1789 = vmatpush3.bf16.msra.mxu1 %v1142_v26  ;;  %1790 = vmatprep.mubr.msk.bf16.mxu1 %vm2162_vm1, %v2161_v8 }
 0x629   : > { %v1134_v29 = vadd.f32 %v1132_v28, %v1006_v22  ;;  %1800 = vmatprep.subr.bf16.mxu1 %v2161_v8  ;;  %v1135_v30 = vpack.c.bf16 %v1132_v28, %v1132_v28 }
 0x62b   : > { %v1484_v61 = vmul.f32 0.25, %v1134_v29 }
 0x62f   : > { %1791 = vmatmul.mubr.msk.bf16.vlgmr.msra.gmra.mrb[16].mxu1 %vm675_vm2, %v1135_v30 }
 0x630   : > { %1804 = vmatprep.mubr.msk.bf16.mxu1 %vm2162_vm1, %v2161_v8  ;;  %1801 = vmatpush3.bf16.msra.mxu1 %v1936_v39 }
 0x631   : > { %1802 = vmatprep.subr.bf16.mxu1 %v2161_v8 }
 0x634   : > { %1803 = vmatpush3.bf16.msra.mxu1 %v1937_v44 }
 0x635   : > { %1816 = vmatprep.subr.bf16.mxu1 %v2161_v8 }
 0x67f   : > { %v2548_v31 = vpop.f32.mrb[20].mxu0 }
 0x680   : > { %v1798_v32 = vpop.f32.mrb[21].mxu0 }
 0x681   : > { %v1259_v33 = vpop.f32.mrb[22].mxu0 }
 0x682   : > { %v1799_v34 = vpop.f32.mrb[23].mxu0 }
 0x6e6   : > { %v794_v35 = vpop.f32.mrb[4].mxu1 }
 0x6e7   : > { %v1756_v36 = vpop.f32.mrb[5].mxu1 }
 0x6e8   : > { %v797_v37 = vpop.f32.mrb[6].mxu1 }
 0x6e9   : > { %v1757_v38 = vpop.f32.mrb[7].mxu1 }
 0x6f2   : > { %v922_v40 = vpop.f32.mrb[8].mxu1 }
 0x6f3   : > { %1185 = vrot.lane.b32.xlu1 %v922_v40, %s2178_s13  ;;  %v1768_v41 = vpop.f32.mrb[9].mxu1  ;;  %s2610_s13 = scalar_lea.hbm %s2699_s14, %s1691_s27 }
 0x6f4   : > { %v925_v42 = vpop.f32.mrb[10].mxu1 }
 0x6f5   : > { %v1769_v43 = vpop.f32.mrb[11].mxu1 }
 0x6fa   : > { %v1050_v45 = vpop.f32.mrb[12].mxu1 }
 0x6fb   : > { %1189 = vrot.lane.b32.xlu0 %v1050_v45, %s2179_s22  ;;  %v1780_v46 = vpop.f32.mrb[13].mxu1  ;;  %s2054_s22 = scalar_lea.vmem %s1523_s19, 128 }
 0x6fc   : > { %v1053_v47 = vpop.f32.mrb[14].mxu1  ;;  %p2055_p12 = scmp.ne.s32.totalorder %s1523_s19, %s2054_s22 }
 0x6fd   : > { %v1781_v48 = vpop.f32.mrb[15].mxu1 }
 0x6fe   : > { %p2056_p2 = pnand %p2055_p12, %p2728_p10 }
 0x700   : > { %p2057_p3 = pneg %p2056_p2 }
 0x702   : > { %v1178_v49 = vpop.f32.mrb[16].mxu1 }
 0x703   : > { %1193 = vrot.lane.b32.xlu1 %v1178_v49, %s2180_s28  ;;  %v1792_v50 = vpop.f32.mrb[17].mxu1  ;;  %s2181_s28 = smov [#allocation9]  }
 0x704   : > { %v1181_v51 = vpop.f32.mrb[18].mxu1  ;;  %s2058_s26 = sshll.u32 %s2181_s28, 4  ;;  %s2059_s26 = int_to_ptr.vmem [resolvable:$false] %s2058_s26 }
 0x705   : > { %v1793_v52 = vpop.f32.mrb[19].mxu1  ;;  %s2060_s21 = scalar_lea.vmem %s2059_s26, 256  ;;  %p2061_p4 = scmp.lt.s32.totalorder %s1523_s19, %s2059_s26 }
 0x706   : > { %p2062_p7 = scmp.lt.s32.totalorder %s2060_s21, %s2054_s22 }
 0x708   : > { %p2063_p8 = por %p2062_p7, %p2061_p4 }
 0x70a   : > { %p2064_p11 = pnand %p2063_p8, %p2057_p3 }
 0x71a   : > { %1482 = vadd.xlane.f32.xlu0 %v2522_v10 }
 0x765   : > { %v1186_v53 = vpop.permute.xlu1 %1185 }
 0x766   : > { %v1196_v55 = vsel %vm675_vm2, %v794_v35, %v1186_v53 }
 0x76d   : > { %v1190_v54 = vpop.permute.xlu0 %1189 }
 0x76e   : > { %v1198_v56 = vsel %vm1197_vm9, %v1196_v55, %v1190_v54 }
 0x775   : > { %v1194_v57 = vpop.permute.xlu1 %1193 }
 0x776   : > { %v1200_v58 = vsel %vm1199_vm10, %v1198_v56, %v1194_v57 }
 0x777   : > { %v1201_v59 = vpack.c.bf16 %v1200_v58, %v1200_v58 }
 0x779   : > { %1805 = vmatmul.mubr.msk.bf16.vlgmr.msra.gmra.mrb[20].mxu1 %vm514_vm0, %v1201_v59 }
 0x77a   : > { %1824 = vmatprep.mubr.msk.bf16.mxu1 %vm2162_vm1, %v2161_v8  ;;  %1817 = vmatpush3.bf16.msra.mxu1 %v1940_v4 }
 0x77b   : > { %1818 = vmatprep.subr.bf16.mxu1 %v2161_v8 }
 0x77e   : > { %1819 = vmatpush3.bf16.msra.mxu1 %v1941_v5 }
 0x77f   : > { %1820 = vmatprep.subr.bf16.mxu1 %v2161_v8 }
 0x782   : > { %1821 = vmatpush3.bf16.msra.mxu1 %v1942_v15 }
 0x783   : > { %1822 = vmatprep.subr.bf16.mxu1 %v2161_v8 }
 0x786   : > { %1823 = vmatpush3.bf16.msra.mxu1 %v1943_v16 }
 0x7a7   : > { %v1483_v60 = vpop.xlane.xlu0 %1482 }
 0x7a8   : > { %v1485_v62 = vmul.f32 0.25, %v1483_v60 }
 0x7aa   : > { %v1486_v63 = vsel %vm675_vm2, %v1484_v61, %v1485_v62 }
 0x7ab   : > { %v1488_v1 = vsel %vm1487_vm11, %v1486_v63, 0.0 }
 0x7ac   : > { %1489 = vst [vmem:[%s2570_s16] sm:$0xff] %v1488_v1 }
 0x84c   : > { %v1311_v7 = vpop.f32.mrb[20].mxu1 }
 0x84d   : > { %v1312_v10 = vadd.f32 %v1311_v7, %v2548_v31  ;;  %v1806_v27 = vpop.f32.mrb[21].mxu1 }
 0x84e   : > { %v1314_v6 = vpop.f32.mrb[22].mxu1 }
 0x84f   : > { %v1324_v12 = vadd.f32 %v1678_v9, %v1312_v10  ;;  %v1807_v11 = vpop.f32.mrb[23].mxu1 }
 0x851   : > { %v1325_v13 = vadd.f32 %v1324_v12, %v2410_v0  ;;  %v1679_v0 = vld [vmem:[%s2695_s10] ss:$0 sm:$0xff] }
 0x853   : > { %v1326_v14 = vpack.c.bf16 %v1325_v13, %v1325_v13 }
 0x855   : > { %1813 = vmatmul.mubr.msk.bf16.vlgmr.msra.gmra.mrb[24].mxu0 %vm514_vm0, %v1326_v14 }
 0x928   : > { %v1387_v17 = vpop.f32.mrb[24].mxu0 }
 0x929   : > { %v1388_v18 = vadd.f32 %v1679_v0, %v1387_v17  ;;  %v1814_v19 = vpop.f32.mrb[25].mxu0 }
 0x92a   : > { %v1390_v20 = vpop.f32.mrb[26].mxu0 }
 0x92b   : > { %v1393_v21 = vmax.f32 %v1388_v18, 0.0  ;;  %v1815_v22 = vpop.f32.mrb[27].mxu0 }
 0x92d   : > { %v1394_v23 = vpack.c.bf16 %v1393_v21, %v1393_v21 }
 0x92f   : > { %1825 = vmatmul.mubr.msk.bf16.vlgmr.msra.gmra.mrb[24].mxu1 %vm1427_vm12, %v1394_v23 }
 0x930   : > { %2067 = shalt.err (!%p2064_p11)
}
 0x931   : > { %s2068_s16 = scalar_lea.hbm %s2610_s13, 128  ;;  %s2072_s18 = scalar_lea.hbm %s2699_s14, 256 }
 0x932   : > { %p2069_p13 = scmp.ne.s32.totalorder %s2610_s13, %s2068_s16  ;;  %p2073_p6 = scmp.lt.u32.totalorder %s2610_s13, %s2699_s14 }
 0x933   : > { %p2074_p5 = scmp.lt.u32.totalorder %s2072_s18, %s2068_s16  ;;  %p2076_p12 = scmp.lt.u32.totalorder %s2068_s16, %s2610_s13 }
 0x934   : > { %p2070_p0 = pnand %p2069_p13, %p2728_p10 }
 0x935   : > { %p2075_p9 = por %p2074_p5, %p2073_p6 }
 0x936   : > { %p2071_p1 = pneg %p2070_p0 }
 0x937   : > { %p2077_p2 = por %p2076_p12, %p2075_p9 }
 0x939   : > { %p2078_p3 = pnand %p2077_p2, %p2071_p1 }
 0x93b   : > { %2081 = shalt.err (!%p2078_p3)
}
 0x93c   : > { %1841 = dma.vmem_to_hbm [thread:$0]  (%p2728_p10), %s1523_s19, 128, %s2610_s13, %s1496_s20  }
 0x93d   : > { %s2729_s21 = sld [smem:[#allocation21_spill]]  ;;  %s500_s15 = scalar_lea.vmem [#allocation8], %s1654_s24 }
 0x93e   : > { %s1509_s29 = sshll.u32 %s500_s15, 4  ;;  %s2730_s12 = sld [smem:[#allocation22_spill]]  ;;  %s2643_s29 = int_to_ptr.vmem [resolvable:$true] %s1509_s29 }
 0x93f   : > { %s1491_s24 = scalar_lea.sflag [#allocation4], %s2564_s25  ;;  %s2082_s13 = scalar_lea.vmem %s2643_s29, 128 }
 0x940   : > { %p2083_p4 = scmp.ne.s32.totalorder %s2643_s29, %s2082_s13  ;;  %s2182_s19 = smov [#allocation8]  }
 0x941   : > { %s2086_s17 = sshll.u32 %s2182_s19, 4  ;;  %s2087_s17 = int_to_ptr.vmem [resolvable:$false] %s2086_s17 }
 0x942   : > { %p2084_p7 = pnand %p2083_p4, %p2728_p10  ;;  %s2088_s20 = scalar_lea.vmem %s2087_s17, 256 }
 0x943   : > { %v1688_v24 = vld [vmem:[%s2729_s21] ss:$0 sm:$0xff]  ;;  %p2089_p11 = scmp.lt.s32.totalorder %s2643_s29, %s2087_s17  ;;  %p2090_p13 = scmp.lt.s32.totalorder %s2088_s20, %s2082_s13 }
 0x944   : > { %s2641_s28 = scalar_lea.hbm %s2730_s12, %s1691_s27  ;;  %p2085_p8 = pneg %p2084_p7 }
 0x945   : > { %p2091_p0 = por %p2090_p13, %p2089_p11 }
 0x947   : > { %p2092_p1 = pnand %p2091_p0, %p2085_p8 }
 0xa02   : > { %v1465_v8 = vpop.f32.mrb[24].mxu1 }
 0xa03   : > { %v1471_v25 = vadd.f32 %v1465_v8, %v1325_v13  ;;  %v1826_v26 = vpop.f32.mrb[25].mxu1 }
 0xa04   : > { %v1468_v28 = vpop.f32.mrb[26].mxu1 }
 0xa05   : > { %v1479_v29 = vadd.f32 %v1688_v24, %v1471_v25  ;;  %v1827_v30 = vpop.f32.mrb[27].mxu1 }
 0xa07   : > { %1480 = vst.msk [vmem:[%s500_s15] sm:$0xff] %vm514_vm0, %v1479_v29 }
 0xa08   : > { %2095 = shalt.err (!%p2092_p1)
}
 0xa09   : > { %s2096_s25 = scalar_lea.hbm %s2641_s28, 128  ;;  %s2100_s26 = scalar_lea.hbm %s2730_s12, 256 }
 0xa0a   : > { %p2097_p6 = scmp.ne.s32.totalorder %s2641_s28, %s2096_s25  ;;  %p2101_p12 = scmp.lt.u32.totalorder %s2641_s28, %s2730_s12 }
 0xa0b   : > { %p2102_p2 = scmp.lt.u32.totalorder %s2100_s26, %s2096_s25  ;;  %p2104_p4 = scmp.lt.u32.totalorder %s2096_s25, %s2641_s28 }
 0xa0c   : > { %p2098_p5 = pnand %p2097_p6, %p2728_p10 }
 0xa0d   : > { %p2103_p3 = por %p2102_p2, %p2101_p12 }
 0xa0e   : > { %p2099_p9 = pneg %p2098_p5 }
 0xa0f   : > { %p2105_p7 = por %p2104_p4, %p2103_p3 }
 0xa11   : > { %p2106_p8 = pnand %p2105_p7, %p2099_p9 }
 0xa13   : > { %2109 = shalt.err (!%p2106_p8)
}
 0xa14   : > { %1840 = dma.vmem_to_hbm [thread:$0]  (%p2728_p10), %s2643_s29, 128, %s2641_s28, %s1491_s24  }
 0xa15 PF: > { %s2731_s16 = sld [smem:[#allocation17_spill]]  ;;  %s2732_s18 = sld [smem:[#allocation15_spill]] }
 0xa16   : > { %s2733_s13 = sld [smem:[#allocation20_spill]] }
 0xa1b   : > { %p1867_p11 = scmp.ge.s32.totalorder %s2731_s16, 2  ;;  %s1534_s19 = sand.u32 1, %s2732_s18  }
 0xa1c   : > { %p2734_p13 = scmp.ne.s32.totalorder %s2733_s13, 0  ;;  %s1535_s17 = scalar_lea.sflag [#allocation4], %s1534_s19 }
 0xa1e   : > { %p1855_p0 = pnand %p1867_p11, %p2734_p13 }
 0xa20   : > { %2135 = dma.done.wait (!%p1855_p0), %s1535_s17, 128  }
 0xa21   : > { %2137 = vsyncadd (!%p1855_p0), %s1535_s17, 4294967168  ;;  %s1544_s20 = scalar_lea.sflag [#allocation10], %s1534_s19 }
 0xa22   : > { %2139 = dma.done.wait (!%p1855_p0), %s1544_s20, 128  }
 0xa23   : > { %2141 = vsyncadd (!%p1855_p0), %s1544_s20, 4294967168  ;;  %s2735_s16 = sld [smem:[#allocation18_spill]]  ;;  %s2736_s23 = sld [smem:[#allocation16_spill]] }
 0xa24   : > { %s2737_s15 = sld [smem:[#allocation19_spill]]  ;;  %s2738_s29 = smov %s2148_s30 }
 0xa29   : > { %p30_p10 = scmp.ge.s32.totalorder %s2735_s16, 4   ;;  %s2739_s30 = smov %s2736_s23 }
 0xa2b   :  { %32 = sbr.rel (!%p30_p10) target bundleno = 10 (0xa), region = 137 }
 0xa32   :  { %1549 = vsyncpa [#allocation3], 1 }
 0xa33   :  { %1551 = vsyncpa [#allocation3 + $0x1], 1 }
 0xa34   :  { %1552 = vsyncpa [#allocation6], 1 }
 0xa35   :  { %1553 = vsyncpa [#allocation4], 1 }
 0xa36   :  { %1555 = vsyncpa [#allocation4 + $0x1], 1 }
 0xa37   :  { %1556 = vsyncpa [#allocation10], 1 }
 0xa38   :  { %1558 = vsyncpa [#allocation10 + $0x1], 1 }

</bundles_post_ra>
